<compile_context>
chip_gen: v7x
topology: tpu7x:2x2x1
jax: 0.10.0
libtpu: 0.0.40
codegen_flags: <defaults>
</compile_context>

<pallas_src>
import functools
import math

import jax
import jax.numpy as jnp
from jax import lax
from jax.experimental import pallas as pl
from jax.experimental.pallas import tpu as pltpu


# --------------------------------------------------------------------------
# Generation detection / budgets
# --------------------------------------------------------------------------
def _device_kind():
    try:
        return jax.devices()[0].device_kind.lower()
    except Exception:
        return ""


def _is_v7x(kind):
    return ("7x" in kind) or ("v7" in kind)


def _use_bf16_exp(kind):
    # bf16 EUP path exists on v6e / v7x; v5e (and older) keep f32 exp.
    return ("v6" in kind) or _is_v7x(kind)


def _vmem_cap_bytes(kind):
    # v7x: 64 MiB physical -> leave headroom for compiler-internal scratch.
    # v5e / v6e: 128 MiB physical -> allow big tiles.
    return (56 if _is_v7x(kind) else 100) * 1024 * 1024


def _vmem_limit(nbytes, cap):
    return int(min(max(int(nbytes), 32 * 1024 * 1024), cap))


# --------------------------------------------------------------------------
# VMEM footprint estimates (blocks are double-buffered; temporaries included)
# --------------------------------------------------------------------------
def _fused_vmem_bytes(HW, C, exp_bf16):
    blocks = 2 * (2 * HW * C * 4                 # x in + out
                  + C * C * 4                    # group-average matrix
                  + 4 * C * C * 2                # Wqkv^T + Wproj^T (bf16)
                  + 16 * C * 4)                  # gamma/beta/bias rows
    temps = (HW * C * 4 + HW * C * 2             # xc, h
             + HW * 3 * C * 4 + 3 * HW * C * 2   # fused qkv f32, q/k/v bf16
             + HW * HW * 4                       # scores
             + HW * HW * (2 if exp_bf16 else 4)  # p
             + 2 * HW * 128 * 4                  # row max / denom (lane-padded)
             + 2 * HW * C * 4)                   # pv, y
    return int(1.3 * (blocks + temps))


def _gnqkv_vmem_bytes(HW, C):
    blocks = 2 * (HW * C * 4 + 3 * HW * C * 2
                  + C * C * 4 + 3 * C * C * 2 + 16 * C * 4)
    temps = HW * C * 4 + HW * C * 2 + HW * 3 * C * 4
    return int(1.3 * (blocks + temps))


def _flash_vmem_bytes(tq, tk, C, exp_bf16):
    blocks = 2 * (tq * C * 4 + tq * C * 2)        # x residual + q (double buf)
    blocks += 2 * 3 * tk * C * 2                  # k + v, 3-deep buffered
    blocks += 2 * (C * C * 2 + C * 4 + tq * C * 4)  # Wproj^T, bproj, out
    scratch = 2 * tq * 128 * 4 + tq * C * 4       # m, l (lane-padded), acc
    temps = (tq * tk * 4                          # scores
             + tq * tk * (2 if exp_bf16 else 4)   # p
             + tq * tk * 2                        # bf16 operand fed to the MXU
             + 2 * tq * C * 4)                    # finalize temporaries
    return int(1.3 * (blocks + scratch + temps))


# --------------------------------------------------------------------------
# Tile selection
# --------------------------------------------------------------------------
def _pick_tile(hw, target):
    """Largest divisor of hw that is <= target and a multiple of 8 (else hw)."""
    if hw <= target:
        return hw
    for t in range(min(target, hw), 7, -1):
        if hw % t == 0 and t % 8 == 0:
            return t
    return hw


def _shrink_tile(hw, cur):
    nxt = _pick_tile(hw, max(cur // 2, 8))
    return nxt if nxt < cur else cur


# --------------------------------------------------------------------------
# Shared in-kernel GroupNorm (two-pass statistics via the MXU group-average
# trick: `gavg` is the block-diagonal "average over my group" matrix with the
# 1/(HW * C_per_group) count baked in).
# --------------------------------------------------------------------------
def _groupnorm_bf16(x, gamma, beta, gavg, eps):
    s1 = jnp.sum(x, axis=0, keepdims=True)                         # (1, C)
    cmean = jnp.dot(s1, gavg, preferred_element_type=jnp.float32)  # (1, C)
    xc = x - cmean
    s2 = jnp.sum(xc * xc, axis=0, keepdims=True)                   # (1, C)
    cvar = jnp.dot(s2, gavg, preferred_element_type=jnp.float32)   # (1, C)
    inv_std = lax.rsqrt(cvar + eps)
    return (xc * (inv_std * gamma) + beta).astype(jnp.bfloat16)


# --------------------------------------------------------------------------
# FUSED kernel (small HW): GroupNorm + QKV + full attention + proj + residual
# Grid: (N,) — one batch element per step.
# --------------------------------------------------------------------------
def _fused_attn_kernel(x_ref, gamma_ref, beta_ref, gavg_ref,
                       wqkv_ref, bqkv_ref, wp_ref, bp_ref, o_ref,
                       *, eps, C, exp_bf16):
    x = x_ref[0]                                                   # (HW, C) f32
    h = _groupnorm_bf16(x, gamma_ref[...], beta_ref[...], gavg_ref[...], eps)

    # One fused (C, 3C) projection: better MXU N-fill at C=128 on the 256-wide
    # v6e/v7x MXUs, h pushed through the MXU once.  Scale is folded into the
    # key columns; slices land on C-aligned lane offsets (128-aligned here).
    qkv = (jnp.dot(h, wqkv_ref[...], preferred_element_type=jnp.float32)
           + bqkv_ref[...])                                        # (HW, 3C) f32
    q = qkv[:, :C].astype(jnp.bfloat16)
    k = qkv[:, C:2 * C].astype(jnp.bfloat16)
    v = qkv[:, 2 * C:].astype(jnp.bfloat16)

    # Full softmax attention: HW is small enough that the (HW, HW) scores fit
    # comfortably in VMEM (checked by the wrapper's footprint estimate).
    s = lax.dot_general(q, k, (((1,), (1,)), ((), ())),
                        preferred_element_type=jnp.float32)        # (HW, HW)
    m = jnp.max(s, axis=-1, keepdims=True)
    if exp_bf16:
        p = jnp.exp((s - m).astype(jnp.bfloat16))                  # bf16 EUP path
    else:
        p = jnp.exp(s - m)
    l = jnp.sum(p.astype(jnp.float32), axis=-1, keepdims=True)     # f32 denom
    pv = jnp.dot(p.astype(jnp.bfloat16), v, preferred_element_type=jnp.float32)
    out = pv * pl.reciprocal(l, approx=True)                       # (HW, C) f32

    y = jnp.dot(out.astype(jnp.bfloat16), wp_ref[...],
                preferred_element_type=jnp.float32) + bp_ref[...]
    o_ref[0] = (y + x).astype(o_ref.dtype)


# --------------------------------------------------------------------------
# FLASH path Kernel A: GroupNorm + fused QKV projection (one batch / step).
# --------------------------------------------------------------------------
def _gn_qkv_kernel(x_ref, gamma_ref, beta_ref, gavg_ref, wqkv_ref, bqkv_ref,
                   q_ref, k_ref, v_ref, *, eps, C):
    h = _groupnorm_bf16(x_ref[0], gamma_ref[...], beta_ref[...],
                        gavg_ref[...], eps)
    qkv = (jnp.dot(h, wqkv_ref[...], preferred_element_type=jnp.float32)
           + bqkv_ref[...])                                        # (HW, 3C) f32
    q_ref[0] = qkv[:, :C].astype(q_ref.dtype)
    k_ref[0] = qkv[:, C:2 * C].astype(k_ref.dtype)                 # scale folded in
    v_ref[0] = qkv[:, 2 * C:].astype(v_ref.dtype)
    # NOTE: whole-(HW, C) block per batch element; for very large HW*C on
    # v7x (64 MiB VMEM) this should be split over HW with a separate stats
    # pass — not needed at DDPM attention resolutions (fused path handles
    # every shape where the scores fit in VMEM).


# --------------------------------------------------------------------------
# FLASH path Kernel B: online-softmax attention + projection + residual.
# Grid: (batch, q-tile, kv-tile); kv-tile is the trailing reduction axis.
# --------------------------------------------------------------------------
def _flash_attn_kernel(x_ref, q_ref, k_ref, v_ref, wp_ref, bp_ref, o_ref,
                       m_ref, l_ref, acc_ref, *, exp_bf16):
    ki = pl.program_id(2)

    @pl.when(ki == 0)
    def _init():
        m_ref[...] = jnp.full(m_ref.shape, -jnp.inf, dtype=m_ref.dtype)
        l_ref[...] = jnp.zeros(l_ref.shape, l_ref.dtype)
        acc_ref[...] = jnp.zeros(acc_ref.shape, acc_ref.dtype)

    q = q_ref[0]                                   # (tq, C) bf16 (unscaled)
    k = k_ref[0]                                   # (tk, C) bf16 (scale folded in)

    # Contract the channel dim of both operands directly: no transposed copy
    # of k is materialized; the MXU consumes it as the [K, N] operand.
    s = lax.dot_general(q, k, (((1,), (1,)), ((), ())),
                        preferred_element_type=jnp.float32)        # (tq, tk) f32

    m_prev = m_ref[...]                                            # (tq, 1)
    m_new = jnp.maximum(m_prev, jnp.max(s, axis=-1, keepdims=True))
    alpha = jnp.exp(m_prev - m_new)
    if exp_bf16:
        p = jnp.exp((s - m_new).astype(jnp.bfloat16))              # bf16 EUP path
    else:
        p = jnp.exp(s - m_new)
    # Softmax denominator always accumulated in f32.
    l_ref[...] = alpha * l_ref[...] + jnp.sum(p.astype(jnp.float32),
                                              axis=-1, keepdims=True)
    acc_ref[...] = alpha * acc_ref[...] + jnp.dot(
        p.astype(jnp.bfloat16), v_ref[0], preferred_element_type=jnp.float32)
    m_ref[...] = m_new

    @pl.when(ki == pl.num_programs(2) - 1)
    def _finalize():
        # Normalize AFTER the PV matmul; reciprocal runs on the EUP slot.
        out = acc_ref[...] * pl.reciprocal(l_ref[...], approx=True)  # (tq, C)
        y = jnp.dot(out.astype(jnp.bfloat16), wp_ref[...],
                    preferred_element_type=jnp.float32) + bp_ref[...]
        o_ref[0] = (y + x_ref[0]).astype(o_ref.dtype)


# --------------------------------------------------------------------------
# Wrapper
# --------------------------------------------------------------------------
def attention_forward(x_nchw, params, num_groups, eps=1e-5,
                      tq=None, tk=None, force_flash=False):
    """x_nchw: (N, C, H, W) float32. Returns (N, C, H, W) float32."""
    N, C, H, W = x_nchw.shape
    HW = H * W
    assert C % num_groups == 0
    cg = C // num_groups
    scale = C ** (-0.5)

    kind = _device_kind()
    v7x = _is_v7x(kind)
    exp_bf16 = _use_bf16_exp(kind)
    cap = _vmem_cap_bytes(kind)

    # glue: NCHW -> channels-last flattened spatial (N, HW, C)
    x = jnp.transpose(x_nchw, (0, 2, 3, 1)).reshape(N, HW, C).astype(jnp.float32)

    gamma = params["gn_gamma"].reshape(1, C).astype(jnp.float32)
    beta = params["gn_beta"].reshape(1, C).astype(jnp.float32)

    # Block-diagonal group-averaging matrix with the 1/(HW*cg) count baked in.
    gid = jnp.arange(C, dtype=jnp.int32) // cg
    gavg = (gid[:, None] == gid[None, :]).astype(jnp.float32) / float(HW * cg)

    # Conv1x1 weights -> per-pixel linear, one fused (C, 3C) RHS.
    # The attention scale is folded into the key columns / bias.
    wq_t = params["qkv_w"][:C].T
    wk_t = params["qkv_w"][C:2 * C].T * scale
    wv_t = params["qkv_w"][2 * C:].T
    wqkv_t = jnp.concatenate([wq_t, wk_t, wv_t], axis=1).astype(jnp.bfloat16)
    bqkv = jnp.concatenate(
        [params["qkv_b"][:C], params["qkv_b"][C:2 * C] * scale,
         params["qkv_b"][2 * C:]]).reshape(1, 3 * C).astype(jnp.float32)
    wp_t = params["proj_w"].T.astype(jnp.bfloat16)                       # (C, C)
    bp = params["proj_b"].reshape(1, C).astype(jnp.float32)

    fused_bytes = _fused_vmem_bytes(HW, C, exp_bf16)
    use_fused = (not force_flash) and fused_bytes <= int(0.75 * cap)

    if use_fused:
        # -------- FUSED path: one kernel, no q/k/v HBM round trip --------
        out = pl.pallas_call(
            functools.partial(_fused_attn_kernel, eps=eps, C=C,
                              exp_bf16=exp_bf16),
            out_shape=jax.ShapeDtypeStruct((N, HW, C), jnp.float32),
            grid=(N,),
            in_specs=[
                pl.BlockSpec((1, HW, C), lambda b: (b, 0, 0)),   # x
                pl.BlockSpec((1, C), lambda b: (0, 0)),          # gamma
                pl.BlockSpec((1, C), lambda b: (0, 0)),          # beta
                pl.BlockSpec((C, C), lambda b: (0, 0)),          # group-average
                pl.BlockSpec((C, 3 * C), lambda b: (0, 0)),      # Wqkv^T
                pl.BlockSpec((1, 3 * C), lambda b: (0, 0)),      # bqkv
                pl.BlockSpec((C, C), lambda b: (0, 0)),          # Wproj^T
                pl.BlockSpec((1, C), lambda b: (0, 0)),          # bproj
            ],
            out_specs=pl.BlockSpec((1, HW, C), lambda b: (b, 0, 0)),
            compiler_params=pltpu.CompilerParams(
                dimension_semantics=("parallel",),
                vmem_limit_bytes=_vmem_limit(fused_bytes, cap)),
        )(x, gamma, beta, gavg, wqkv_t, bqkv, wp_t, bp)
        return jnp.transpose(out.reshape(N, H, W, C), (0, 3, 1, 2))

    # -------- FLASH path (large HW, or forced for testing) --------
    # Generation-aware tile targets; collapse the kv axis when HW is small.
    if tq is None:
        tq = _pick_tile(HW, 256 if v7x else 512)
    if tk is None:
        tk_target = 512 if v7x else 1024
        tk = HW if HW <= tk_target else _pick_tile(HW, tk_target)
    assert HW % tq == 0 and HW % tk == 0

    # Shrink tiles if the estimated footprint exceeds the generation budget.
    for _ in range(8):
        if _flash_vmem_bytes(tq, tk, C, exp_bf16) <= cap:
            break
        nk = _shrink_tile(HW, tk)
        if nk < tk:
            tk = nk
            continue
        nq = _shrink_tile(HW, tq)
        if nq < tq:
            tq = nq
            continue
        break

    # Kernel A: GroupNorm + fused QKV (bf16 q/k/v to HBM).
    bytes_a = _gnqkv_vmem_bytes(HW, C)
    q, k, v = pl.pallas_call(
        functools.partial(_gn_qkv_kernel, eps=eps, C=C),
        out_shape=(jax.ShapeDtypeStruct((N, HW, C), jnp.bfloat16),) * 3,
        grid=(N,),
        in_specs=[
            pl.BlockSpec((1, HW, C), lambda b: (b, 0, 0)),   # x
            pl.BlockSpec((1, C), lambda b: (0, 0)),          # gamma
            pl.BlockSpec((1, C), lambda b: (0, 0)),          # beta
            pl.BlockSpec((C, C), lambda b: (0, 0)),          # group-average
            pl.BlockSpec((C, 3 * C), lambda b: (0, 0)),      # Wqkv^T
            pl.BlockSpec((1, 3 * C), lambda b: (0, 0)),      # bqkv
        ],
        out_specs=(pl.BlockSpec((1, HW, C), lambda b: (b, 0, 0)),) * 3,
        compiler_params=pltpu.CompilerParams(
            dimension_semantics=("parallel",),
            vmem_limit_bytes=_vmem_limit(bytes_a, cap)),
    )(x, gamma, beta, gavg, wqkv_t, bqkv)

    # Kernel B: flash attention + projection + residual.
    bytes_b = _flash_vmem_bytes(tq, tk, C, exp_bf16)
    out = pl.pallas_call(
        functools.partial(_flash_attn_kernel, exp_bf16=exp_bf16),
        out_shape=jax.ShapeDtypeStruct((N, HW, C), jnp.float32),
        grid=(N, HW // tq, HW // tk),
        in_specs=[
            pl.BlockSpec((1, tq, C), lambda b, qi, ki: (b, qi, 0)),   # x (residual)
            pl.BlockSpec((1, tq, C), lambda b, qi, ki: (b, qi, 0)),   # q
            pl.BlockSpec((1, tk, C), lambda b, qi, ki: (b, ki, 0),
                         pipeline_mode=pl.Buffered(3)),               # k (3-deep)
            pl.BlockSpec((1, tk, C), lambda b, qi, ki: (b, ki, 0),
                         pipeline_mode=pl.Buffered(3)),               # v (3-deep)
            pl.BlockSpec((C, C), lambda b, qi, ki: (0, 0)),           # Wproj^T
            pl.BlockSpec((1, C), lambda b, qi, ki: (0, 0)),           # bproj
        ],
        out_specs=pl.BlockSpec((1, tq, C), lambda b, qi, ki: (b, qi, 0)),
        scratch_shapes=[
            pltpu.VMEM((tq, 1), jnp.float32),    # m (running max)
            pltpu.VMEM((tq, 1), jnp.float32),    # l (running denom)
            pltpu.VMEM((tq, C), jnp.float32),    # acc (running PV)
        ],
        compiler_params=pltpu.CompilerParams(
            dimension_semantics=("parallel", "parallel", "arbitrary"),
            vmem_limit_bytes=_vmem_limit(bytes_b, cap)),
    )(x, q, k, v, wp_t, bp)

    return jnp.transpose(out.reshape(N, H, W, C), (0, 3, 1, 2))


# --------------------------------------------------------------------------
# Pure-JAX reference mirroring the PyTorch module (f32 throughout).
# --------------------------------------------------------------------------
def attention_reference(x_nchw, params, num_groups, eps=1e-5):
    N, C, H, W = x_nchw.shape
    scale = C ** (-0.5)
    xg = x_nchw.reshape(N, num_groups, C // num_groups, H, W)
    mean = jnp.mean(xg, axis=(2, 3, 4), keepdims=True)
    var = jnp.var(xg, axis=(2, 3, 4), keepdims=True)
    hn = ((xg - mean) / jnp.sqrt(var + eps)).reshape(N, C, H, W)
    hn = hn * params["gn_gamma"].reshape(1, C, 1, 1) + params["gn_beta"].reshape(1, C, 1, 1)
    h_flat = jnp.transpose(hn, (0, 2, 3, 1)).reshape(N, H * W, C)
    qkv = h_flat @ params["qkv_w"].T + params["qkv_b"]
    q, k, v = jnp.split(qkv, 3, axis=2)
    score = jnp.einsum("bqc,bkc->bqk", q, k * scale)
    attn = jax.nn.softmax(score, axis=-1)
    out = jnp.einsum("bqk,bkc->bqc", attn, v)
    out = out @ params["proj_w"].T + params["proj_b"]
    out = jnp.transpose(out.reshape(N, H, W, C), (0, 3, 1, 2))
    return out + x_nchw


if __name__ == "__main__":
    # Lane-dense channels (C = 128) and HW = 256. The fused single-kernel path
    # is chosen by default; the flash path is also exercised explicitly with
    # tq = tk = 128 so its multi-step online softmax (grid (2, 2, 2)) runs.
    N, C, H, W = 2, 128, 16, 16
    num_groups = 32

    key = jax.random.PRNGKey(0)
    k_x, k_g, k_b, k_qw, k_qb, k_pw, k_pb = jax.random.split(key, 7)

    x = jax.random.normal(k_x, (N, C, H, W), dtype=jnp.float32)

    params = {
        "gn_gamma": 1.0 + 0.1 * jax.random.normal(k_g, (C,), dtype=jnp.float32),
        "gn_beta": 0.1 * jax.random.normal(k_b, (C,), dtype=jnp.float32),
        "qkv_w": jax.random.normal(k_qw, (3 * C, C), dtype=jnp.float32) / math.sqrt(C),
        "qkv_b": 0.05 * jax.random.normal(k_qb, (3 * C,), dtype=jnp.float32),
        "proj_w": jax.random.normal(k_pw, (C, C), dtype=jnp.float32) / math.sqrt(C),
        "proj_b": 0.05 * jax.random.normal(k_pb, (C,), dtype=jnp.float32),
    }

    y_fused = attention_forward(x, params, num_groups)                  # fused path
    y_flash = attention_forward(x, params, num_groups, force_flash=True,
                                tq=128, tk=128)                         # flash path
    y_fused, y_flash = jax.block_until_ready((y_fused, y_flash))

    y_ref = attention_reference(x, params, num_groups)
    assert y_fused.shape == (N, C, H, W) and y_flash.shape == (N, C, H, W)
    for name, y in (("fused", y_fused), ("flash", y_flash)):
        max_err = float(jnp.max(jnp.abs(y - y_ref)))
        # bf16 matmul operands (+ bf16 exp on v6e/v7x), f32 accumulation ->
        # loosened tolerance.
        assert jnp.allclose(y, y_ref, rtol=5e-2, atol=1.5e-1), (
            f"{name} path mismatch vs reference, max|diff|={max_err}")

    print("KERNEL_OK")
</pallas_src>

<mosaic_0001>
module attributes {stable_mosaic.version = 11 : i64} {
  func.func @_fused_attn_kernel(%arg0: i32, %arg1: memref<1x256x128xf32, #tpu.memory_space<vmem>>, %arg2: memref<1x128xf32, #tpu.memory_space<vmem>>, %arg3: memref<1x128xf32, #tpu.memory_space<vmem>>, %arg4: memref<128x128xf32, #tpu.memory_space<vmem>>, %arg5: memref<128x384xbf16, #tpu.memory_space<vmem>>, %arg6: memref<1x384xf32, #tpu.memory_space<vmem>>, %arg7: memref<128x128xbf16, #tpu.memory_space<vmem>>, %arg8: memref<1x128xf32, #tpu.memory_space<vmem>>, %arg9: memref<1x256x128xf32, #tpu.memory_space<vmem>>) attributes {dimension_semantics = [#tpu.dimension_semantics<parallel>], iteration_bounds = array<i64: 2>, scalar_prefetch = 0 : i64, scratch_operands = 0 : i64, tpu.core_type = #tpu.core_type<tc>, window_params = [{transform_indices = @transform_0, window_bounds = array<i64: 1, 256, 128>}, {pipeline_mode = #tpu.pipeline_mode<synchronous>, transform_indices = @transform_1, window_bounds = array<i64: 1, 128>}, {pipeline_mode = #tpu.pipeline_mode<synchronous>, transform_indices = @transform_2, window_bounds = array<i64: 1, 128>}, {pipeline_mode = #tpu.pipeline_mode<synchronous>, transform_indices = @transform_3, window_bounds = array<i64: 128, 128>}, {pipeline_mode = #tpu.pipeline_mode<synchronous>, transform_indices = @transform_4, window_bounds = array<i64: 128, 384>}, {pipeline_mode = #tpu.pipeline_mode<synchronous>, transform_indices = @transform_5, window_bounds = array<i64: 1, 384>}, {pipeline_mode = #tpu.pipeline_mode<synchronous>, transform_indices = @transform_6, window_bounds = array<i64: 128, 128>}, {pipeline_mode = #tpu.pipeline_mode<synchronous>, transform_indices = @transform_7, window_bounds = array<i64: 1, 128>}, {transform_indices = @transform_8, window_bounds = array<i64: 1, 256, 128>}]} {
    %c0 = arith.constant 0 : index
    %c0_0 = arith.constant 0 : index
    %c0_1 = arith.constant 0 : index
    %0 = vector.load %arg1[%c0, %c0_0, %c0_1] : memref<1x256x128xf32, #tpu.memory_space<vmem>>, vector<1x256x128xf32>
    %1 = vector.shape_cast %0 : vector<1x256x128xf32> to vector<256x128xf32>
    %c0_2 = arith.constant 0 : index
    %c0_3 = arith.constant 0 : index
    %2 = vector.load %arg2[%c0_2, %c0_3] : memref<1x128xf32, #tpu.memory_space<vmem>>, vector<1x128xf32>
    %c0_4 = arith.constant 0 : index
    %c0_5 = arith.constant 0 : index
    %3 = vector.load %arg3[%c0_4, %c0_5] : memref<1x128xf32, #tpu.memory_space<vmem>>, vector<1x128xf32>
    %c0_6 = arith.constant 0 : index
    %c0_7 = arith.constant 0 : index
    %4 = vector.load %arg4[%c0_6, %c0_7] : memref<128x128xf32, #tpu.memory_space<vmem>>, vector<128x128xf32>
    %cst = arith.constant dense<0.000000e+00> : vector<128xf32>
    %5 = vector.multi_reduction <add>, %1, %cst [0] : vector<256x128xf32> to vector<128xf32>
    %6 = vector.shape_cast %5 : vector<128xf32> to vector<1x128xf32>
    %cst_8 = arith.constant dense<0.000000e+00> : vector<1x128xf32>
    %7 = tpu.matmul %6, %4, %cst_8 {dimension_numbers = #tpu.dot_dimension_numbers<[1], [0], [0], [1], [0, 0, 1, 1], [], []>} : vector<1x128xf32>, vector<128x128xf32>, vector<1x128xf32> -> vector<1x128xf32>
    %8 = vector.broadcast %7 : vector<1x128xf32> to vector<256x128xf32>
    %9 = arith.subf %1, %8 : vector<256x128xf32>
    %10 = arith.mulf %9, %9 : vector<256x128xf32>
    %cst_9 = arith.constant dense<0.000000e+00> : vector<128xf32>
    %11 = vector.multi_reduction <add>, %10, %cst_9 [0] : vector<256x128xf32> to vector<128xf32>
    %12 = vector.shape_cast %11 : vector<128xf32> to vector<1x128xf32>
    %cst_10 = arith.constant dense<0.000000e+00> : vector<1x128xf32>
    %13 = tpu.matmul %12, %4, %cst_10 {dimension_numbers = #tpu.dot_dimension_numbers<[1], [0], [0], [1], [0, 0, 1, 1], [], []>} : vector<1x128xf32>, vector<128x128xf32>, vector<1x128xf32> -> vector<1x128xf32>
    %cst_11 = arith.constant 9.99999974E-6 : f32
    %14 = vector.broadcast %cst_11 : f32 to vector<1x128xf32>
    %15 = arith.addf %13, %14 : vector<1x128xf32>
    %16 = math.rsqrt %15 : vector<1x128xf32>
    %17 = arith.mulf %16, %2 : vector<1x128xf32>
    %18 = vector.broadcast %17 : vector<1x128xf32> to vector<256x128xf32>
    %19 = arith.mulf %9, %18 : vector<256x128xf32>
    %20 = vector.broadcast %3 : vector<1x128xf32> to vector<256x128xf32>
    %21 = arith.addf %19, %20 : vector<256x128xf32>
    %22 = arith.truncf %21 : vector<256x128xf32> to vector<256x128xbf16>
    %c0_12 = arith.constant 0 : index
    %c0_13 = arith.constant 0 : index
    %23 = vector.load %arg5[%c0_12, %c0_13] : memref<128x384xbf16, #tpu.memory_space<vmem>>, vector<128x384xbf16>
    %cst_14 = arith.constant dense<0.000000e+00> : vector<256x384xf32>
    %24 = tpu.matmul %22, %23, %cst_14 {dimension_numbers = #tpu.dot_dimension_numbers<[1], [0], [0], [1], [0, 0, 1, 1], [], []>} : vector<256x128xbf16>, vector<128x384xbf16>, vector<256x384xf32> -> vector<256x384xf32>
    %c0_15 = arith.constant 0 : index
    %c0_16 = arith.constant 0 : index
    %25 = vector.load %arg6[%c0_15, %c0_16] : memref<1x384xf32, #tpu.memory_space<vmem>>, vector<1x384xf32>
    %26 = vector.broadcast %25 : vector<1x384xf32> to vector<256x384xf32>
    %27 = arith.addf %24, %26 : vector<256x384xf32>
    %28 = vector.extract_strided_slice %27 {offsets = [0, 0], sizes = [256, 128], strides = [1, 1]} : vector<256x384xf32> to vector<256x128xf32>
    %29 = arith.truncf %28 : vector<256x128xf32> to vector<256x128xbf16>
    %30 = vector.extract_strided_slice %27 {offsets = [0, 128], sizes = [256, 128], strides = [1, 1]} : vector<256x384xf32> to vector<256x128xf32>
    %31 = arith.truncf %30 : vector<256x128xf32> to vector<256x128xbf16>
    %32 = vector.extract_strided_slice %27 {offsets = [0, 256], sizes = [256, 128], strides = [1, 1]} : vector<256x384xf32> to vector<256x128xf32>
    %33 = arith.truncf %32 : vector<256x128xf32> to vector<256x128xbf16>
    %cst_17 = arith.constant dense<0.000000e+00> : vector<256x256xf32>
    %34 = tpu.matmul %29, %31, %cst_17 {dimension_numbers = #tpu.dot_dimension_numbers<[1], [1], [0], [0], [0, 0, 1, 0], [], []>} : vector<256x128xbf16>, vector<256x128xbf16>, vector<256x256xf32> -> vector<256x256xf32>
    %cst_18 = arith.constant dense<0xFF800000> : vector<256xf32>
    %35 = vector.multi_reduction <maximumf>, %34, %cst_18 [1] : vector<256x256xf32> to vector<256xf32>
    %36 = vector.shape_cast %35 : vector<256xf32> to vector<256x1xf32>
    %37 = vector.broadcast %36 : vector<256x1xf32> to vector<256x256xf32>
    %38 = arith.subf %34, %37 : vector<256x256xf32>
    %39 = math.exp %38 : vector<256x256xf32>
    %cst_19 = arith.constant dense<0.000000e+00> : vector<256xf32>
    %40 = vector.multi_reduction <add>, %39, %cst_19 [1] : vector<256x256xf32> to vector<256xf32>
    %41 = vector.shape_cast %40 : vector<256xf32> to vector<256x1xf32>
    %42 = arith.truncf %39 : vector<256x256xf32> to vector<256x256xbf16>
    %cst_20 = arith.constant dense<0.000000e+00> : vector<256x128xf32>
    %43 = tpu.matmul %42, %33, %cst_20 {dimension_numbers = #tpu.dot_dimension_numbers<[1], [0], [0], [1], [0, 0, 1, 1], [], []>} : vector<256x256xbf16>, vector<256x128xbf16>, vector<256x128xf32> -> vector<256x128xf32>
    %44 = tpu.reciprocal %41 {approx = true} : vector<256x1xf32> -> vector<256x1xf32>
    %45 = vector.broadcast %44 : vector<256x1xf32> to vector<256x128xf32>
    %46 = arith.mulf %43, %45 : vector<256x128xf32>
    %47 = arith.truncf %46 : vector<256x128xf32> to vector<256x128xbf16>
    %c0_21 = arith.constant 0 : index
    %c0_22 = arith.constant 0 : index
    %48 = vector.load %arg7[%c0_21, %c0_22] : memref<128x128xbf16, #tpu.memory_space<vmem>>, vector<128x128xbf16>
    %cst_23 = arith.constant dense<0.000000e+00> : vector<256x128xf32>
    %49 = tpu.matmul %47, %48, %cst_23 {dimension_numbers = #tpu.dot_dimension_numbers<[1], [0], [0], [1], [0, 0, 1, 1], [], []>} : vector<256x128xbf16>, vector<128x128xbf16>, vector<256x128xf32> -> vector<256x128xf32>
    %c0_24 = arith.constant 0 : index
    %c0_25 = arith.constant 0 : index
    %50 = vector.load %arg8[%c0_24, %c0_25] : memref<1x128xf32, #tpu.memory_space<vmem>>, vector<1x128xf32>
    %51 = vector.broadcast %50 : vector<1x128xf32> to vector<256x128xf32>
    %52 = arith.addf %49, %51 : vector<256x128xf32>
    %53 = arith.addf %52, %1 : vector<256x128xf32>
    %c0_26 = arith.constant 0 : index
    %c0_27 = arith.constant 0 : index
    %c0_28 = arith.constant 0 : index
    %54 = vector.load %arg9[%c0_26, %c0_27, %c0_28] : memref<1x256x128xf32, #tpu.memory_space<vmem>>, vector<1x256x128xf32>
    %55 = vector.shape_cast %54 : vector<1x256x128xf32> to vector<256x128xf32>
    %56 = vector.shape_cast %53 : vector<256x128xf32> to vector<1x256x128xf32>
    tpu.vector_store %arg9[%c0_26, %c0_27, %c0_28], %56 {strides = array<i32>} : memref<1x256x128xf32, #tpu.memory_space<vmem>>, vector<1x256x128xf32>,
    return
  }
  func.func @transform_0(%arg0: i32) -> (i32, i32, i32) {
    %c0_i32 = arith.constant 0 : i32
    %c0_i32_0 = arith.constant 0 : i32
    %c0_i32_1 = arith.constant 0 : i32
    return %arg0, %c0_i32, %c0_i32_0 : i32, i32, i32
  }
  func.func @transform_1(%arg0: i32) -> (i32, i32) {
    %c0_i32 = arith.constant 0 : i32
    %c0_i32_0 = arith.constant 0 : i32
    %c0_i32_1 = arith.constant 0 : i32
    return %c0_i32, %c0_i32_0 : i32, i32
  }
  func.func @transform_2(%arg0: i32) -> (i32, i32) {
    %c0_i32 = arith.constant 0 : i32
    %c0_i32_0 = arith.constant 0 : i32
    %c0_i32_1 = arith.constant 0 : i32
    return %c0_i32, %c0_i32_0 : i32, i32
  }
  func.func @transform_3(%arg0: i32) -> (i32, i32) {
    %c0_i32 = arith.constant 0 : i32
    %c0_i32_0 = arith.constant 0 : i32
    %c0_i32_1 = arith.constant 0 : i32
    return %c0_i32, %c0_i32_0 : i32, i32
  }
  func.func @transform_4(%arg0: i32) -> (i32, i32) {
    %c0_i32 = arith.constant 0 : i32
    %c0_i32_0 = arith.constant 0 : i32
    %c0_i32_1 = arith.constant 0 : i32
    return %c0_i32, %c0_i32_0 : i32, i32
  }
  func.func @transform_5(%arg0: i32) -> (i32, i32) {
    %c0_i32 = arith.constant 0 : i32
    %c0_i32_0 = arith.constant 0 : i32
    %c0_i32_1 = arith.constant 0 : i32
    return %c0_i32, %c0_i32_0 : i32, i32
  }
  func.func @transform_6(%arg0: i32) -> (i32, i32) {
    %c0_i32 = arith.constant 0 : i32
    %c0_i32_0 = arith.constant 0 : i32
    %c0_i32_1 = arith.constant 0 : i32
    return %c0_i32, %c0_i32_0 : i32, i32
  }
  func.func @transform_7(%arg0: i32) -> (i32, i32) {
    %c0_i32 = arith.constant 0 : i32
    %c0_i32_0 = arith.constant 0 : i32
    %c0_i32_1 = arith.constant 0 : i32
    return %c0_i32, %c0_i32_0 : i32, i32
  }
  func.func @transform_8(%arg0: i32) -> (i32, i32, i32) {
    %c0_i32 = arith.constant 0 : i32
    %c0_i32_0 = arith.constant 0 : i32
    %c0_i32_1 = arith.constant 0 : i32
    return %arg0, %c0_i32, %c0_i32_0 : i32, i32, i32
  }
}

</mosaic_0001>

<bundles_post_ra>
// kernel: tpu_custom_call.1
= control target key start
LH: loop header
LB: loop body
LE: loop exit
PB: predicated region body
PF: predicated region fallthrough
CT: control target
= control target key end

     0   :  { %s5156_s0 = inlined_call_operand.hbm [shape: f32[2,256,128], index: 0, kind: input, shape index: {}]   ;;  %s5157_s1 = inlined_call_operand.vmem [shape: f32[1,128], index: 1, kind: input, shape index: {}]   ;;  %s5158_s2 = inlined_call_operand.vmem [shape: f32[1,128], index: 2, kind: input, shape index: {}]   ;;  %s5159_s3 = inlined_call_operand.hbm [shape: f32[128,128], index: 3, kind: input, shape index: {}]   ;;  %s5160_s4 = inlined_call_operand.hbm [shape: bf16[128,384], index: 4, kind: input, shape index: {}]   ;;  %s5161_s5 = inlined_call_operand.vmem [shape: f32[1,384], index: 5, kind: input, shape index: {}]   ;;  %s5162_s6 = inlined_call_operand.hbm [shape: bf16[128,128], index: 6, kind: input, shape index: {}]   ;;  %s5163_s7 = inlined_call_operand.vmem [shape: f32[1,128], index: 7, kind: input, shape index: {}]   ;;  %s5164_s8 = inlined_call_operand.hbm [shape: f32[2,256,128], index: 8, kind: output, shape index: {}]  }
   0x1   :  { %5184 = sst [smem:[#allocation29_spill]] %s5159_s3 }
   0x2   :  { %13 = vsyncpa [#allocation3], 0 }
   0x3   :  { %15 = vsyncpa [#allocation3 + $0x1], 0 }
   0x4   :  { %16 = vsyncpa [#allocation6], 0 }
   0x5   :  { %17 = vsyncpa [#allocation9], 0 }
   0x6   :  { %18 = vsyncpa [#allocation4], 0 }
   0x7   :  { %20 = vsyncpa [#allocation4 + $0x1], 0  ;;  %s3753_s27 = smov 0   ;;  %s3755_s28 = smov 0  }
   0x8   :  { %s3757_s29 = smov 0   ;;  %s3759_s30 = smov 0  }
   0x9 LB: > { %s3774_s9 = sadd.s32 4294967295, %s3689_s30   ;;  %s2634_s10 = sadd.s32 4294967294, %s3689_s30   ;;  %s3689_s30 = sphi %s3759_s30, %s5235_s30   ;;  %s3685_s29 = sphi %s3757_s29, %s5234_s29   ;;  %s3681_s28 = sphi %s3755_s28, %s5233_s28   ;;  %s3677_s27 = sphi %s3753_s27, %s5232_s27  }
   0xa   : > { %p46_p0 = scmp.ne.s32.totalorder %s3681_s28, %s3677_s27  ;;  %p5165_p1 = scmp.eq.s32.totalorder %s3774_s9, 0 }
   0xb   : > { %p223_p3 = scmp.eq.s32.totalorder %s2634_s10, 1  ;;  %p2635_p5 = scmp.ge.s32.totalorder %s3689_s30, 1 }
   0xc   : > { %p3783_p4 = por %p5165_p1, %p46_p0  ;;  %p230_p7 = scmp.lt.s32.totalorder %s3689_s30, 3 }
   0xd   : > { %p3788_p6 = por %p223_p3, %p46_p0  ;;  %s3691_s14 = smov [#allocation5]  }
   0xe   : > { %s5185_s11 = scalar_select %p3783_p4, 1, 0 }
   0xf   : > { %s5186_s12 = scalar_select %p3788_p6, 1, 0 }
  0x10   : > { %p3793_p8 = pnand %p2635_p5, %p230_p7  ;;  %s248_s15 = sshll.u32 %s3691_s14, 4  ;;  %s3797_s15 = int_to_ptr.vmem [resolvable:$true] %s248_s15 }
  0x11   : > { %5187 = sst [smem:[#allocation15_spill]] %s5186_s12  ;;  %s3692_s17 = smov [#allocation7]  }
  0x12   : > { %s5188_s13 = scalar_select %p3793_p8, 1, 0 }
  0x13   : > { %p3162_p9 = pneg %p3793_p8  ;;  %s261_s18 = sshll.u32 %s3692_s17, 4  ;;  %s3808_s18 = int_to_ptr.vmem [resolvable:$true] %s261_s18 }
  0x14   : > { %s5190_s3 = sld [smem:[#allocation29_spill]] }
  0x15   : > { %p3804_p11 = pnand %p3162_p9, %p5165_p1 }
  0x17   : > { %p3818_p13 = pneg %p3804_p11 }
  0x1a   : > { %s3501_s21 = scalar_lea.hbm %s5190_s3, 2048 }
  0x1b   : > { %p3502_p12 = scmp.ne.s32.totalorder %s5190_s3, %s3501_s21  ;;  %p3508_p5 = scmp.lt.u32.totalorder %s3501_s21, %s5190_s3 }
  0x1d   : > { %p3504_p0 = pnand %p3818_p13, %p3502_p12 }
  0x1f   : > { %p3505_p3 = pneg %p3504_p0 }
  0x21   : > { %p3510_p7 = pnand %p3508_p5, %p3505_p3 }
  0x23   : > { %3513 = shalt.err (!%p3510_p7)
}
  0x24   : > { %s3514_s10 = scalar_lea.vmem %s3797_s15, 2048  ;;  %p3522_p2 = scmp.lt.s32.totalorder %s3797_s15, %s3797_s15 }
  0x25   : > { %p3515_p9 = scmp.ne.s32.totalorder %s3797_s15, %s3514_s10  ;;  %p3523_p6 = scmp.lt.s32.totalorder %s3514_s10, %s3514_s10 }
  0x27   : > { %p3517_p10 = pnand %p3515_p9, %p3818_p13  ;;  %p3524_p12 = por %p3523_p6, %p3522_p2 }
  0x29   : > { %p3518_p1 = pneg %p3517_p10 }
  0x2b   : > { %p3525_p0 = pnand %p3524_p12, %p3518_p1 }
  0x2d   : > { %3528 = shalt.err (!%p3525_p0)
}
  0x2e   : > { %s5167_s14 = smov 128   ;;  %s5168_s17 = smov 8  }
  0x2f   : > { %3165 = dma.hbm_to_vmem [thread:$0]  (!%p3804_p11), %s5190_s3, 2048, %s3797_s15, [#allocation6], %s5167_s14, %s5167_s14, %s5168_s17  }
  0x30   : > { %s3529_s23 = scalar_lea.hbm %s5160_s4, 3072 }
  0x31   : > { %p3530_p1 = scmp.ne.s32.totalorder %s5160_s4, %s3529_s23  ;;  %p3536_p10 = scmp.lt.u32.totalorder %s3529_s23, %s5160_s4 }
  0x33   : > { %p3532_p2 = pnand %p3530_p1, %p3818_p13 }
  0x35   : > { %p3533_p6 = pneg %p3532_p2 }
  0x37   : > { %p3538_p3 = pnand %p3536_p10, %p3533_p6 }
  0x39   : > { %3541 = shalt.err (!%p3538_p3)
}
  0x3a   : > { %s3542_s15 = scalar_lea.vmem %s3808_s18, 3072  ;;  %p3550_p12 = scmp.lt.s32.totalorder %s3808_s18, %s3808_s18 }
  0x3b   : > { %p3543_p5 = scmp.ne.s32.totalorder %s3808_s18, %s3542_s15  ;;  %p3551_p0 = scmp.lt.s32.totalorder %s3542_s15, %s3542_s15 }
  0x3d   : > { %p3545_p7 = pnand %p3543_p5, %p3818_p13  ;;  %p3552_p1 = por %p3551_p0, %p3550_p12 }
  0x3f   : > { %p3546_p9 = pneg %p3545_p7 }
  0x41   : > { %p3553_p2 = pnand %p3552_p1, %p3546_p9 }
  0x43   : > { %3556 = shalt.err (!%p3553_p2)
}
  0x44   : > { %s3695_s19 = smov 192   ;;  %s3696_s12 = smov 12  }
  0x45   : > { %3168 = dma.hbm_to_vmem [thread:$0]  (!%p3804_p11), %s5160_s4, 3072, %s3808_s18, [#allocation6], %s3695_s19, %s3695_s19, %s3696_s12  }
  0x46   : > { %s3697_s22 = smov [#allocation8]   ;;  %s3557_s10 = scalar_lea.hbm %s5162_s6, 1024 }
  0x47   : > { %s277_s23 = sshll.u32 %s3697_s22, 4  ;;  %p3558_p6 = scmp.ne.s32.totalorder %s5162_s6, %s3557_s10  ;;  %s278_s23 = int_to_ptr.vmem [resolvable:$true] %s277_s23 }
  0x48   : > { %p3564_p5 = scmp.lt.u32.totalorder %s3557_s10, %s5162_s6 }
  0x49   : > { %p3560_p10 = pnand %p3558_p6, %p3818_p13 }
  0x4b   : > { %p3561_p3 = pneg %p3560_p10 }
  0x4d   : > { %p3566_p7 = pnand %p3564_p5, %p3561_p3 }
  0x4f   : > { %3569 = shalt.err (!%p3566_p7)
}
  0x50   : > { %s3570_s18 = scalar_lea.vmem %s278_s23, 1024  ;;  %p3578_p1 = scmp.lt.s32.totalorder %s278_s23, %s278_s23 }
  0x51   : > { %p3571_p9 = scmp.ne.s32.totalorder %s278_s23, %s3570_s18  ;;  %p3579_p2 = scmp.lt.s32.totalorder %s3570_s18, %s3570_s18 }
  0x53   : > { %p3573_p12 = pnand %p3571_p9, %p3818_p13  ;;  %p3580_p4 = por %p3579_p2, %p3578_p1 }
  0x55   : > { %p3574_p0 = pneg %p3573_p12 }
  0x57   : > { %p3581_p8 = pnand %p3580_p4, %p3574_p0 }
  0x59   : > { %3584 = shalt.err (!%p3581_p8)
}
  0x5a   : > { %s3698_s14 = smov 64   ;;  %s3699_s3 = smov 4  }
  0x5b   : > { %3171 = dma.hbm_to_vmem [thread:$0]  (!%p3804_p11), %s5162_s6, 1024, %s278_s23, [#allocation9], %s3698_s14, %s3698_s14, %s3699_s3  }
  0x5c   : > { %s3884_s19 = sadd.s32 1, %s3689_s30   ;;  %s33_s20 = sadd.s32 1, %s3685_s29 }
  0x5d   : > { %s30_s12 = ssub.s32 %s3689_s30, %s3884_s19  ;;  %p40_p8 = scmp.ne.s32.totalorder %s3685_s29, %s3681_s28 }
  0x5e   : > { %p31_p4 = scmp.eq.s32.totalorder %s30_s12, 0  ;;  %p41_p13 = scmp.eq.s32.totalorder %s3689_s30, 0 }
  0x5f   : > { %p3183_p6 = scmp.lt.s32.totalorder %s3689_s30, 2  ;;  %p5192_p3 = scmp.eq.s32.totalorder %s3774_s9, 1 }
  0x60   : > { %s3894_s21 = scalar_select %p31_p4, %s3685_s29, %s33_s20  }
  0x61   : > { %p42_p10 = por %p41_p13, %p40_p8  ;;  %p3898_p5 = por %p5192_p3, %p40_p8 }
  0x62   : > { %s294_s16 = sand.u32 1, %s3685_s29   ;;  %s2688_s25 = sshll.u32 %s3689_s30, 12 }
  0x63   : > { %s2640_s23 = sshll.u32 %s294_s16, 8  ;;  %s3907_s15 = scalar_lea.hbm %s5156_s0, %s2688_s25 }
  0x64   : > { %s298_s18 = scalar_lea.vmem [#allocation2], %s2640_s23  ;;  %p3909_p11 = pnand %p3183_p6, %p42_p10 }
  0x65   : > { %s305_s14 = sshll.u32 %s298_s18, 4  ;;  %s3915_s24 = scalar_lea.sflag [#allocation3], %s294_s16  ;;  %s3913_s14 = int_to_ptr.vmem [resolvable:$true] %s305_s14 }
  0x66   : > { %s3585_s17 = scalar_lea.hbm %s3907_s15, 4096  ;;  %p3587_p9 = pneg %p3909_p11 }
  0x67   : > { %p3586_p7 = scmp.ne.s32.totalorder %s3907_s15, %s3585_s17  ;;  %s3590_s25 = scalar_lea.hbm %s5156_s0, 8192 }
  0x68   : > { %p3591_p1 = scmp.lt.u32.totalorder %s3907_s15, %s5156_s0  ;;  %p3592_p2 = scmp.lt.u32.totalorder %s3590_s25, %s3585_s17 }
  0x69   : > { %p3588_p12 = pnand %p3587_p9, %p3586_p7  ;;  %p3594_p8 = scmp.lt.u32.totalorder %s3585_s17, %s3907_s15 }
  0x6a   : > { %p3593_p4 = por %p3592_p2, %p3591_p1 }
  0x6b   : > { %p3589_p0 = pneg %p3588_p12 }
  0x6c   : > { %p3595_p13 = por %p3594_p8, %p3593_p4 }
  0x6e   : > { %p3596_p6 = pnand %p3595_p13, %p3589_p0 }
  0x70   : > { %3599 = shalt.err (!%p3596_p6)
}
  0x71   : > { %s3600_s16 = scalar_lea.vmem %s3913_s14, 4096  ;;  %s3700_s10 = smov [#allocation2]  }
  0x72   : > { %p3601_p10 = scmp.ne.s32.totalorder %s3913_s14, %s3600_s16  ;;  %s3605_s18 = sshll.u32 %s3700_s10, 4  ;;  %s3606_s18 = int_to_ptr.vmem [resolvable:$false] %s3605_s18 }
  0x73   : > { %s3607_s12 = scalar_lea.vmem %s3606_s18, 8192  ;;  %p3608_p12 = scmp.lt.s32.totalorder %s3913_s14, %s3606_s18 }
  0x74   : > { %p3603_p3 = pnand %p3601_p10, %p3587_p9  ;;  %p3609_p1 = scmp.lt.s32.totalorder %s3607_s12, %s3600_s16 }
  0x76   : > { %p3604_p7 = pneg %p3603_p3  ;;  %p3610_p2 = por %p3609_p1, %p3608_p12 }
  0x78   : > { %p3611_p4 = pnand %p3610_p2, %p3604_p7 }
  0x7a   : > { %3614 = shalt.err (!%p3611_p4)
}
  0x7b   : > { %s5195_s17 = smov 8   ;;  %s5196_s20 = smov 128  }
  0x7c   : > { %3175 = dma.hbm_to_vmem [thread:$0]  (!%p3909_p11), %s3907_s15, 4096, %s3913_s14, %s3915_s24, %s5196_s20, %s5196_s20, %s5195_s17  }
  0x7d   : > { %p5197_p9 = scmp.ne.s32.totalorder %s5188_s13, 0 }
  0x7f   : > { %317 = sbr.rel (%p5197_p9) target bundleno = 2052 (0x804), region = 52 }
  0x86   : > { %s3949_s25 = sand.u32 1, %s3681_s28   ;;  %p5198_p0 = scmp.ne.s32.totalorder %s5185_s11, 0 }
  0x87   : > { %s2644_s23 = sshll.u32 %s3949_s25, 8  ;;  %s320_s26 = scalar_lea.sflag [#allocation3], %s3949_s25 }
  0x88   : > { %s3955_s3 = scalar_lea.vmem [#allocation2], %s2644_s23 }
  0x89   : > { %3660 = dma.done.wait (%p5198_p0), %s320_s26, 4096  }
  0x8a   : > { %3662 = vsyncadd (%p5198_p0), %s320_s26, 4294963200  ;;  %p5199_p11 = scmp.eq.s32.totalorder %s3774_s9, 0 }
  0x8c   : > { %3664 = dma.done.wait (%p5199_p11), [#allocation6], 5120   ;;  %p5200_p8 = pmov %p5199_p11 }
  0x8e   : > { %3666 = vsyncadd (%p5200_p8), [#allocation6], 4294962176  ;;  %p5201_p13 = pmov %p5200_p8 }
  0x8f   : > { %p5202_p6 = pmov %p5200_p8 }
  0x90   : > { %3668 = dma.done.wait (%p5201_p13), [#allocation9], 1024  }
  0x91   : > { %3670 = vsyncadd (%p5202_p6), [#allocation9], 4294966272  ;;  %v3701_v0 = vmov 0.0|0.0   ;;  %vm3702_vm0 = vmmov 0   ;;  %v3703_v1 = vmov 0.0   ;;  %v403_v2 = vld [vmem:[#allocation5] sm:$0xff] }
  0x92   : > { %3098 = vmatprep.subr.bf16.mxu0 %v3701_v0  ;;  %2964 = vmatprep.mubr.msk.f32.mxu0 %vm3702_vm0, %v3703_v1  ;;  %v404_v3 = vld [vmem:[#allocation5 + $0x8] sm:$0xff]  ;;  %v405_v4 = vld [vmem:[#allocation5 + $0x10] sm:$0xff]  ;;  %v406_v6 = vld [vmem:[#allocation5 + $0x18] sm:$0xff]  ;;  %s5013_s12 = scalar_lea.vmem [#allocation10], %s2644_s23  ;;  %s2689_s17 = sshll.u32 %s3774_s9, 12 }
  0x93   : > { %3122 = vmatprep.subr.bf16.mxu1 %v3701_v0  ;;  %2999 = vmatprep.mubr.msk.f32.mxu1 %vm3702_vm0, %v3703_v1  ;;  %v3099_v5 = vpack.c.bf16 %v404_v3, %v403_v2  ;;  %v3102_v7 = vpack.c.bf16 %v406_v6, %v405_v4  ;;  %v407_v8 = vld [vmem:[#allocation5 + $0x20] sm:$0xff]  ;;  %v408_v9 = vld [vmem:[#allocation5 + $0x28] sm:$0xff]  ;;  %v3980_v12 = vld [vmem:[%s3955_s3 + $0x10] sm:$0xff]  ;;  %s2532_s20 = sshll.u32 %s5013_s12, 4  ;;  %s5106_s9 = scalar_lea.hbm %s5164_s8, %s2689_s17  ;;  %s5108_s20 = int_to_ptr.vmem [resolvable:$true] %s2532_s20 }
  0x94   : > { %v3974_v10 = vld [vmem:[%s3955_s3] sm:$0xff]  ;;  %v3977_v11 = vld [vmem:[%s3955_s3 + $0x8] sm:$0xff]  ;;  %v3105_v14 = vpack.c.bf16 %v408_v9, %v407_v8  ;;  %v3985_v15 = vld [vmem:[%s3955_s3 + $0x18] sm:$0xff]  ;;  %s2519_s11 = scalar_lea.sflag [#allocation4], %s3949_s25  ;;  %s3615_s13 = scalar_lea.vmem %s5108_s20, 4096 }
  0x95   : > { %3100 = vmatpush3.bf16.msra.mxu0 %v3099_v5  ;;  %3124 = vmatpush3.bf16.msra.mxu1 %v3099_v5  ;;  %v419_v13 = vadd.f32 %v3977_v11, %v3974_v10  ;;  %v409_v16 = vld [vmem:[#allocation5 + $0x30] sm:$0xff]  ;;  %v410_v17 = vld [vmem:[#allocation5 + $0x38] sm:$0xff]  ;;  %v3991_v19 = vld [vmem:[%s3955_s3 + $0x20] sm:$0xff]  ;;  %p3616_p10 = scmp.ne.s32.totalorder %s5108_s20, %s3615_s13  ;;  %s3705_s15 = smov [#allocation10]  }
  0x96   : > { %3101 = vmatprep.subr.bf16.mxu0 %v3701_v0  ;;  %3125 = vmatprep.subr.bf16.mxu1 %v3701_v0  ;;  %v3108_v21 = vpack.c.bf16 %v410_v17, %v409_v16  ;;  %v3995_v22 = vld [vmem:[%s3955_s3 + $0x28] sm:$0xff]  ;;  %v411_v23 = vld [vmem:[#allocation5 + $0x40] sm:$0xff]  ;;  %v4001_v26 = vld [vmem:[%s3955_s3 + $0x30] sm:$0xff]  ;;  %s3619_s14 = sshll.u32 %s3705_s15, 4  ;;  %s3620_s14 = int_to_ptr.vmem [resolvable:$false] %s3619_s14 }
  0x97   : > { %v420_v18 = vadd.f32 %v419_v13, %v3980_v12  ;;  %v412_v24 = vld [vmem:[#allocation5 + $0x48] sm:$0xff]  ;;  %v413_v27 = vld [vmem:[#allocation5 + $0x50] sm:$0xff]  ;;  %v414_v30 = vld [vmem:[#allocation5 + $0x58] sm:$0xff]  ;;  %p3617_p3 = pnand %p3616_p10, %p3898_p5  ;;  %s3621_s24 = scalar_lea.vmem %s3620_s14, 8192 }
  0x98   : > { %v3111_v29 = vpack.c.bf16 %v412_v24, %v411_v23  ;;  %v4005_v31 = vld [vmem:[%s3955_s3 + $0x38] sm:$0xff]  ;;  %v4008_v32 = vld [vmem:[%s3955_s3 + $0x40] sm:$0xff]  ;;  %v4014_v34 = vld [vmem:[%s3955_s3 + $0x48] sm:$0xff]  ;;  %v3114_v38 = vpack.c.bf16 %v414_v30, %v413_v27  ;;  %p3622_p12 = scmp.lt.s32.totalorder %s5108_s20, %s3620_s14  ;;  %p3623_p1 = scmp.lt.s32.totalorder %s3621_s24, %s3615_s13 }
  0x99   : > { %3103 = vmatpush3.bf16.msra.mxu0 %v3102_v7  ;;  %3127 = vmatpush3.bf16.msra.mxu1 %v3102_v7  ;;  %v421_v20 = vadd.f32 %v420_v18, %v3985_v15  ;;  %v415_v35 = vld [vmem:[#allocation5 + $0x60] sm:$0xff]  ;;  %v416_v36 = vld [vmem:[#allocation5 + $0x68] sm:$0xff]  ;;  %v4018_v39 = vld [vmem:[%s3955_s3 + $0x50] sm:$0xff]  ;;  %p3618_p7 = pneg %p3617_p3 }
  0x9a   : > { %3104 = vmatprep.subr.bf16.mxu0 %v3701_v0  ;;  %3128 = vmatprep.subr.bf16.mxu1 %v3701_v0  ;;  %v4024_v41 = vld [vmem:[%s3955_s3 + $0x58] sm:$0xff]  ;;  %v417_v42 = vld [vmem:[#allocation5 + $0x70] sm:$0xff]  ;;  %v3117_v45 = vpack.c.bf16 %v416_v36, %v415_v35  ;;  %v4028_v46 = vld [vmem:[%s3955_s3 + $0x60] sm:$0xff]  ;;  %p3624_p2 = por %p3623_p1, %p3622_p12 }
  0x9b   : > { %v422_v25 = vadd.f32 %v421_v20, %v3991_v19  ;;  %v418_v43 = vld [vmem:[#allocation5 + $0x78] sm:$0xff]  ;;  %v4034_v48 = vld [vmem:[%s3955_s3 + $0x68] sm:$0xff]  ;;  %v4038_v51 = vld [vmem:[%s3955_s3 + $0x70] sm:$0xff] }
  0x9c   : > { %v3120_v50 = vpack.c.bf16 %v418_v43, %v417_v42  ;;  %v4044_v53 = vld [vmem:[%s3955_s3 + $0x78] sm:$0xff]  ;;  %v4049_v56 = vld [vmem:[%s3955_s3 + $0x80] sm:$0xff]  ;;  %v4053_v58 = vld [vmem:[%s3955_s3 + $0x88] sm:$0xff]  ;;  %p3625_p4 = pnand %p3624_p2, %p3618_p7 }
  0x9d   : > { %3106 = vmatpush3.bf16.msra.mxu0 %v3105_v14  ;;  %3130 = vmatpush3.bf16.msra.mxu1 %v3105_v14  ;;  %v423_v28 = vadd.f32 %v422_v25, %v3995_v22  ;;  %v4057_v60 = vld [vmem:[%s3955_s3 + $0x90] sm:$0xff]  ;;  %v4061_v62 = vld [vmem:[%s3955_s3 + $0x98] sm:$0xff]  ;;  %v4069_v2 = vld [vmem:[%s3955_s3 + $0xa8] sm:$0xff] }
  0x9e   : > { %3107 = vmatprep.subr.bf16.mxu0 %v3701_v0  ;;  %3131 = vmatprep.subr.bf16.mxu1 %v3701_v0  ;;  %v4073_v4 = vld [vmem:[%s3955_s3 + $0xb0] sm:$0xff]  ;;  %v4077_v6 = vld [vmem:[%s3955_s3 + $0xb8] sm:$0xff]  ;;  %v4081_v8 = vld [vmem:[%s3955_s3 + $0xc0] sm:$0xff] }
  0x9f   : > { %v424_v33 = vadd.f32 %v423_v28, %v4001_v26  ;;  %v4085_v13 = vld [vmem:[%s3955_s3 + $0xc8] sm:$0xff]  ;;  %v4089_v16 = vld [vmem:[%s3955_s3 + $0xd0] sm:$0xff]  ;;  %v4093_v18 = vld [vmem:[%s3955_s3 + $0xd8] sm:$0xff] }
  0xa0   : > { %v4101_v24 = vld [vmem:[%s3955_s3 + $0xe8] sm:$0xff]  ;;  %v4105_v27 = vld [vmem:[%s3955_s3 + $0xf0] sm:$0xff] }
  0xa1   : > { %3109 = vmatpush3.bf16.msra.mxu0 %v3108_v21  ;;  %3133 = vmatpush3.bf16.msra.mxu1 %v3108_v21  ;;  %v425_v37 = vadd.f32 %v424_v33, %v4005_v31  ;;  %v4097_v21 = vld [vmem:[%s3955_s3 + $0xe0] sm:$0xff] }
  0xa2   : > { %3110 = vmatprep.subr.bf16.mxu0 %v3701_v0  ;;  %3134 = vmatprep.subr.bf16.mxu1 %v3701_v0  ;;  %v3235_v43 = vld [vmem:[#allocation7] ss:$12 sps:$4 sm:$0xff]  }
  0xa3   : > { %v426_v40 = vadd.f32 %v425_v37, %v4008_v32 }
  0xa5   : > { %3112 = vmatpush3.bf16.msra.mxu0 %v3111_v29  ;;  %3136 = vmatpush3.bf16.msra.mxu1 %v3111_v29  ;;  %v427_v44 = vadd.f32 %v426_v40, %v4014_v34  ;;  %v4109_v29 = vld [vmem:[%s3955_s3 + $0xf8] sm:$0xff] }
  0xa6   : > { %3113 = vmatprep.subr.bf16.mxu0 %v3701_v0  ;;  %3137 = vmatprep.subr.bf16.mxu1 %v3701_v0 }
  0xa7   : > { %v428_v47 = vadd.f32 %v427_v44, %v4018_v39  ;;  %v3237_v44 = vld [vmem:[#allocation7 + $0x4] ss:$12 sps:$4 sm:$0xff]  }
  0xa9   : > { %3115 = vmatpush3.bf16.msra.mxu0 %v3114_v38  ;;  %3139 = vmatpush3.bf16.msra.mxu1 %v3114_v38  ;;  %v429_v49 = vadd.f32 %v428_v47, %v4024_v41  ;;  %v3241_v47 = vld [vmem:[#allocation7 + $0x1c] ss:$12 sps:$4 sm:$0xff]  }
  0xaa   : > { %3116 = vmatprep.subr.bf16.mxu0 %v3701_v0  ;;  %3140 = vmatprep.subr.bf16.mxu1 %v3701_v0 }
  0xab   : > { %v430_v52 = vadd.f32 %v429_v49, %v4028_v46  ;;  %v3239_v49 = vld [vmem:[#allocation7 + $0x18] ss:$12 sps:$4 sm:$0xff]  }
  0xad   : > { %3118 = vmatpush3.bf16.msra.mxu0 %v3117_v45  ;;  %3142 = vmatpush3.bf16.msra.mxu1 %v3117_v45  ;;  %v431_v54 = vadd.f32 %v430_v52, %v4034_v48  ;;  %v4113_v45 = vld [vmem:[#allocation7 + $0x8] ss:$12 sps:$4 sm:$0xff]  }
  0xae   : > { %3119 = vmatprep.subr.bf16.mxu0 %v3701_v0  ;;  %3143 = vmatprep.subr.bf16.mxu1 %v3701_v0  ;;  %v4065_v0 = vld [vmem:[%s3955_s3 + $0xa0] sm:$0xff] }
  0xaf   : > { %v432_v55 = vadd.f32 %v431_v54, %v4038_v51 }
  0xb1   : > { %3121 = vmatpush3.bf16.msra.mxu0 %v3120_v50  ;;  %3145 = vmatpush3.bf16.msra.mxu1 %v3120_v50  ;;  %v433_v57 = vadd.f32 %v432_v55, %v4044_v53  ;;  %v526_v50 = vlaneseq }
  0xb2   : > { %970 = vmatprep.subr.bf16.mxu0 %v3237_v44  ;;  %3002 = vmatprep.subr.bf16.mxu1 %v4113_v45 }
  0xb3   : > { %v434_v59 = vadd.f32 %v433_v57, %v4049_v56  ;;  %v4116_v52 = vshrl.u32 %v526_v50, 7 }
  0xb5   : > { %v435_v61 = vadd.f32 %v434_v59, %v4053_v58  ;;  %v4119_v57 = vsub.s32 0, %v4116_v52 }
  0xb7   : > { %v436_v63 = vadd.f32 %v435_v61, %v4057_v60 }
  0xb9   : > { %v437_v1 = vadd.f32 %v436_v63, %v4061_v62 }
  0xbb   : > { %v438_v3 = vadd.f32 %v437_v1, %v4065_v0 }
  0xbd   : > { %v439_v5 = vadd.f32 %v438_v3, %v4069_v2 }
  0xbf   : > { %v440_v7 = vadd.f32 %v439_v5, %v4073_v4 }
  0xc1   : > { %v441_v9 = vadd.f32 %v440_v7, %v4077_v6 }
  0xc3   : > { %v442_v14 = vadd.f32 %v441_v9, %v4081_v8 }
  0xc5   : > { %v443_v17 = vadd.f32 %v442_v14, %v4085_v13 }
  0xc7   : > { %v444_v20 = vadd.f32 %v443_v17, %v4089_v16 }
  0xc9   : > { %v445_v23 = vadd.f32 %v444_v20, %v4093_v18 }
  0xcb   : > { %v446_v25 = vadd.f32 %v445_v23, %v4097_v21 }
  0xcd   : > { %v447_v28 = vadd.f32 %v446_v25, %v4101_v24 }
  0xcf   : > { %v448_v30 = vadd.f32 %v447_v28, %v4105_v27 }
  0xd1   : > { %v449_v33 = vadd.f32 %v448_v30, %v4109_v29 }
  0xd3   : > { %v450_v35 = vrot.slane %v449_v33, 4 }
  0xd5   : > { %v451_v36 = vadd.f32 %v450_v35, %v449_v33 }
  0xd7   : > { %v452_v37 = vrot.slane %v451_v36, 2 }
  0xd9   : > { %v453_v38 = vadd.f32 %v452_v37, %v451_v36 }
  0xdb   : > { %v454_v40 = vrot.slane %v453_v38, 1 }
  0xdd   : > { %v455_v42 = vadd.f32 %v454_v40, %v453_v38 }
  0xdf   : > { %2965 = vmatmul.mubr.f32.vlgmr.msra.gmra.mrb[0].mxu0 %v455_v42 }
  0xe0   : > { %971 = vmatpush1.bf16.msra.mxu0 %v3235_v43 }
  0xe1   : > { %972 = vmatprep.subr.bf16.mxu0 %v3241_v47 }
  0xe4   : > { %973 = vmatpush1.bf16.msra.mxu0 %v3239_v49 }
 0x1b2   : > { %v522_v54 = vpop.f32.mrb[0].mxu0 }
 0x1b3   : > { %v2966_v55 = vpop.f32.mrb[1].mxu0  ;;  %v4122_v59 = vrot.slane %v522_v54, %v4119_v57 }
 0x1b5   : > { %v4126_v61 = vsub.f32 %v3974_v10, %v4122_v59  ;;  %v4130_v63 = vsub.f32 %v3977_v11, %v4122_v59  ;;  %v4134_v1 = vsub.f32 %v3980_v12, %v4122_v59  ;;  %v4142_v7 = vsub.f32 %v3985_v15, %v4122_v59 }
 0x1b6   : > { %v4146_v10 = vsub.f32 %v3991_v19, %v4122_v59  ;;  %v4152_v12 = vsub.f32 %v3995_v22, %v4122_v59  ;;  %v4158_v15 = vsub.f32 %v4001_v26, %v4122_v59  ;;  %v4164_v23 = vsub.f32 %v4005_v31, %v4122_v59 }
 0x1b7   : > { %v562_v3 = vmul.f32 %v4126_v61, %v4126_v61  ;;  %v563_v5 = vmul.f32 %v4130_v63, %v4130_v63  ;;  %v564_v11 = vmul.f32 %v4134_v1, %v4134_v1  ;;  %v565_v14 = vmul.f32 %v4142_v7, %v4142_v7 }
 0x1b8   : > { %v566_v19 = vmul.f32 %v4146_v10, %v4146_v10  ;;  %v567_v22 = vmul.f32 %v4152_v12, %v4152_v12  ;;  %v4170_v28 = vsub.f32 %v4008_v32, %v4122_v59  ;;  %v568_v26 = vmul.f32 %v4158_v15, %v4158_v15 }
 0x1b9   : > { %v594_v9 = vadd.f32 %v563_v5, %v562_v3  ;;  %v4176_v33 = vsub.f32 %v4014_v34, %v4122_v59  ;;  %v569_v31 = vmul.f32 %v4164_v23, %v4164_v23  ;;  %v4182_v36 = vsub.f32 %v4018_v39, %v4122_v59 }
 0x1ba   : > { %v570_v32 = vmul.f32 %v4170_v28, %v4170_v28  ;;  %v4188_v38 = vsub.f32 %v4024_v41, %v4122_v59  ;;  %v4194_v42 = vsub.f32 %v4028_v46, %v4122_v59  ;;  %v4200_v44 = vsub.f32 %v4034_v48, %v4122_v59 }
 0x1bb   : > { %v595_v17 = vadd.f32 %v594_v9, %v564_v11  ;;  %v571_v34 = vmul.f32 %v4176_v33, %v4176_v33  ;;  %v572_v39 = vmul.f32 %v4182_v36, %v4182_v36  ;;  %v4206_v49 = vsub.f32 %v4038_v51, %v4122_v59 }
 0x1bc   : > { %v573_v41 = vmul.f32 %v4188_v38, %v4188_v38  ;;  %v574_v46 = vmul.f32 %v4194_v42, %v4194_v42  ;;  %v4212_v54 = vsub.f32 %v4044_v53, %v4122_v59  ;;  %v575_v48 = vmul.f32 %v4200_v44, %v4200_v44 }
 0x1bd   : > { %v596_v20 = vadd.f32 %v595_v17, %v565_v14  ;;  %v4218_v3 = vsub.f32 %v4049_v56, %v4122_v59  ;;  %v576_v51 = vmul.f32 %v4206_v49, %v4206_v49  ;;  %v4224_v11 = vsub.f32 %v4053_v58, %v4122_v59 }
 0x1be   : > { %v577_v53 = vmul.f32 %v4212_v54, %v4212_v54  ;;  %v4230_v14 = vsub.f32 %v4057_v60, %v4122_v59 }
 0x1bf   : > { %v597_v25 = vadd.f32 %v596_v20, %v566_v19  ;;  %v578_v56 = vmul.f32 %v4218_v3, %v4218_v3  ;;  %v4236_v19 = vsub.f32 %v4061_v62, %v4122_v59  ;;  %v579_v58 = vmul.f32 %v4224_v11, %v4224_v11 }
 0x1c0   : > { %v580_v60 = vmul.f32 %v4230_v14, %v4230_v14 }
 0x1c1   : > { %v598_v30 = vadd.f32 %v597_v25, %v567_v22  ;;  %v4242_v22 = vsub.f32 %v4065_v0, %v4122_v59  ;;  %v581_v62 = vmul.f32 %v4236_v19, %v4236_v19 }
 0x1c3   : > { %v599_v35 = vadd.f32 %v598_v30, %v568_v26  ;;  %v4248_v26 = vsub.f32 %v4069_v2, %v4122_v59  ;;  %v582_v0 = vmul.f32 %v4242_v22, %v4242_v22 }
 0x1c5   : > { %v600_v37 = vadd.f32 %v599_v35, %v569_v31  ;;  %v4254_v31 = vsub.f32 %v4073_v4, %v4122_v59  ;;  %v583_v2 = vmul.f32 %v4248_v26, %v4248_v26 }
 0x1c7   : > { %v601_v40 = vadd.f32 %v600_v37, %v570_v32  ;;  %v4260_v32 = vsub.f32 %v4077_v6, %v4122_v59  ;;  %v584_v4 = vmul.f32 %v4254_v31, %v4254_v31 }
 0x1c9   : > { %v602_v43 = vadd.f32 %v601_v40, %v571_v34  ;;  %v4266_v34 = vsub.f32 %v4081_v8, %v4122_v59  ;;  %v585_v6 = vmul.f32 %v4260_v32, %v4260_v32 }
 0x1cb   : > { %v603_v47 = vadd.f32 %v602_v43, %v572_v39  ;;  %v4272_v39 = vsub.f32 %v4085_v13, %v4122_v59  ;;  %v586_v8 = vmul.f32 %v4266_v34, %v4266_v34 }
 0x1cd   : > { %v604_v50 = vadd.f32 %v603_v47, %v573_v41  ;;  %v4278_v41 = vsub.f32 %v4089_v16, %v4122_v59  ;;  %v587_v13 = vmul.f32 %v4272_v39, %v4272_v39 }
 0x1cf   : > { %v605_v55 = vadd.f32 %v604_v50, %v574_v46  ;;  %v4284_v46 = vsub.f32 %v4093_v18, %v4122_v59  ;;  %v588_v16 = vmul.f32 %v4278_v41, %v4278_v41 }
 0x1d1   : > { %v606_v5 = vadd.f32 %v605_v55, %v575_v48  ;;  %v4290_v48 = vsub.f32 %v4097_v21, %v4122_v59  ;;  %v589_v18 = vmul.f32 %v4284_v46, %v4284_v46 }
 0x1d3   : > { %v607_v9 = vadd.f32 %v606_v5, %v576_v51  ;;  %v4296_v51 = vsub.f32 %v4101_v24, %v4122_v59  ;;  %v590_v21 = vmul.f32 %v4290_v48, %v4290_v48 }
 0x1d5   : > { %v608_v17 = vadd.f32 %v607_v9, %v577_v53  ;;  %v4302_v53 = vsub.f32 %v4105_v27, %v4122_v59  ;;  %v591_v24 = vmul.f32 %v4296_v51, %v4296_v51 }
 0x1d7   : > { %v609_v20 = vadd.f32 %v608_v17, %v578_v56  ;;  %v4308_v56 = vsub.f32 %v4109_v29, %v4122_v59  ;;  %v3242_v59 = vld [vmem:[#allocation7 + $0x20] ss:$12 sps:$4 sm:$0xff]  }
 0x1d9   : > { %v610_v25 = vadd.f32 %v609_v20, %v579_v58  ;;  %v592_v58 = vmul.f32 %v4302_v53, %v4302_v53  ;;  %v593_v27 = vmul.f32 %v4308_v56, %v4308_v56 }
 0x1db   : > { %v611_v30 = vadd.f32 %v610_v25, %v580_v60 }
 0x1dd   : > { %v612_v35 = vadd.f32 %v611_v30, %v581_v62 }
 0x1df   : > { %v613_v37 = vadd.f32 %v612_v35, %v582_v0 }
 0x1e1   : > { %v614_v40 = vadd.f32 %v613_v37, %v583_v2  ;;  %v3245_v37 = vld [vmem:[#allocation7 + $0x34] ss:$12 sps:$4 sm:$0xff]  }
 0x1e2   : > { %974 = vmatprep.subr.bf16.mxu0 %v3245_v37 }
 0x1e3   : > { %v615_v43 = vadd.f32 %v614_v40, %v584_v4  ;;  %v3243_v4 = vld [vmem:[#allocation7 + $0x30] ss:$12 sps:$4 sm:$0xff]   ;;  %v3246_v40 = vld [vmem:[#allocation7 + $0x38] ss:$12 sps:$4 sm:$0xff]  }
 0x1e4   : > { %975 = vmatpush1.bf16.msra.mxu0 %v3243_v4 }
 0x1e5   : > { %v616_v47 = vadd.f32 %v615_v43, %v585_v6  ;;  %v3249_v6 = vld [vmem:[#allocation7 + $0x4c] ss:$12 sps:$4 sm:$0xff]   ;;  %v3247_v43 = vld [vmem:[#allocation7 + $0x48] ss:$12 sps:$4 sm:$0xff]  }
 0x1e6   : > { %976 = vmatprep.subr.bf16.mxu0 %v3249_v6 }
 0x1e7   : > { %v617_v50 = vadd.f32 %v616_v47, %v586_v8  ;;  %v3250_v8 = vld [vmem:[#allocation7 + $0x50] ss:$12 sps:$4 sm:$0xff]  }
 0x1e8   : > { %977 = vmatpush1.bf16.msra.mxu0 %v3247_v43  ;;  %v3253_v47 = vld [vmem:[#allocation7 + $0x64] ss:$12 sps:$4 sm:$0xff]  }
 0x1e9   : > { %v618_v55 = vadd.f32 %v617_v50, %v587_v13  ;;  %v3251_v13 = vld [vmem:[#allocation7 + $0x60] ss:$12 sps:$4 sm:$0xff]   ;;  %v3254_v50 = vld [vmem:[#allocation7 + $0x68] ss:$12 sps:$4 sm:$0xff]   ;;  %978 = vmatprep.subr.bf16.mxu0 %v3253_v47 }
 0x1eb   : > { %v619_v5 = vadd.f32 %v618_v55, %v588_v16  ;;  %v3255_v16 = vld [vmem:[#allocation7 + $0x78] ss:$12 sps:$4 sm:$0xff]   ;;  %v3258_v55 = vld [vmem:[#allocation7 + $0x80] ss:$12 sps:$4 sm:$0xff]  }
 0x1ec   : > { %979 = vmatpush1.bf16.msra.mxu0 %v3251_v13 }
 0x1ed   : > { %v620_v9 = vadd.f32 %v619_v5, %v589_v18  ;;  %v3261_v18 = vld [vmem:[#allocation7 + $0x94] ss:$12 sps:$4 sm:$0xff]   ;;  %v3259_v5 = vld [vmem:[#allocation7 + $0x90] ss:$12 sps:$4 sm:$0xff]  }
 0x1ef   : > { %v621_v17 = vadd.f32 %v620_v9, %v590_v21  ;;  %v3262_v21 = vld [vmem:[#allocation7 + $0x98] ss:$12 sps:$4 sm:$0xff]  }
 0x1f0   : > { %v3265_v9 = vld [vmem:[#allocation7 + $0xac] ss:$12 sps:$4 sm:$0xff]  }
 0x1f1   : > { %v622_v20 = vadd.f32 %v621_v17, %v591_v24  ;;  %v3266_v24 = vld [vmem:[#allocation7 + $0xb0] ss:$12 sps:$4 sm:$0xff]   ;;  %v3263_v17 = vld [vmem:[#allocation7 + $0xa8] ss:$12 sps:$4 sm:$0xff]  }
 0x1f3   : > { %v623_v60 = vadd.f32 %v622_v20, %v592_v58  ;;  %v3704_v58 = vmov 0  }
 0x1f4   : > { %1002 = vmatprep.mubr.bf16.mxu0 %v3704_v58 }
 0x1f5   : > { %v624_v25 = vadd.f32 %v623_v60, %v593_v27 }
 0x1f7   : > { %v625_v62 = vrot.slane %v624_v25, 4 }
 0x1f9   : > { %v626_v30 = vadd.f32 %v625_v62, %v624_v25  ;;  %v401_v25 = vld [vmem:[%s5157_s1] sm:$0x1] }
 0x1fb   : > { %v627_v0 = vrot.slane %v626_v30, 2 }
 0x1fd   : > { %v628_v35 = vadd.f32 %v627_v0, %v626_v30 }
 0x1ff   : > { %v629_v2 = vrot.slane %v628_v35, 1 }
 0x201   : > { %v630_v29 = vadd.f32 %v629_v2, %v628_v35  ;;  %v4327_v35 = vld [vmem:[%s5158_s2] ss:$0 sm:$0xff] }
 0x203   : > { %3000 = vmatmul.mubr.f32.vlgmr.msra.gmra.mrb[0].mxu1 %v630_v29 }
 0x204   : > { %3003 = vmatpush3.bf16.msra.mxu1 %v4113_v45  ;;  %v3257_v45 = vld [vmem:[#allocation7 + $0x7c] ss:$12 sps:$4 sm:$0xff]  }
 0x205   : > { %3004 = vmatprep.subr.bf16.mxu1 %v3242_v59  ;;  %980 = vmatprep.subr.bf16.mxu0 %v3257_v45 }
 0x206   : > { %981 = vmatpush1.bf16.msra.mxu0 %v3255_v16 }
 0x207   : > { %982 = vmatprep.subr.bf16.mxu0 %v3261_v18 }
 0x208   : > { %3005 = vmatpush3.bf16.msra.mxu1 %v3242_v59 }
 0x209   : > { %3006 = vmatprep.subr.bf16.mxu1 %v3246_v40 }
 0x20a   : > { %983 = vmatpush1.bf16.msra.mxu0 %v3259_v5 }
 0x20b   : > { %984 = vmatprep.subr.bf16.mxu0 %v3265_v9 }
 0x20c   : > { %3007 = vmatpush3.bf16.msra.mxu1 %v3246_v40 }
 0x20d   : > { %3008 = vmatprep.subr.bf16.mxu1 %v3250_v8 }
 0x20e   : > { %985 = vmatpush1.bf16.msra.mxu0 %v3263_v17 }
 0x210   : > { %3009 = vmatpush3.bf16.msra.mxu1 %v3250_v8 }
 0x211   : > { %3010 = vmatprep.subr.bf16.mxu1 %v3254_v50 }
 0x214   : > { %3011 = vmatpush3.bf16.msra.mxu1 %v3254_v50 }
 0x215   : > { %3012 = vmatprep.subr.bf16.mxu1 %v3258_v55 }
 0x218   : > { %3013 = vmatpush3.bf16.msra.mxu1 %v3258_v55 }
 0x219   : > { %3014 = vmatprep.subr.bf16.mxu1 %v3262_v21 }
 0x21c   : > { %3015 = vmatpush3.bf16.msra.mxu1 %v3262_v21 }
 0x21d   : > { %3016 = vmatprep.subr.bf16.mxu1 %v3266_v24 }
 0x220   : > { %3017 = vmatpush3.bf16.msra.mxu1 %v3266_v24 }
 0x2d6   : > { %v697_v20 = vpop.f32.mrb[0].mxu1 }
 0x2d7   : > { %v698_v27 = vadd.f32 1e-05, %v697_v20  ;;  %v3001_v60 = vpop.f32.mrb[1].mxu1 }
 0x2d9   : > { %3275 = vrsqrt.f32 %v698_v27 }
 0x2e3   : > { %v3276_v62 = vpop.eup %3275 }
 0x2e4   : > { %v702_v30 = vmul.f32 %v3276_v62, %v401_v25 }
 0x2e6   : > { %v4322_v0 = vrot.slane %v702_v30, %v4119_v57 }
 0x2e8   : > { %v707_v2 = vmul.f32 %v4322_v0, %v4126_v61  ;;  %v708_v29 = vmul.f32 %v4322_v0, %v4130_v63  ;;  %v709_v59 = vmul.f32 %v4322_v0, %v4134_v1  ;;  %v710_v37 = vmul.f32 %v4322_v0, %v4142_v7 }
 0x2e9   : > { %v711_v4 = vmul.f32 %v4322_v0, %v4146_v10  ;;  %v712_v40 = vmul.f32 %v4322_v0, %v4152_v12  ;;  %v713_v10 = vmul.f32 %v4322_v0, %v4158_v15  ;;  %v714_v12 = vmul.f32 %v4322_v0, %v4164_v23 }
 0x2ea   : > { %v745_v6 = vadd.f32 %v4327_v35, %v707_v2  ;;  %v746_v43 = vadd.f32 %v4327_v35, %v708_v29  ;;  %v747_v61 = vadd.f32 %v4327_v35, %v709_v59  ;;  %v748_v63 = vadd.f32 %v4327_v35, %v710_v37 }
 0x2eb   : > { %v749_v8 = vadd.f32 %v4327_v35, %v711_v4  ;;  %v750_v1 = vadd.f32 %v4327_v35, %v712_v40  ;;  %v715_v50 = vmul.f32 %v4322_v0, %v4170_v28  ;;  %v716_v45 = vmul.f32 %v4322_v0, %v4176_v33 }
 0x2ec   : > { %v777_v47 = vpack.c.bf16 %v746_v43, %v745_v6  ;;  %v778_v7 = vpack.c.bf16 %v748_v63, %v747_v61  ;;  %v751_v16 = vadd.f32 %v4327_v35, %v713_v10  ;;  %v752_v15 = vadd.f32 %v4327_v35, %v714_v12 }
 0x2ed   : > { %v779_v13 = vpack.c.bf16 %v750_v1, %v749_v8  ;;  %v753_v55 = vadd.f32 %v4327_v35, %v715_v50  ;;  %v754_v23 = vadd.f32 %v4327_v35, %v716_v45  ;;  %v717_v5 = vmul.f32 %v4322_v0, %v4182_v36 }
 0x2ee   : > { %1003 = vmatmul.mubr.bf16.vlgmr.msra.gmra.mrb[4].mxu0 %v777_v47  ;;  %3018 = vmatprep.mubr.bf16.mxu1 %v777_v47  ;;  %v780_v18 = vpack.c.bf16 %v752_v15, %v751_v16  ;;  %v718_v28 = vmul.f32 %v4322_v0, %v4188_v38  ;;  %v719_v21 = vmul.f32 %v4322_v0, %v4194_v42 }
 0x2ef   : > { %3019 = vmatmul.mubr.bf16.vlgmr.msra.gmra.mrb[4].mxu1 %v778_v7  ;;  %1012 = vmatprep.mubr.bf16.mxu0 %v3704_v58  ;;  %v781_v33 = vpack.c.bf16 %v754_v23, %v753_v55  ;;  %v720_v9 = vmul.f32 %v4322_v0, %v4200_v44  ;;  %v755_v24 = vadd.f32 %v4327_v35, %v717_v5 }
 0x2f0   : > { %3022 = vmatprep.mubr.bf16.mxu1 %v779_v13  ;;  %v756_v17 = vadd.f32 %v4327_v35, %v718_v28  ;;  %v757_v36 = vadd.f32 %v4327_v35, %v719_v21  ;;  %v721_v27 = vmul.f32 %v4322_v0, %v4206_v49  ;;  %v722_v42 = vmul.f32 %v4322_v0, %v4212_v54 }
 0x2f1   : > { %v758_v38 = vadd.f32 %v4327_v35, %v720_v9  ;;  %v723_v60 = vmul.f32 %v4322_v0, %v4218_v3  ;;  %v724_v25 = vmul.f32 %v4322_v0, %v4224_v11  ;;  %v725_v29 = vmul.f32 %v4322_v0, %v4230_v14 }
 0x2f2   : > { %v782_v20 = vpack.c.bf16 %v756_v17, %v755_v24  ;;  %v759_v62 = vadd.f32 %v4327_v35, %v721_v27  ;;  %v760_v30 = vadd.f32 %v4327_v35, %v722_v42  ;;  %v726_v3 = vmul.f32 %v4322_v0, %v4236_v19 }
 0x2f3   : > { %v783_v44 = vpack.c.bf16 %v758_v38, %v757_v36  ;;  %v761_v49 = vadd.f32 %v4327_v35, %v723_v60  ;;  %v762_v54 = vadd.f32 %v4327_v35, %v724_v25  ;;  %v727_v59 = vmul.f32 %v4322_v0, %v4242_v22 }
 0x2f4   : > { %v784_v2 = vpack.c.bf16 %v760_v30, %v759_v62  ;;  %v728_v37 = vmul.f32 %v4322_v0, %v4248_v26  ;;  %v763_v4 = vadd.f32 %v4327_v35, %v725_v29  ;;  %v764_v40 = vadd.f32 %v4327_v35, %v726_v3 }
 0x2f5   : > { %v785_v11 = vpack.c.bf16 %v762_v54, %v761_v49  ;;  %v765_v14 = vadd.f32 %v4327_v35, %v727_v59  ;;  %v729_v43 = vmul.f32 %v4322_v0, %v4254_v31  ;;  %v730_v22 = vmul.f32 %v4322_v0, %v4260_v32 }
 0x2f6   : > { %1013 = vmatmul.mubr.bf16.gmra.mrb[8].mxu0 %v778_v7  ;;  %v766_v19 = vadd.f32 %v4327_v35, %v728_v37  ;;  %v786_v6 = vpack.c.bf16 %v764_v40, %v763_v4  ;;  %v731_v61 = vmul.f32 %v4322_v0, %v4266_v34  ;;  %v732_v63 = vmul.f32 %v4322_v0, %v4272_v39 }
 0x2f7   : > { %3023 = vmatmul.mubr.bf16.gmra.mrb[8].mxu1 %v780_v18  ;;  %1022 = vmatprep.mubr.bf16.mxu0 %v3704_v58  ;;  %v767_v8 = vadd.f32 %v4327_v35, %v729_v43  ;;  %v768_v1 = vadd.f32 %v4327_v35, %v730_v22  ;;  %v733_v7 = vmul.f32 %v4322_v0, %v4278_v41 }
 0x2f8   : > { %3026 = vmatprep.mubr.bf16.mxu1 %v781_v33  ;;  %v787_v26 = vpack.c.bf16 %v766_v19, %v765_v14  ;;  %v769_v31 = vadd.f32 %v4327_v35, %v731_v61  ;;  %v770_v32 = vadd.f32 %v4327_v35, %v732_v63  ;;  %v734_v34 = vmul.f32 %v4322_v0, %v4284_v46 }
 0x2f9   : > { %v788_v47 = vpack.c.bf16 %v768_v1, %v767_v8  ;;  %v735_v10 = vmul.f32 %v4322_v0, %v4290_v48  ;;  %v736_v12 = vmul.f32 %v4322_v0, %v4296_v51  ;;  %v737_v16 = vmul.f32 %v4322_v0, %v4302_v53  ;;  %v825_v53 = vld [vmem:[%s5161_s5] sm:$0x7] }
 0x2fa   : > { %v789_v39 = vpack.c.bf16 %v770_v32, %v769_v31  ;;  %v772_v50 = vadd.f32 %v4327_v35, %v734_v34  ;;  %v738_v48 = vmul.f32 %v4322_v0, %v4308_v56  ;;  %v833_v56 = vsub.s32 1, %v4116_v52 }
 0x2fb   : > { %v773_v41 = vadd.f32 %v4327_v35, %v735_v10  ;;  %v774_v46 = vadd.f32 %v4327_v35, %v736_v12  ;;  %v775_v15 = vadd.f32 %v4327_v35, %v737_v16  ;;  %v837_v0 = vsub.s32 2, %v4116_v52 }
 0x2fc   : > { %v776_v55 = vadd.f32 %v4327_v35, %v738_v48  ;;  %v4448_v5 = vrot.slane %v825_v53, %v833_v56 }
 0x2fd   : > { %v791_v51 = vpack.c.bf16 %v774_v46, %v773_v41  ;;  %v4450_v28 = vrot.slane %v825_v53, %v837_v0 }
 0x2fe   : > { %1023 = vmatmul.mubr.bf16.gmra.mrb[12].mxu0 %v779_v13  ;;  %v771_v13 = vadd.f32 %v4327_v35, %v733_v7  ;;  %v792_v23 = vpack.c.bf16 %v776_v55, %v775_v15  ;;  %v4446_v35 = vrot.slane %v825_v53, %v4119_v57 }
 0x2ff   : > { %3027 = vmatmul.mubr.bf16.gmra.mrb[12].mxu1 %v782_v20  ;;  %1032 = vmatprep.mubr.bf16.mxu0 %v3704_v58 }
 0x300   : > { %3030 = vmatprep.mubr.bf16.mxu1 %v783_v44  ;;  %v790_v45 = vpack.c.bf16 %v772_v50, %v771_v13 }
 0x306   : > { %1033 = vmatmul.mubr.bf16.gmra.mrb[16].mxu0 %v780_v18 }
 0x307   : > { %3031 = vmatmul.mubr.bf16.gmra.mrb[16].mxu1 %v784_v2  ;;  %1042 = vmatprep.mubr.bf16.mxu0 %v3704_v58 }
 0x308   : > { %3034 = vmatprep.mubr.bf16.mxu1 %v785_v11 }
 0x30e   : > { %1043 = vmatmul.mubr.bf16.gmra.mrb[20].mxu0 %v781_v33 }
 0x30f   : > { %3035 = vmatmul.mubr.bf16.gmra.mrb[20].mxu1 %v786_v6  ;;  %1052 = vmatprep.mubr.bf16.mxu0 %v3704_v58 }
 0x310   : > { %3038 = vmatprep.mubr.bf16.mxu1 %v787_v26 }
 0x316   : > { %1053 = vmatmul.mubr.bf16.gmra.mrb[24].mxu0 %v782_v20 }
 0x317   : > { %3039 = vmatmul.mubr.bf16.gmra.mrb[24].mxu1 %v788_v47  ;;  %1062 = vmatprep.mubr.bf16.mxu0 %v3704_v58 }
 0x318   : > { %3042 = vmatprep.mubr.bf16.mxu1 %v789_v39 }
 0x31e   : > { %1063 = vmatmul.mubr.bf16.gmra.mrb[28].mxu0 %v783_v44 }
 0x31f   : > { %3043 = vmatmul.mubr.bf16.gmra.mrb[28].mxu1 %v790_v45  ;;  %1072 = vmatprep.mubr.bf16.mxu0 %v3704_v58 }
 0x320   : > { %3046 = vmatprep.mubr.bf16.mxu1 %v791_v51 }
 0x326   : > { %1073 = vmatmul.mubr.bf16.gmra.mrb[32].mxu0 %v784_v2 }
 0x327   : > { %3047 = vmatmul.mubr.bf16.gmra.mrb[32].mxu1 %v792_v23  ;;  %1082 = vmatprep.mubr.bf16.mxu0 %v3704_v58 }
 0x32e   : > { %1083 = vmatmul.mubr.bf16.gmra.mrb[36].mxu0 %v785_v11 }
 0x32f   : > { %1092 = vmatprep.mubr.bf16.mxu0 %v3704_v58 }
 0x336   : > { %1093 = vmatmul.mubr.bf16.gmra.mrb[40].mxu0 %v786_v6 }
 0x337   : > { %1102 = vmatprep.mubr.bf16.mxu0 %v3704_v58 }
 0x33e   : > { %1103 = vmatmul.mubr.bf16.gmra.mrb[44].mxu0 %v787_v26 }
 0x33f   : > { %1112 = vmatprep.mubr.bf16.mxu0 %v3704_v58 }
 0x346   : > { %1113 = vmatmul.mubr.bf16.gmra.mrb[48].mxu0 %v788_v47 }
 0x347   : > { %1122 = vmatprep.mubr.bf16.mxu0 %v3704_v58 }
 0x34e   : > { %1123 = vmatmul.mubr.bf16.gmra.mrb[52].mxu0 %v789_v39 }
 0x34f   : > { %1132 = vmatprep.mubr.bf16.mxu0 %v3704_v58 }
 0x356   : > { %1133 = vmatmul.mubr.bf16.gmra.mrb[56].mxu0 %v790_v45 }
 0x357   : > { %1142 = vmatprep.mubr.bf16.mxu0 %v3704_v58 }
 0x35e   : > { %1143 = vmatmul.mubr.bf16.gmra.mrb[60].mxu0 %v791_v51 }
 0x35f   : > { %1152 = vmatprep.mubr.bf16.mxu0 %v3704_v58 }
 0x366   : > { %1153 = vmatmul.mubr.bf16.gmra.mrb[64].mxu0 %v792_v23 }
 0x3c1   : > { %v1004_v18 = vpop.f32.mrb[4].mxu0 }
 0x3c2   : > { %v1006_v33 = vpop.f32.mrb[5].mxu0  ;;  %v3020_v21 = vpop.f32.mrb[4].mxu1  ;;  %v1005_v24 = vadd.f32 %v1004_v18, %v4446_v35 }
 0x3c3   : > { %v1008_v58 = vpop.f32.mrb[6].mxu0  ;;  %v1197_v9 = vpop.f32.mrb[5].mxu1  ;;  %v4455_v52 = vadd.f32 %v1006_v33, %v4448_v5  ;;  %v4458_v57 = vadd.f32 %v3020_v21, %v4450_v28 }
 0x3c4   : > { %v1009_v17 = vadd.f32 %v1008_v58, %v4446_v35  ;;  %v1010_v36 = vpop.f32.mrb[7].mxu0  ;;  %v3021_v38 = vpop.f32.mrb[6].mxu1  ;;  %v4469_v60 = vadd.f32 %v1197_v9, %v4450_v28 }
 0x3c5   : > { %v4461_v20 = vadd.f32 %v1010_v36, %v4448_v5  ;;  %v4464_v27 = vadd.f32 %v3021_v38, %v4450_v28  ;;  %v1200_v42 = vpop.f32.mrb[7].mxu1 }
 0x3c6   : > { %v4466_v44 = vpack.c.bf16 %v1009_v17, %v1005_v24  ;;  %v4472_v25 = vadd.f32 %v1200_v42, %v4450_v28 }
 0x3c7   : > { %v1340_v62 = vpack.c.bf16 %v4461_v20, %v4455_v52  ;;  %v1357_v30 = vpack.c.bf16 %v4464_v27, %v4458_v57 }
 0x3c8   : > { %v1356_v49 = vpack.c.bf16 %v4472_v25, %v4469_v60  ;;  %2764 = vmatprep.mubr.bf16.mxu1 %v4466_v44 }
 0x3c9   : > { %v1014_v54 = vpop.f32.mrb[8].mxu0 }
 0x3ca   : > { %v1016_v2 = vpop.f32.mrb[9].mxu0  ;;  %v3024_v29 = vpop.f32.mrb[8].mxu1  ;;  %v1015_v59 = vadd.f32 %v1014_v54, %v4446_v35 }
 0x3cb   : > { %v1018_v3 = vpop.f32.mrb[10].mxu0  ;;  %v1213_v11 = vpop.f32.mrb[9].mxu1  ;;  %v4484_v14 = vadd.f32 %v1016_v2, %v4448_v5  ;;  %v4487_v19 = vadd.f32 %v3024_v29, %v4450_v28 }
 0x3cc   : > { %v1019_v37 = vadd.f32 %v1018_v3, %v4446_v35  ;;  %v1020_v4 = vpop.f32.mrb[11].mxu0  ;;  %v3025_v40 = vpop.f32.mrb[10].mxu1  ;;  %v4498_v61 = vadd.f32 %v1213_v11, %v4450_v28 }
 0x3cd   : > { %v4490_v6 = vadd.f32 %v1020_v4, %v4448_v5  ;;  %v4493_v43 = vadd.f32 %v3025_v40, %v4450_v28  ;;  %v1216_v22 = vpop.f32.mrb[11].mxu1 }
 0x3ce   : > { %v4495_v26 = vpack.c.bf16 %v1019_v37, %v1015_v59  ;;  %v4501_v63 = vadd.f32 %v1216_v22, %v4450_v28 }
 0x3cf   : > { %v1341_v8 = vpack.c.bf16 %v4490_v6, %v4484_v14  ;;  %v1359_v1 = vpack.c.bf16 %v4493_v43, %v4487_v19 }
 0x3d0   : > { %v1358_v31 = vpack.c.bf16 %v4501_v63, %v4498_v61 }
 0x3d1   : > { %v1024_v32 = vpop.f32.mrb[12].mxu0 }
 0x3d2   : > { %v1026_v47 = vpop.f32.mrb[13].mxu0  ;;  %v3028_v7 = vpop.f32.mrb[12].mxu1  ;;  %v1025_v10 = vadd.f32 %v1024_v32, %v4446_v35 }
 0x3d3   : > { %v1028_v34 = vpop.f32.mrb[14].mxu0  ;;  %v1229_v39 = vpop.f32.mrb[13].mxu1  ;;  %v4512_v41 = vadd.f32 %v1026_v47, %v4448_v5  ;;  %v4515_v46 = vadd.f32 %v3028_v7, %v4450_v28 }
 0x3d4   : > { %v1029_v12 = vadd.f32 %v1028_v34, %v4446_v35  ;;  %v1030_v13 = vpop.f32.mrb[15].mxu0  ;;  %v3029_v50 = vpop.f32.mrb[14].mxu1  ;;  %v4526_v15 = vadd.f32 %v1229_v39, %v4450_v28 }
 0x3d5   : > { %v4518_v45 = vadd.f32 %v1030_v13, %v4448_v5  ;;  %v4521_v16 = vadd.f32 %v3029_v50, %v4450_v28  ;;  %v1232_v48 = vpop.f32.mrb[15].mxu1 }
 0x3d6   : > { %v4523_v51 = vpack.c.bf16 %v1029_v12, %v1025_v10  ;;  %v4529_v55 = vadd.f32 %v1232_v48, %v4450_v28 }
 0x3d7   : > { %v1342_v23 = vpack.c.bf16 %v4518_v45, %v4512_v41  ;;  %v1361_v53 = vpack.c.bf16 %v4521_v16, %v4515_v46 }
 0x3d8   : > { %v1360_v56 = vpack.c.bf16 %v4529_v55, %v4526_v15 }
 0x3d9   : > { %v1034_v0 = vpop.f32.mrb[16].mxu0 }
 0x3da   : > { %v1036_v18 = vpop.f32.mrb[17].mxu0  ;;  %v3032_v33 = vpop.f32.mrb[16].mxu1  ;;  %v1035_v9 = vadd.f32 %v1034_v0, %v4446_v35 }
 0x3db   : > { %v1038_v21 = vpop.f32.mrb[18].mxu0  ;;  %v1245_v58 = vpop.f32.mrb[17].mxu1  ;;  %v4540_v38 = vadd.f32 %v1036_v18, %v4448_v5  ;;  %v4543_v42 = vadd.f32 %v3032_v33, %v4450_v28 }
 0x3dc   : > { %v1039_v24 = vadd.f32 %v1038_v21, %v4446_v35  ;;  %v1040_v17 = vpop.f32.mrb[19].mxu0  ;;  %v3033_v36 = vpop.f32.mrb[18].mxu1  ;;  %v4554_v11 = vadd.f32 %v1245_v58, %v4450_v28 }
 0x3dd   : > { %v4546_v54 = vadd.f32 %v1040_v17, %v4448_v5  ;;  %v4549_v2 = vadd.f32 %v3033_v36, %v4450_v28  ;;  %v1248_v29 = vpop.f32.mrb[19].mxu1 }
 0x3de   : > { %v4551_v3 = vpack.c.bf16 %v1039_v24, %v1035_v9  ;;  %v4557_v59 = vadd.f32 %v1248_v29, %v4450_v28 }
 0x3df   : > { %v1343_v37 = vpack.c.bf16 %v4546_v54, %v4540_v38  ;;  %v1363_v4 = vpack.c.bf16 %v4549_v2, %v4543_v42 }
 0x3e0   : > { %v1362_v40 = vpack.c.bf16 %v4557_v59, %v4554_v11 }
 0x3e1   : > { %v1044_v22 = vpop.f32.mrb[20].mxu0 }
 0x3e2   : > { %v1046_v32 = vpop.f32.mrb[21].mxu0  ;;  %v3036_v47 = vpop.f32.mrb[20].mxu1  ;;  %v1045_v39 = vadd.f32 %v1044_v22, %v4446_v35 }
 0x3e3   : > { %v1048_v7 = vpop.f32.mrb[22].mxu0  ;;  %v1261_v34 = vpop.f32.mrb[21].mxu1  ;;  %v4568_v50 = vadd.f32 %v1046_v32, %v4448_v5  ;;  %v1270_v48 = vadd.f32 %v3036_v47, %v4450_v28 }
 0x3e4   : > { %v1049_v10 = vadd.f32 %v1048_v7, %v4446_v35  ;;  %v1050_v12 = vpop.f32.mrb[23].mxu0  ;;  %v3037_v13 = vpop.f32.mrb[22].mxu1  ;;  %v1262_v58 = vadd.f32 %v1261_v34, %v4450_v28 }
 0x3e5   : > { %v4572_v0 = vadd.f32 %v1050_v12, %v4448_v5  ;;  %v1273_v18 = vadd.f32 %v3037_v13, %v4450_v28  ;;  %v1264_v33 = vpop.f32.mrb[23].mxu1 }
 0x3e6   : > { %v4575_v21 = vpack.c.bf16 %v1049_v10, %v1045_v39  ;;  %v1265_v9 = vadd.f32 %v1264_v33, %v4450_v28 }
 0x3e7   : > { %v1344_v24 = vpack.c.bf16 %v4572_v0, %v4568_v50  ;;  %v1365_v17 = vpack.c.bf16 %v1273_v18, %v1270_v48 }
 0x3e8   : > { %v1364_v36 = vpack.c.bf16 %v1265_v9, %v1262_v58 }
 0x3e9   : > { %v1054_v29 = vpop.f32.mrb[24].mxu0 }
 0x3ea   : > { %v1056_v22 = vpop.f32.mrb[25].mxu0  ;;  %v3040_v32 = vpop.f32.mrb[24].mxu1  ;;  %2796 = vmatprep.subr.bf16.mxu0 %v1364_v36  ;;  %v1055_v39 = vadd.f32 %v1054_v29, %v4446_v35 }
 0x3eb   : > { %v1058_v47 = vpop.f32.mrb[26].mxu0  ;;  %v1277_v7 = vpop.f32.mrb[25].mxu1  ;;  %2797 = vmatpush3.bf16.msra.mxu0 %v1356_v49  ;;  %v4587_v13 = vadd.f32 %v1056_v22, %v4448_v5  ;;  %v1286_v48 = vadd.f32 %v3040_v32, %v4450_v28 }
 0x3ec   : > { %v1059_v34 = vadd.f32 %v1058_v47, %v4446_v35  ;;  %v1060_v10 = vpop.f32.mrb[27].mxu0  ;;  %v3041_v12 = vpop.f32.mrb[26].mxu1  ;;  %2798 = vmatprep.subr.bf16.mxu0 %v1365_v17  ;;  %v1278_v25 = vadd.f32 %v1277_v7, %v4450_v28 }
 0x3ed   : > { %v4591_v18 = vadd.f32 %v1060_v10, %v4448_v5  ;;  %v1289_v33 = vadd.f32 %v3041_v12, %v4450_v28  ;;  %v1280_v58 = vpop.f32.mrb[27].mxu1 }
 0x3ee   : > { %v4594_v60 = vpack.c.bf16 %v1059_v34, %v1055_v39  ;;  %v1281_v49 = vadd.f32 %v1280_v58, %v4450_v28 }
 0x3ef   : > { %v1345_v9 = vpack.c.bf16 %v4591_v18, %v4587_v13  ;;  %v1367_v17 = vpack.c.bf16 %v1289_v33, %v1286_v48  ;;  %2799 = vmatpush3.bf16.msra.mxu0 %v1357_v30 }
 0x3f0   : > { %v1366_v36 = vpack.c.bf16 %v1281_v49, %v1278_v25 }
 0x3f1   : > { %v1064_v29 = vpop.f32.mrb[28].mxu0 }
 0x3f2   : > { %v1066_v22 = vpop.f32.mrb[29].mxu0  ;;  %v3044_v32 = vpop.f32.mrb[28].mxu1  ;;  %2800 = vmatprep.subr.bf16.mxu0 %v1366_v36  ;;  %v1065_v7 = vadd.f32 %v1064_v29, %v4446_v35 }
 0x3f3   : > { %v1068_v47 = vpop.f32.mrb[30].mxu0  ;;  %v1293_v39 = vpop.f32.mrb[29].mxu1  ;;  %2801 = vmatpush3.bf16.msra.mxu0 %v1358_v31  ;;  %v4609_v57 = vadd.f32 %v1066_v22, %v4448_v5  ;;  %v1302_v27 = vadd.f32 %v3044_v32, %v4450_v28 }
 0x3f4   : > { %v1069_v34 = vadd.f32 %v1068_v47, %v4446_v35  ;;  %v1070_v10 = vpop.f32.mrb[31].mxu0  ;;  %v3045_v12 = vpop.f32.mrb[30].mxu1  ;;  %2802 = vmatprep.subr.bf16.mxu0 %v1367_v17  ;;  %v1294_v63 = vadd.f32 %v1293_v39, %v4450_v28 }
 0x3f5   : > { %v4613_v30 = vadd.f32 %v1070_v10, %v4448_v5  ;;  %v1305_v48 = vadd.f32 %v3045_v12, %v4450_v28  ;;  %v1296_v33 = vpop.f32.mrb[31].mxu1 }
 0x3f6   : > { %v4616_v61 = vpack.c.bf16 %v1069_v34, %v1065_v7  ;;  %v1297_v31 = vadd.f32 %v1296_v33, %v4450_v28 }
 0x3f7   : > { %v1346_v58 = vpack.c.bf16 %v4613_v30, %v4609_v57  ;;  %v1369_v25 = vpack.c.bf16 %v1305_v48, %v1302_v27  ;;  %2803 = vmatpush3.bf16.msra.mxu0 %v1359_v1 }
 0x3f8   : > { %v1368_v49 = vpack.c.bf16 %v1297_v31, %v1294_v63 }
 0x3f9   : > { %v1074_v17 = vpop.f32.mrb[32].mxu0 }
 0x3fa   : > { %v1076_v36 = vpop.f32.mrb[33].mxu0  ;;  %v3048_v29 = vpop.f32.mrb[32].mxu1  ;;  %2804 = vmatprep.subr.bf16.mxu0 %v1368_v49  ;;  %v1075_v47 = vadd.f32 %v1074_v17, %v4446_v35 }
 0x3fb   : > { %v1078_v22 = vpop.f32.mrb[34].mxu0  ;;  %v1309_v32 = vpop.f32.mrb[33].mxu1  ;;  %2805 = vmatpush3.bf16.msra.mxu0 %v1360_v56  ;;  %v4631_v19 = vadd.f32 %v1076_v36, %v4448_v5  ;;  %v1318_v43 = vadd.f32 %v3048_v29, %v4450_v28 }
 0x3fc   : > { %v1079_v39 = vadd.f32 %v1078_v22, %v4446_v35  ;;  %v1080_v7 = vpop.f32.mrb[35].mxu0  ;;  %v3049_v34 = vpop.f32.mrb[34].mxu1  ;;  %2806 = vmatprep.subr.bf16.mxu0 %v1369_v25  ;;  %v1310_v55 = vadd.f32 %v1309_v32, %v4450_v28 }
 0x3fd   : > { %v4635_v1 = vadd.f32 %v1080_v7, %v4448_v5  ;;  %v1321_v10 = vadd.f32 %v3049_v34, %v4450_v28  ;;  %v1312_v12 = vpop.f32.mrb[35].mxu1 }
 0x3fe   : > { %v4638_v15 = vpack.c.bf16 %v1079_v39, %v1075_v47  ;;  %v1313_v56 = vadd.f32 %v1312_v12, %v4450_v28 }
 0x3ff   : > { %v1347_v27 = vpack.c.bf16 %v4635_v1, %v4631_v19  ;;  %v1371_v48 = vpack.c.bf16 %v1321_v10, %v1318_v43  ;;  %2807 = vmatpush3.bf16.msra.mxu0 %v1361_v53 }
 0x400   : > { %v1370_v33 = vpack.c.bf16 %v1313_v56, %v1310_v55 }
 0x401   : > { %v1084_v63 = vpop.f32.mrb[36].mxu0 }
 0x402   : > { %v1086_v31 = vpop.f32.mrb[37].mxu0  ;;  %2808 = vmatprep.subr.bf16.mxu0 %v1370_v33  ;;  %v1085_v49 = vadd.f32 %v1084_v63, %v4446_v35 }
 0x403   : > { %v1088_v25 = vpop.f32.mrb[38].mxu0  ;;  %2809 = vmatpush3.bf16.msra.mxu0 %v1362_v40  ;;  %v1087_v36 = vadd.f32 %v1086_v31, %v4448_v5 }
 0x404   : > { %v1089_v28 = vadd.f32 %v1088_v25, %v4446_v35  ;;  %v1090_v17 = vpop.f32.mrb[39].mxu0  ;;  %2810 = vmatprep.subr.bf16.mxu0 %v1371_v48 }
 0x405   : > { %v1091_v46 = vadd.f32 %v1090_v17, %v4448_v5 }
 0x406   : > { %v4654_v16 = vpack.c.bf16 %v1089_v28, %v1085_v49 }
 0x407   : > { %v1348_v53 = vpack.c.bf16 %v1091_v46, %v1087_v36  ;;  %2811 = vmatpush3.bf16.msra.mxu0 %v1363_v4 }
 0x409   : > { %v1094_v29 = vpop.f32.mrb[40].mxu0  ;;  %2748 = vmatprep.subr.bf16.mxu1 %v1348_v53 }
 0x40a   : > { %v1096_v11 = vpop.f32.mrb[41].mxu0  ;;  %2749 = vmatpush3.bf16.xpose.msra.mxu1 %v1340_v62  ;;  %v1095_v40 = vadd.f32 %v1094_v29, %v4446_v35 }
 0x40b   : > { %v1098_v59 = vpop.f32.mrb[42].mxu0  ;;  %v1097_v47 = vadd.f32 %v1096_v11, %v4448_v5 }
 0x40c   : > { %v1099_v22 = vadd.f32 %v1098_v59, %v4446_v35  ;;  %v1100_v32 = vpop.f32.mrb[43].mxu0 }
 0x40d   : > { %v1101_v39 = vadd.f32 %v1100_v32, %v4448_v5 }
 0x40e   : > { %v4666_v7 = vpack.c.bf16 %v1099_v22, %v1095_v40 }
 0x40f   : > { %v1349_v42 = vpack.c.bf16 %v1101_v39, %v1097_v47 }
 0x411   : > { %v1104_v2 = vpop.f32.mrb[44].mxu0  ;;  %2750 = vmatprep.subr.bf16.mxu1 %v1349_v42 }
 0x412   : > { %v1106_v4 = vpop.f32.mrb[45].mxu0  ;;  %2751 = vmatpush3.bf16.xpose.msra.mxu1 %v1341_v8  ;;  %v1105_v20 = vadd.f32 %v1104_v2, %v4446_v35 }
 0x413   : > { %v1108_v52 = vpop.f32.mrb[46].mxu0  ;;  %v1107_v43 = vadd.f32 %v1106_v4, %v4448_v5 }
 0x414   : > { %v1109_v62 = vadd.f32 %v1108_v52, %v4446_v35  ;;  %v1110_v34 = vpop.f32.mrb[47].mxu0 }
 0x415   : > { %v1111_v10 = vadd.f32 %v1110_v34, %v4448_v5 }
 0x416   : > { %v4675_v12 = vpack.c.bf16 %v1109_v62, %v1105_v20 }
 0x417   : > { %v1350_v55 = vpack.c.bf16 %v1111_v10, %v1107_v43 }
 0x419   : > { %v1114_v56 = vpop.f32.mrb[48].mxu0  ;;  %2752 = vmatprep.subr.bf16.mxu1 %v1350_v55 }
 0x41a   : > { %v1116_v48 = vpop.f32.mrb[49].mxu0  ;;  %2753 = vmatpush3.bf16.xpose.msra.mxu1 %v1342_v23  ;;  %v1115_v6 = vadd.f32 %v1114_v56, %v4446_v35 }
 0x41b   : > { %v1118_v14 = vpop.f32.mrb[50].mxu0  ;;  %v1117_v63 = vadd.f32 %v1116_v48, %v4448_v5 }
 0x41c   : > { %v1119_v8 = vadd.f32 %v1118_v14, %v4446_v35  ;;  %v1120_v33 = vpop.f32.mrb[51].mxu0 }
 0x41d   : > { %v1121_v31 = vadd.f32 %v1120_v33, %v4448_v5 }
 0x41e   : > { %v4684_v25 = vpack.c.bf16 %v1119_v8, %v1115_v6 }
 0x41f   : > { %v1351_v49 = vpack.c.bf16 %v1121_v31, %v1117_v63 }
 0x421   : > { %v1124_v28 = vpop.f32.mrb[52].mxu0  ;;  %2754 = vmatprep.subr.bf16.mxu1 %v1351_v49 }
 0x422   : > { %v1126_v17 = vpop.f32.mrb[53].mxu0  ;;  %2755 = vmatpush3.bf16.xpose.msra.mxu1 %v1343_v37  ;;  %v1125_v45 = vadd.f32 %v1124_v28, %v4446_v35 }
 0x423   : > { %v1128_v41 = vpop.f32.mrb[54].mxu0  ;;  %v1127_v46 = vadd.f32 %v1126_v17, %v4448_v5 }
 0x424   : > { %v1129_v23 = vadd.f32 %v1128_v41, %v4446_v35  ;;  %v1130_v36 = vpop.f32.mrb[55].mxu0 }
 0x425   : > { %v1131_v53 = vadd.f32 %v1130_v36, %v4448_v5 }
 0x426   : > { %v4693_v29 = vpack.c.bf16 %v1129_v23, %v1125_v45 }
 0x427   : > { %v1352_v11 = vpack.c.bf16 %v1131_v53, %v1127_v46 }
 0x429   : > { %v1134_v59 = vpop.f32.mrb[56].mxu0  ;;  %2756 = vmatprep.subr.bf16.mxu1 %v1352_v11 }
 0x42a   : > { %v1136_v40 = vpop.f32.mrb[57].mxu0  ;;  %2757 = vmatpush3.bf16.xpose.msra.mxu1 %v1344_v24  ;;  %v1135_v54 = vadd.f32 %v1134_v59, %v4446_v35 }
 0x42b   : > { %v1138_v38 = vpop.f32.mrb[58].mxu0  ;;  %v1137_v32 = vadd.f32 %v1136_v40, %v4448_v5 }
 0x42c   : > { %v1139_v37 = vadd.f32 %v1138_v38, %v4446_v35  ;;  %v1140_v22 = vpop.f32.mrb[59].mxu0 }
 0x42d   : > { %v1141_v47 = vadd.f32 %v1140_v22, %v4448_v5 }
 0x42e   : > { %v1337_v39 = vpack.c.bf16 %v1139_v37, %v1135_v54 }
 0x42f   : > { %v1353_v42 = vpack.c.bf16 %v1141_v47, %v1137_v32 }
 0x431   : > { %v1144_v2 = vpop.f32.mrb[60].mxu0  ;;  %2758 = vmatprep.subr.bf16.mxu1 %v1353_v42 }
 0x432   : > { %v1146_v4 = vpop.f32.mrb[61].mxu0  ;;  %2759 = vmatpush3.bf16.xpose.msra.mxu1 %v1345_v9  ;;  %v1145_v0 = vadd.f32 %v1144_v2, %v4446_v35 }
 0x433   : > { %v1148_v50 = vpop.f32.mrb[62].mxu0  ;;  %v1147_v20 = vadd.f32 %v1146_v4, %v4448_v5 }
 0x434   : > { %v1149_v24 = vadd.f32 %v1148_v50, %v4446_v35  ;;  %v1150_v52 = vpop.f32.mrb[63].mxu0 }
 0x435   : > { %v1151_v62 = vadd.f32 %v1150_v52, %v4448_v5 }
 0x436   : > { %v1338_v34 = vpack.c.bf16 %v1149_v24, %v1145_v0 }
 0x437   : > { %v1354_v43 = vpack.c.bf16 %v1151_v62, %v1147_v20 }
 0x439   : > { %v1154_v10 = vpop.f32.mrb[64].mxu0  ;;  %2760 = vmatprep.subr.bf16.mxu1 %v1354_v43 }
 0x43a   : > { %v1156_v55 = vpop.f32.mrb[65].mxu0  ;;  %2761 = vmatpush3.bf16.xpose.msra.mxu1 %v1346_v58  ;;  %v1155_v18 = vadd.f32 %v1154_v10, %v4446_v35 }
 0x43b   : > { %v1158_v13 = vpop.f32.mrb[66].mxu0  ;;  %v1157_v48 = vadd.f32 %v1156_v55, %v4448_v5 }
 0x43c   : > { %v1159_v9 = vadd.f32 %v1158_v13, %v4446_v35  ;;  %v1160_v56 = vpop.f32.mrb[67].mxu0 }
 0x43d   : > { %v1161_v14 = vadd.f32 %v1160_v56, %v4448_v5 }
 0x43e   : > { %v1339_v6 = vpack.c.bf16 %v1159_v9, %v1155_v18 }
 0x43f   : > { %v1355_v8 = vpack.c.bf16 %v1161_v14, %v1157_v48 }
 0x441   : > { %2762 = vmatprep.subr.bf16.mxu1 %v1355_v8 }
 0x442   : > { %2763 = vmatpush3.bf16.xpose.msra.mxu1 %v1347_v27 }
 0x449   : > { %2765 = vmatmul.mubr.bf16.vlgmr.msra.gmra.mrb[36].mxu1 %v4466_v44 }
 0x44a   : > { %2766 = vmatprep.mubr.bf16.mxu1 %v4495_v26 }
 0x451   : > { %2767 = vmatmul.mubr.bf16.gmra.mrb[40].mxu1 %v4495_v26 }
 0x452   : > { %2768 = vmatprep.mubr.bf16.mxu1 %v4523_v51 }
 0x459   : > { %2769 = vmatmul.mubr.bf16.gmra.mrb[44].mxu1 %v4523_v51 }
 0x45a   : > { %2770 = vmatprep.mubr.bf16.mxu1 %v4551_v3 }
 0x461   : > { %2771 = vmatmul.mubr.bf16.gmra.mrb[48].mxu1 %v4551_v3 }
 0x462   : > { %2772 = vmatprep.mubr.bf16.mxu1 %v4575_v21 }
 0x469   : > { %2773 = vmatmul.mubr.bf16.gmra.mrb[52].mxu1 %v4575_v21 }
 0x46a   : > { %2774 = vmatprep.mubr.bf16.mxu1 %v4594_v60 }
 0x471   : > { %2775 = vmatmul.mubr.bf16.gmra.mrb[56].mxu1 %v4594_v60 }
 0x472   : > { %2776 = vmatprep.mubr.bf16.mxu1 %v4616_v61 }
 0x479   : > { %2777 = vmatmul.mubr.bf16.gmra.mrb[60].mxu1 %v4616_v61 }
 0x47a   : > { %2778 = vmatprep.mubr.bf16.mxu1 %v4638_v15 }
 0x481   : > { %2779 = vmatmul.mubr.bf16.gmra.mrb[64].mxu1 %v4638_v15 }
 0x482   : > { %2780 = vmatprep.mubr.bf16.mxu1 %v4654_v16 }
 0x489   : > { %2781 = vmatmul.mubr.bf16.gmra.mrb[68].mxu1 %v4654_v16 }
 0x48a   : > { %2782 = vmatprep.mubr.bf16.mxu1 %v4666_v7 }
 0x491   : > { %2783 = vmatmul.mubr.bf16.gmra.mrb[72].mxu1 %v4666_v7 }
 0x492   : > { %2784 = vmatprep.mubr.bf16.mxu1 %v4675_v12 }
 0x499   : > { %2785 = vmatmul.mubr.bf16.gmra.mrb[76].mxu1 %v4675_v12 }
 0x49a   : > { %2786 = vmatprep.mubr.bf16.mxu1 %v4684_v25 }
 0x4a1   : > { %2787 = vmatmul.mubr.bf16.gmra.mrb[80].mxu1 %v4684_v25 }
 0x4a2   : > { %2788 = vmatprep.mubr.bf16.mxu1 %v4693_v29 }
 0x4a9   : > { %2789 = vmatmul.mubr.bf16.gmra.mrb[84].mxu1 %v4693_v29 }
 0x4aa   : > { %2790 = vmatprep.mubr.bf16.mxu1 %v1337_v39 }
 0x4b1   : > { %2791 = vmatmul.mubr.bf16.gmra.mrb[88].mxu1 %v1337_v39 }
 0x4b2   : > { %2792 = vmatprep.mubr.bf16.mxu1 %v1338_v34 }
 0x4b9   : > { %2793 = vmatmul.mubr.bf16.gmra.mrb[92].mxu1 %v1338_v34 }
 0x4ba   : > { %2794 = vmatprep.mubr.bf16.mxu1 %v1339_v6 }
 0x4c1   : > { %2795 = vmatmul.mubr.bf16.gmra.mrb[96].mxu1 %v1339_v6 }
 0x51c   : > { %v4744_v35 = vpop.f32.mrb[36].mxu1 }
 0x51d   : > { %v4746_v5 = vpop.f32.mrb[37].mxu1 }
 0x51e   : > { %v4748_v44 = vpop.f32.mrb[38].mxu1  ;;  %v1565_v26 = vmax.f32 %v4744_v35, %v4746_v5 }
 0x51f   : > { %v4752_v51 = vpop.f32.mrb[39].mxu1 }
 0x520   : > { %1566 = vmax.xlane.f32.xlu0 %v1565_v26  ;;  %v1568_v3 = vmax.f32 %v4748_v44, %v4752_v51 }
 0x524   : > { %1569 = vmax.xlane.f32.xlu0 %v1568_v3  ;;  %v4756_v21 = vpop.f32.mrb[40].mxu1 }
 0x525   : > { %v4758_v60 = vpop.f32.mrb[41].mxu1 }
 0x526   : > { %v4760_v57 = vpop.f32.mrb[42].mxu1  ;;  %v1571_v30 = vmax.f32 %v4756_v21, %v4758_v60 }
 0x527   : > { %v4764_v61 = vpop.f32.mrb[43].mxu1 }
 0x528   : > { %1572 = vmax.xlane.f32.xlu1 %v1571_v30  ;;  %v1574_v58 = vmax.f32 %v4760_v57, %v4764_v61 }
 0x52c   : > { %1575 = vmax.xlane.f32.xlu1 %v1574_v58  ;;  %v4768_v19 = vpop.f32.mrb[44].mxu1 }
 0x52d   : > { %v4770_v1 = vpop.f32.mrb[45].mxu1 }
 0x52e   : > { %v4772_v15 = vpop.f32.mrb[46].mxu1  ;;  %v1577_v27 = vmax.f32 %v4768_v19, %v4770_v1 }
 0x52f   : > { %v4776_v16 = vpop.f32.mrb[47].mxu1 }
 0x530   : > { %1578 = vmax.xlane.f32.xlu0 %v1577_v27  ;;  %v1580_v7 = vmax.f32 %v4772_v15, %v4776_v16 }
 0x532   : > { %1581 = vmax.xlane.f32.xlu1 %v1580_v7 }
 0x534   : > { %v4780_v12 = vpop.f32.mrb[48].mxu1 }
 0x535   : > { %v4782_v33 = vpop.f32.mrb[49].mxu1 }
 0x536   : > { %v4784_v63 = vpop.f32.mrb[50].mxu1  ;;  %v1583_v31 = vmax.f32 %v4780_v12, %v4782_v33 }
 0x537   : > { %v4788_v25 = vpop.f32.mrb[51].mxu1 }
 0x538   : > { %1584 = vmax.xlane.f32.xlu0 %v1583_v31  ;;  %v1586_v49 = vmax.f32 %v4784_v63, %v4788_v25 }
 0x53a   : > { %1587 = vmax.xlane.f32.xlu1 %v1586_v49 }
 0x53c   : > { %v4792_v28 = vpop.f32.mrb[52].mxu1 }
 0x53d   : > { %v4794_v17 = vpop.f32.mrb[53].mxu1 }
 0x53e   : > { %v4796_v41 = vpop.f32.mrb[54].mxu1  ;;  %v1589_v45 = vmax.f32 %v4792_v28, %v4794_v17 }
 0x53f   : > { %v4800_v23 = vpop.f32.mrb[55].mxu1 }
 0x540   : > { %1590 = vmax.xlane.f32.xlu0 %v1589_v45  ;;  %v1592_v36 = vmax.f32 %v4796_v41, %v4800_v23 }
 0x542   : > { %1593 = vmax.xlane.f32.xlu1 %v1592_v36 }
 0x544   : > { %v4804_v46 = vpop.f32.mrb[56].mxu1 }
 0x545   : > { %v4806_v53 = vpop.f32.mrb[57].mxu1 }
 0x546   : > { %v4808_v29 = vpop.f32.mrb[58].mxu1  ;;  %v1595_v11 = vmax.f32 %v4804_v46, %v4806_v53 }
 0x547   : > { %v4812_v59 = vpop.f32.mrb[59].mxu1 }
 0x548   : > { %1596 = vmax.xlane.f32.xlu0 %v1595_v11  ;;  %v1598_v40 = vmax.f32 %v4808_v29, %v4812_v59 }
 0x54a   : > { %1599 = vmax.xlane.f32.xlu1 %v1598_v40 }
 0x54c   : > { %v4816_v38 = vpop.f32.mrb[60].mxu1 }
 0x54d   : > { %v4818_v54 = vpop.f32.mrb[61].mxu1 }
 0x54e   : > { %v4820_v37 = vpop.f32.mrb[62].mxu1  ;;  %v1601_v22 = vmax.f32 %v4816_v38, %v4818_v54 }
 0x54f   : > { %v4824_v32 = vpop.f32.mrb[63].mxu1 }
 0x550   : > { %1602 = vmax.xlane.f32.xlu0 %v1601_v22  ;;  %v1604_v47 = vmax.f32 %v4820_v37, %v4824_v32 }
 0x552   : > { %1605 = vmax.xlane.f32.xlu1 %v1604_v47 }
 0x554   : > { %v4828_v39 = vpop.f32.mrb[64].mxu1 }
 0x555   : > { %v4830_v42 = vpop.f32.mrb[65].mxu1 }
 0x556   : > { %v4832_v2 = vpop.f32.mrb[66].mxu1  ;;  %v1607_v4 = vmax.f32 %v4828_v39, %v4830_v42 }
 0x557   : > { %v4836_v50 = vpop.f32.mrb[67].mxu1 }
 0x558   : > { %1608 = vmax.xlane.f32.xlu0 %v1607_v4  ;;  %v1610_v0 = vmax.f32 %v4832_v2, %v4836_v50 }
 0x55a   : > { %1611 = vmax.xlane.f32.xlu1 %v1610_v0 }
 0x55c   : > { %v4840_v24 = vpop.f32.mrb[68].mxu1 }
 0x55d   : > { %v4842_v52 = vpop.f32.mrb[69].mxu1 }
 0x55e   : > { %v4844_v20 = vpop.f32.mrb[70].mxu1  ;;  %v1613_v62 = vmax.f32 %v4840_v24, %v4842_v52 }
 0x55f   : > { %v4848_v34 = vpop.f32.mrb[71].mxu1 }
 0x560   : > { %1614 = vmax.xlane.f32.xlu0 %v1613_v62  ;;  %v1616_v43 = vmax.f32 %v4844_v20, %v4848_v34 }
 0x562   : > { %1617 = vmax.xlane.f32.xlu1 %v1616_v43 }
 0x564   : > { %v4852_v10 = vpop.f32.mrb[72].mxu1 }
 0x565   : > { %v4854_v55 = vpop.f32.mrb[73].mxu1 }
 0x566   : > { %v4856_v13 = vpop.f32.mrb[74].mxu1  ;;  %v1619_v18 = vmax.f32 %v4852_v10, %v4854_v55 }
 0x567   : > { %v4860_v9 = vpop.f32.mrb[75].mxu1 }
 0x568   : > { %1620 = vmax.xlane.f32.xlu0 %v1619_v18  ;;  %v1622_v56 = vmax.f32 %v4856_v13, %v4860_v9 }
 0x56a   : > { %1623 = vmax.xlane.f32.xlu1 %v1622_v56 }
 0x56c   : > { %v4864_v48 = vpop.f32.mrb[76].mxu1 }
 0x56d   : > { %v4866_v14 = vpop.f32.mrb[77].mxu1 }
 0x56e   : > { %v4868_v6 = vpop.f32.mrb[78].mxu1  ;;  %v1625_v8 = vmax.f32 %v4864_v48, %v4866_v14 }
 0x56f   : > { %v4872_v26 = vpop.f32.mrb[79].mxu1 }
 0x570   : > { %1626 = vmax.xlane.f32.xlu0 %v1625_v8  ;;  %v1628_v3 = vmax.f32 %v4868_v6, %v4872_v26 }
 0x572   : > { %1629 = vmax.xlane.f32.xlu1 %v1628_v3 }
 0x574   : > { %v4876_v30 = vpop.f32.mrb[80].mxu1 }
 0x575   : > { %v4878_v58 = vpop.f32.mrb[81].mxu1 }
 0x576   : > { %v4880_v27 = vpop.f32.mrb[82].mxu1  ;;  %v1631_v7 = vmax.f32 %v4876_v30, %v4878_v58 }
 0x577   : > { %v4884_v31 = vpop.f32.mrb[83].mxu1 }
 0x578   : > { %1632 = vmax.xlane.f32.xlu0 %v1631_v7  ;;  %v1634_v49 = vmax.f32 %v4880_v27, %v4884_v31 }
 0x57a   : > { %1635 = vmax.xlane.f32.xlu1 %v1634_v49 }
 0x57c   : > { %v4888_v45 = vpop.f32.mrb[84].mxu1 }
 0x57d   : > { %v4890_v36 = vpop.f32.mrb[85].mxu1 }
 0x57e   : > { %v4892_v11 = vpop.f32.mrb[86].mxu1  ;;  %v1637_v40 = vmax.f32 %v4888_v45, %v4890_v36 }
 0x57f   : > { %5203 = vst [vmem:[#allocation16_spill] sm:$0xff] %v4892_v11  ;;  %v4896_v22 = vpop.f32.mrb[87].mxu1 }
 0x580   : > { %5204 = vst [vmem:[#allocation17_spill] sm:$0xff] %v4896_v22  ;;  %1638 = vmax.xlane.f32.xlu0 %v1637_v40  ;;  %v1640_v47 = vmax.f32 %v4892_v11, %v4896_v22 }
 0x582   : > { %1641 = vmax.xlane.f32.xlu1 %v1640_v47 }
 0x584   : > { %v4900_v4 = vpop.f32.mrb[88].mxu1 }
 0x585   : > { %5205 = vst [vmem:[#allocation18_spill] sm:$0xff] %v4900_v4  ;;  %v4902_v0 = vpop.f32.mrb[89].mxu1 }
 0x586   : > { %5206 = vst [vmem:[#allocation19_spill] sm:$0xff] %v4902_v0  ;;  %v4904_v62 = vpop.f32.mrb[90].mxu1  ;;  %v1643_v43 = vmax.f32 %v4900_v4, %v4902_v0 }
 0x587   : > { %5207 = vst [vmem:[#allocation20_spill] sm:$0xff] %v4904_v62  ;;  %v4908_v18 = vpop.f32.mrb[91].mxu1 }
 0x588   : > { %5208 = vst [vmem:[#allocation21_spill] sm:$0xff] %v4908_v18  ;;  %1644 = vmax.xlane.f32.xlu0 %v1643_v43  ;;  %v1646_v56 = vmax.f32 %v4904_v62, %v4908_v18 }
 0x58a   : > { %1647 = vmax.xlane.f32.xlu1 %v1646_v56 }
 0x58c   : > { %v4912_v8 = vpop.f32.mrb[92].mxu1 }
 0x58d   : > { %5209 = vst [vmem:[#allocation22_spill] sm:$0xff] %v4912_v8  ;;  %v4914_v3 = vpop.f32.mrb[93].mxu1 }
 0x58e   : > { %5210 = vst [vmem:[#allocation23_spill] sm:$0xff] %v4914_v3  ;;  %v4916_v7 = vpop.f32.mrb[94].mxu1  ;;  %v1649_v49 = vmax.f32 %v4912_v8, %v4914_v3 }
 0x58f   : > { %5211 = vst [vmem:[#allocation24_spill] sm:$0xff] %v4916_v7  ;;  %v4920_v40 = vpop.f32.mrb[95].mxu1 }
 0x590   : > { %5212 = vst [vmem:[#allocation25_spill] sm:$0xff] %v4920_v40  ;;  %1650 = vmax.xlane.f32.xlu0 %v1649_v49  ;;  %v1652_v47 = vmax.f32 %v4916_v7, %v4920_v40 }
 0x592   : > { %1653 = vmax.xlane.f32.xlu1 %v1652_v47 }
 0x594   : > { %v4924_v43 = vpop.f32.mrb[96].mxu1 }
 0x595   : > { %5213 = vst [vmem:[#allocation26_spill] sm:$0xff] %v4924_v43  ;;  %v4926_v18 = vpop.f32.mrb[97].mxu1 }
 0x596   : > { %5214 = vst [vmem:[#allocation27_spill] sm:$0xff] %v4926_v18  ;;  %v4928_v56 = vpop.f32.mrb[98].mxu1  ;;  %v1655_v62 = vmax.f32 %v4924_v43, %v4926_v18 }
 0x597   : > { %v4932_v0 = vpop.f32.mrb[99].mxu1 }
 0x598   : > { %5215 = vst [vmem:[#allocation28_spill] sm:$0xff] %v4932_v0  ;;  %1656 = vmax.xlane.f32.xlu0 %v1655_v62  ;;  %v1658_v3 = vmax.f32 %v4928_v56, %v4932_v0 }
 0x59a   : > { %1659 = vmax.xlane.f32.xlu1 %v1658_v3 }
 0x5ad   : > { %v1567_v49 = vpop.xlane.xlu0 %1566 }
 0x5ae   : > { %v1661_v40 = vsub.f32 %v4744_v35, %v1567_v49  ;;  %v1662_v47 = vsub.f32 %v4746_v5, %v1567_v49 }
 0x5b0   : > { %v1725_v7 = vmul.f32 1.442695, %v1661_v40  ;;  %v1727_v8 = vmul.f32 1.442695, %v1662_v47 }
 0x5b1   : > { %v1570_v4 = vpop.xlane.xlu0 %1569 }
 0x5b2   : > { %3277 = vpow2.f32 %v1725_v7  ;;  %v1663_v22 = vsub.f32 %v4748_v44, %v1570_v4  ;;  %v1664_v18 = vsub.f32 %v4752_v51, %v1570_v4 }
 0x5b3   : > { %3279 = vpow2.f32 %v1727_v8 }
 0x5b4   : > { %v1729_v43 = vmul.f32 1.442695, %v1663_v22  ;;  %v1731_v62 = vmul.f32 1.442695, %v1664_v18 }
 0x5b5   : > { %v1573_v11 = vpop.xlane.xlu1 %1572 }
 0x5b6   : > { %3281 = vpow2.f32 %v1729_v43  ;;  %v1665_v3 = vsub.f32 %v4756_v21, %v1573_v11  ;;  %v1666_v0 = vsub.f32 %v4758_v60, %v1573_v11 }
 0x5b7   : > { %3283 = vpow2.f32 %v1731_v62 }
 0x5b8   : > { %v1733_v35 = vmul.f32 1.442695, %v1665_v3  ;;  %v1735_v5 = vmul.f32 1.442695, %v1666_v0 }
 0x5b9   : > { %v1576_v40 = vpop.xlane.xlu1 %1575 }
 0x5ba   : > { %3285 = vpow2.f32 %v1733_v35  ;;  %v1667_v7 = vsub.f32 %v4760_v57, %v1576_v40  ;;  %v1668_v44 = vsub.f32 %v4764_v61, %v1576_v40 }
 0x5bb   : > { %3287 = vpow2.f32 %v1735_v5 }
 0x5bc   : > { %v3278_v51 = vpop.eup %3277  ;;  %v1737_v4 = vmul.f32 1.442695, %v1667_v7  ;;  %v1739_v22 = vmul.f32 1.442695, %v1668_v44 }
 0x5bd   : > { %v3280_v18 = vpop.eup %3279  ;;  %v1579_v8 = vpop.xlane.xlu0 %1578 }
 0x5be   : > { %3289 = vpow2.f32 %v1737_v4  ;;  %v1669_v21 = vsub.f32 %v4768_v19, %v1579_v8  ;;  %v1670_v60 = vsub.f32 %v4770_v1, %v1579_v8  ;;  %v1853_v11 = vadd.f32 %v3280_v18, %v3278_v51 }
 0x5bf   : > { %3291 = vpow2.f32 %v1739_v22  ;;  %v1582_v0 = vpop.xlane.xlu1 %1581 }
 0x5c0   : > { %v3282_v43 = vpop.eup %3281  ;;  %v1741_v49 = vmul.f32 1.442695, %v1669_v21  ;;  %v1743_v47 = vmul.f32 1.442695, %v1670_v60  ;;  %v1671_v57 = vsub.f32 %v4772_v15, %v1582_v0  ;;  %v1672_v61 = vsub.f32 %v4776_v16, %v1582_v0  ;;  %1854 = vadd.xlane.f32.xlu0 %v1853_v11 }
 0x5c1   : > { %v3284_v62 = vpop.eup %3283  ;;  %v1949_v3 = vpack.c.bf16 %v3282_v43, %v3278_v51 }
 0x5c2   : > { %3293 = vpow2.f32 %v1741_v49  ;;  %v1745_v35 = vmul.f32 1.442695, %v1671_v57  ;;  %v1747_v5 = vmul.f32 1.442695, %v1672_v61  ;;  %v1950_v40 = vpack.c.bf16 %v3284_v62, %v3280_v18 }
 0x5c3   : > { %3295 = vpow2.f32 %v1743_v47  ;;  %v1856_v19 = vadd.f32 %v3284_v62, %v3282_v43 }
 0x5c4   : > { %v3286_v1 = vpop.eup %3285  ;;  %3297 = vpow2.f32 %v1745_v35  ;;  %2013 = vmatprep.mubr.bf16.mxu0 %v1950_v40 }
 0x5c5   : > { %v3288_v7 = vpop.eup %3287  ;;  %3299 = vpow2.f32 %v1747_v5  ;;  %1857 = vadd.xlane.f32.xlu1 %v1856_v19  ;;  %2014 = vmatmul.mubr.bf16.vlgmr.msra.gmra.mrb[68].mxu0 %v1949_v3  ;;  %v1585_v44 = vpop.xlane.xlu0 %1584 }
 0x5c6   : > { %v1673_v15 = vsub.f32 %v4780_v12, %v1585_v44  ;;  %v1674_v16 = vsub.f32 %v4782_v33, %v1585_v44  ;;  %v1859_v4 = vadd.f32 %v3288_v7, %v3286_v1 }
 0x5c7   : > { %v1588_v51 = vpop.xlane.xlu1 %1587 }
 0x5c8   : > { %v3290_v22 = vpop.eup %3289  ;;  %v1749_v8 = vmul.f32 1.442695, %v1673_v15  ;;  %v1751_v21 = vmul.f32 1.442695, %v1674_v16  ;;  %v1675_v18 = vsub.f32 %v4784_v63, %v1588_v51  ;;  %v1676_v60 = vsub.f32 %v4788_v25, %v1588_v51  ;;  %1860 = vadd.xlane.f32.xlu0 %v1859_v4 }
 0x5c9   : > { %v3292_v11 = vpop.eup %3291  ;;  %v1951_v0 = vpack.c.bf16 %v3290_v22, %v3286_v1 }
 0x5ca   : > { %3301 = vpow2.f32 %v1749_v8  ;;  %v1753_v43 = vmul.f32 1.442695, %v1675_v18  ;;  %v1755_v49 = vmul.f32 1.442695, %v1676_v60  ;;  %v1952_v47 = vpack.c.bf16 %v3292_v11, %v3288_v7 }
 0x5cb   : > { %3303 = vpow2.f32 %v1751_v21  ;;  %v1862_v12 = vadd.f32 %v3292_v11, %v3290_v22 }
 0x5cc   : > { %v3294_v57 = vpop.eup %3293  ;;  %3305 = vpow2.f32 %v1753_v43  ;;  %2021 = vmatprep.mubr.bf16.mxu0 %v1952_v47 }
 0x5cd   : > { %v3296_v33 = vpop.eup %3295  ;;  %3307 = vpow2.f32 %v1755_v49  ;;  %1863 = vadd.xlane.f32.xlu1 %v1862_v12  ;;  %2022 = vmatmul.mubr.bf16.gmra.mrb[72].mxu0 %v1951_v0  ;;  %v1591_v61 = vpop.xlane.xlu0 %1590 }
 0x5ce   : > { %v3298_v63 = vpop.eup %3297  ;;  %v1677_v25 = vsub.f32 %v4792_v28, %v1591_v61  ;;  %v1678_v62 = vsub.f32 %v4794_v17, %v1591_v61  ;;  %v1865_v3 = vadd.f32 %v3296_v33, %v3294_v57 }
 0x5cf   : > { %v3300_v35 = vpop.eup %3299  ;;  %v1594_v5 = vpop.xlane.xlu1 %1593  ;;  %v1953_v40 = vpack.c.bf16 %v3298_v63, %v3294_v57 }
 0x5d0   : > { %v1757_v19 = vmul.f32 1.442695, %v1677_v25  ;;  %v1759_v1 = vmul.f32 1.442695, %v1678_v62  ;;  %v1679_v7 = vsub.f32 %v4796_v41, %v1594_v5  ;;  %v1680_v44 = vsub.f32 %v4800_v23, %v1594_v5  ;;  %1866 = vadd.xlane.f32.xlu0 %v1865_v3 }
 0x5d1   : > { %v1954_v15 = vpack.c.bf16 %v3300_v35, %v3296_v33  ;;  %v1868_v16 = vadd.f32 %v3300_v35, %v3298_v63 }
 0x5d2   : > { %3309 = vpow2.f32 %v1757_v19  ;;  %v1761_v4 = vmul.f32 1.442695, %v1679_v7  ;;  %v1763_v51 = vmul.f32 1.442695, %v1680_v44 }
 0x5d3   : > { %3311 = vpow2.f32 %v1759_v1  ;;  %2029 = vmatprep.mubr.bf16.mxu0 %v1954_v15  ;;  %1869 = vadd.xlane.f32.xlu1 %v1868_v16  ;;  %v3267_v16 = vld [vmem:[#allocation8] sm:$0xff]  }
 0x5d4   : > { %v3302_v28 = vpop.eup %3301  ;;  %3313 = vpow2.f32 %v1761_v4  ;;  %3050 = vmatprep.subr.bf16.mxu1 %v3267_v16 }
 0x5d5   : > { %v3304_v17 = vpop.eup %3303  ;;  %3315 = vpow2.f32 %v1763_v51  ;;  %2030 = vmatmul.mubr.bf16.gmra.mrb[76].mxu0 %v1953_v40  ;;  %v1597_v22 = vpop.xlane.xlu0 %1596  ;;  %3051 = vmatpush3.bf16.msra.mxu1 %v3267_v16 }
 0x5d6   : > { %v3306_v8 = vpop.eup %3305  ;;  %v1681_v41 = vsub.f32 %v4804_v46, %v1597_v22  ;;  %v1682_v23 = vsub.f32 %v4806_v53, %v1597_v22  ;;  %v1871_v21 = vadd.f32 %v3304_v17, %v3302_v28 }
 0x5d7   : > { %v3308_v18 = vpop.eup %3307  ;;  %v1600_v60 = vpop.xlane.xlu1 %1599  ;;  %v1955_v11 = vpack.c.bf16 %v3306_v8, %v3302_v28 }
 0x5d8   : > { %v1765_v0 = vmul.f32 1.442695, %v1681_v41  ;;  %v1767_v43 = vmul.f32 1.442695, %v1682_v23  ;;  %v1683_v49 = vsub.f32 %v4808_v29, %v1600_v60  ;;  %v1684_v47 = vsub.f32 %v4812_v59, %v1600_v60  ;;  %1872 = vadd.xlane.f32.xlu0 %v1871_v21 }
 0x5d9   : > { %v1956_v12 = vpack.c.bf16 %v3308_v18, %v3304_v17  ;;  %v1874_v57 = vadd.f32 %v3308_v18, %v3306_v8 }
 0x5da   : > { %3317 = vpow2.f32 %v1765_v0  ;;  %v1769_v33 = vmul.f32 1.442695, %v1683_v49  ;;  %v1771_v61 = vmul.f32 1.442695, %v1684_v47 }
 0x5db   : > { %3319 = vpow2.f32 %v1767_v43  ;;  %2037 = vmatprep.mubr.bf16.mxu0 %v1956_v12  ;;  %1875 = vadd.xlane.f32.xlu1 %v1874_v57 }
 0x5dc   : > { %v3310_v46 = vpop.eup %3309  ;;  %3321 = vpow2.f32 %v1769_v33 }
 0x5dd   : > { %v3312_v53 = vpop.eup %3311  ;;  %3323 = vpow2.f32 %v1771_v61  ;;  %2038 = vmatmul.mubr.bf16.gmra.mrb[80].mxu0 %v1955_v11  ;;  %v1603_v63 = vpop.xlane.xlu0 %1602 }
 0x5de   : > { %v3314_v25 = vpop.eup %3313  ;;  %v1685_v29 = vsub.f32 %v4816_v38, %v1603_v63  ;;  %v1686_v59 = vsub.f32 %v4818_v54, %v1603_v63  ;;  %v1877_v62 = vadd.f32 %v3312_v53, %v3310_v46 }
 0x5df   : > { %v3316_v3 = vpop.eup %3315  ;;  %v1606_v35 = vpop.xlane.xlu1 %1605  ;;  %v1957_v5 = vpack.c.bf16 %v3314_v25, %v3310_v46 }
 0x5e0   : > { %v1773_v40 = vmul.f32 1.442695, %v1685_v29  ;;  %v1775_v19 = vmul.f32 1.442695, %v1686_v59  ;;  %v1687_v1 = vsub.f32 %v4820_v37, %v1606_v35  ;;  %v1688_v7 = vsub.f32 %v4824_v32, %v1606_v35  ;;  %1878 = vadd.xlane.f32.xlu0 %v1877_v62  ;;  %v3268_v35 = vld [vmem:[#allocation8 + $0x8] sm:$0xff]  }
 0x5e1   : > { %v1958_v44 = vpack.c.bf16 %v3316_v3, %v3312_v53  ;;  %v1880_v15 = vadd.f32 %v3316_v3, %v3314_v25  ;;  %3052 = vmatprep.subr.bf16.mxu1 %v3268_v35 }
 0x5e2   : > { %3325 = vpow2.f32 %v1773_v40  ;;  %v1777_v4 = vmul.f32 1.442695, %v1687_v1  ;;  %v1779_v51 = vmul.f32 1.442695, %v1688_v7  ;;  %3053 = vmatpush3.bf16.msra.mxu1 %v3268_v35 }
 0x5e3   : > { %3327 = vpow2.f32 %v1775_v19  ;;  %2045 = vmatprep.mubr.bf16.mxu0 %v1958_v44  ;;  %1881 = vadd.xlane.f32.xlu1 %v1880_v15 }
 0x5e4   : > { %v3318_v38 = vpop.eup %3317  ;;  %3329 = vpow2.f32 %v1777_v4 }
 0x5e5   : > { %v3320_v54 = vpop.eup %3319  ;;  %3331 = vpow2.f32 %v1779_v51  ;;  %2046 = vmatmul.mubr.bf16.gmra.mrb[84].mxu0 %v1957_v5  ;;  %v1609_v28 = vpop.xlane.xlu0 %1608 }
 0x5e6   : > { %v3322_v37 = vpop.eup %3321  ;;  %v1689_v32 = vsub.f32 %v4828_v39, %v1609_v28  ;;  %v1690_v17 = vsub.f32 %v4830_v42, %v1609_v28  ;;  %v1883_v22 = vadd.f32 %v3320_v54, %v3318_v38 }
 0x5e7   : > { %v3324_v8 = vpop.eup %3323  ;;  %v1612_v41 = vpop.xlane.xlu1 %1611  ;;  %v1959_v23 = vpack.c.bf16 %v3322_v37, %v3318_v38 }
 0x5e8   : > { %v1781_v21 = vmul.f32 1.442695, %v1689_v32  ;;  %v1783_v18 = vmul.f32 1.442695, %v1690_v17  ;;  %v1691_v60 = vsub.f32 %v4832_v2, %v1612_v41  ;;  %v1692_v11 = vsub.f32 %v4836_v50, %v1612_v41  ;;  %1884 = vadd.xlane.f32.xlu0 %v1883_v22 }
 0x5e9   : > { %v1960_v0 = vpack.c.bf16 %v3324_v8, %v3320_v54  ;;  %v1886_v43 = vadd.f32 %v3324_v8, %v3322_v37 }
 0x5ea   : > { %3333 = vpow2.f32 %v1781_v21  ;;  %v1785_v49 = vmul.f32 1.442695, %v1691_v60  ;;  %v1787_v47 = vmul.f32 1.442695, %v1692_v11 }
 0x5eb   : > { %3335 = vpow2.f32 %v1783_v18  ;;  %2053 = vmatprep.mubr.bf16.mxu0 %v1960_v0  ;;  %1887 = vadd.xlane.f32.xlu1 %v1886_v43 }
 0x5ec   : > { %v3326_v39 = vpop.eup %3325  ;;  %3337 = vpow2.f32 %v1785_v49 }
 0x5ed   : > { %v3328_v42 = vpop.eup %3327  ;;  %3339 = vpow2.f32 %v1787_v47  ;;  %2054 = vmatmul.mubr.bf16.gmra.mrb[88].mxu0 %v1959_v23  ;;  %v1615_v12 = vpop.xlane.xlu0 %1614 }
 0x5ee   : > { %v3330_v57 = vpop.eup %3329  ;;  %v1693_v2 = vsub.f32 %v4840_v24, %v1615_v12  ;;  %v1694_v50 = vsub.f32 %v4842_v52, %v1615_v12  ;;  %v1889_v33 = vadd.f32 %v3328_v42, %v3326_v39 }
 0x5ef   : > { %v3332_v61 = vpop.eup %3331  ;;  %v1618_v46 = vpop.xlane.xlu1 %1617  ;;  %v1961_v53 = vpack.c.bf16 %v3330_v57, %v3326_v39  ;;  %v3269_v39 = vld [vmem:[#allocation8 + $0x10] sm:$0xff]  }
 0x5f0   : > { %v1789_v63 = vmul.f32 1.442695, %v1693_v2  ;;  %v1791_v25 = vmul.f32 1.442695, %v1694_v50  ;;  %v1695_v29 = vsub.f32 %v4844_v20, %v1618_v46  ;;  %v1696_v59 = vsub.f32 %v4848_v34, %v1618_v46  ;;  %1890 = vadd.xlane.f32.xlu0 %v1889_v33  ;;  %3054 = vmatprep.subr.bf16.mxu1 %v3269_v39 }
 0x5f1   : > { %v1962_v62 = vpack.c.bf16 %v3332_v61, %v3328_v42  ;;  %v1892_v3 = vadd.f32 %v3332_v61, %v3330_v57  ;;  %3055 = vmatpush3.bf16.msra.mxu1 %v3269_v39 }
 0x5f2   : > { %3341 = vpow2.f32 %v1789_v63  ;;  %v1793_v5 = vmul.f32 1.442695, %v1695_v29  ;;  %v1795_v40 = vmul.f32 1.442695, %v1696_v59 }
 0x5f3   : > { %3343 = vpow2.f32 %v1791_v25  ;;  %2061 = vmatprep.mubr.bf16.mxu0 %v1962_v62  ;;  %1893 = vadd.xlane.f32.xlu1 %v1892_v3 }
 0x5f4   : > { %v3334_v24 = vpop.eup %3333  ;;  %3345 = vpow2.f32 %v1793_v5 }
 0x5f5   : > { %v3336_v52 = vpop.eup %3335  ;;  %3347 = vpow2.f32 %v1795_v40  ;;  %2062 = vmatmul.mubr.bf16.gmra.mrb[92].mxu0 %v1961_v53  ;;  %v1621_v19 = vpop.xlane.xlu0 %1620 }
 0x5f6   : > { %v3338_v20 = vpop.eup %3337  ;;  %v1697_v34 = vsub.f32 %v4852_v10, %v1621_v19  ;;  %v1698_v1 = vsub.f32 %v4854_v55, %v1621_v19  ;;  %v1895_v7 = vadd.f32 %v3336_v52, %v3334_v24 }
 0x5f7   : > { %v3340_v44 = vpop.eup %3339  ;;  %v1624_v15 = vpop.xlane.xlu1 %1623  ;;  %v1963_v16 = vpack.c.bf16 %v3338_v20, %v3334_v24 }
 0x5f8   : > { %v1797_v4 = vmul.f32 1.442695, %v1697_v34  ;;  %v1799_v51 = vmul.f32 1.442695, %v1698_v1  ;;  %v1699_v38 = vsub.f32 %v4856_v13, %v1624_v15  ;;  %v1700_v54 = vsub.f32 %v4860_v9, %v1624_v15  ;;  %1896 = vadd.xlane.f32.xlu0 %v1895_v7  ;;  %v5216_v7 = vld [vmem:[#allocation16_spill] sm:$0xff]  ;;  %v5217_v15 = vld [vmem:[#allocation17_spill] sm:$0xff] }
 0x5f9   : > { %v1964_v28 = vpack.c.bf16 %v3340_v44, %v3336_v52  ;;  %v1898_v37 = vadd.f32 %v3340_v44, %v3338_v20 }
 0x5fa   : > { %3349 = vpow2.f32 %v1797_v4  ;;  %v1801_v32 = vmul.f32 1.442695, %v1699_v38  ;;  %v1803_v17 = vmul.f32 1.442695, %v1700_v54  ;;  %v3270_v38 = vld [vmem:[#allocation8 + $0x18] sm:$0xff]  }
 0x5fb   : > { %3351 = vpow2.f32 %v1799_v51  ;;  %2069 = vmatprep.mubr.bf16.mxu0 %v1964_v28  ;;  %1899 = vadd.xlane.f32.xlu1 %v1898_v37 }
 0x5fc   : > { %v3342_v10 = vpop.eup %3341  ;;  %3353 = vpow2.f32 %v1801_v32  ;;  %3056 = vmatprep.subr.bf16.mxu1 %v3270_v38 }
 0x5fd   : > { %v3344_v55 = vpop.eup %3343  ;;  %3355 = vpow2.f32 %v1803_v17  ;;  %2070 = vmatmul.mubr.bf16.gmra.mrb[96].mxu0 %v1963_v16  ;;  %v1627_v22 = vpop.xlane.xlu0 %1626  ;;  %3057 = vmatpush3.bf16.msra.mxu1 %v3270_v38  ;;  %v5218_v17 = vld [vmem:[#allocation18_spill] sm:$0xff] }
 0x5fe   : > { %v3346_v8 = vpop.eup %3345  ;;  %v1701_v13 = vsub.f32 %v4864_v48, %v1627_v22  ;;  %v1702_v9 = vsub.f32 %v4866_v14, %v1627_v22  ;;  %v1901_v41 = vadd.f32 %v3344_v55, %v3342_v10 }
 0x5ff   : > { %v3348_v23 = vpop.eup %3347  ;;  %v1630_v21 = vpop.xlane.xlu1 %1629  ;;  %v1965_v18 = vpack.c.bf16 %v3346_v8, %v3342_v10 }
 0x600   : > { %v1805_v60 = vmul.f32 1.442695, %v1701_v13  ;;  %v1807_v11 = vmul.f32 1.442695, %v1702_v9  ;;  %v1703_v0 = vsub.f32 %v4868_v6, %v1630_v21  ;;  %v1704_v43 = vsub.f32 %v4872_v26, %v1630_v21  ;;  %1902 = vadd.xlane.f32.xlu0 %v1901_v41 }
 0x601   : > { %v1966_v49 = vpack.c.bf16 %v3348_v23, %v3344_v55  ;;  %v1904_v47 = vadd.f32 %v3348_v23, %v3346_v8  ;;  %v5219_v55 = vld [vmem:[#allocation19_spill] sm:$0xff] }
 0x602   : > { %3357 = vpow2.f32 %v1805_v60  ;;  %v1809_v42 = vmul.f32 1.442695, %v1703_v0  ;;  %v1811_v12 = vmul.f32 1.442695, %v1704_v43 }
 0x603   : > { %3359 = vpow2.f32 %v1807_v11  ;;  %2077 = vmatprep.mubr.bf16.mxu0 %v1966_v49  ;;  %1905 = vadd.xlane.f32.xlu1 %v1904_v47  ;;  %v5221_v11 = vld [vmem:[#allocation21_spill] sm:$0xff] }
 0x604   : > { %v3350_v48 = vpop.eup %3349  ;;  %3361 = vpow2.f32 %v1809_v42 }
 0x605   : > { %v3352_v14 = vpop.eup %3351  ;;  %3363 = vpow2.f32 %v1811_v12  ;;  %2078 = vmatmul.mubr.bf16.gmra.mrb[100].mxu0 %v1965_v18  ;;  %v1633_v57 = vpop.xlane.xlu0 %1632  ;;  %v5220_v18 = vld [vmem:[#allocation20_spill] sm:$0xff] }
 0x606   : > { %v3354_v6 = vpop.eup %3353  ;;  %v1705_v26 = vsub.f32 %v4876_v30, %v1633_v57  ;;  %v1706_v2 = vsub.f32 %v4878_v58, %v1633_v57  ;;  %v1907_v50 = vadd.f32 %v3352_v14, %v3350_v48  ;;  %v3271_v12 = vld [vmem:[#allocation8 + $0x20] sm:$0xff]  }
 0x607   : > { %v3356_v33 = vpop.eup %3355  ;;  %v1636_v61 = vpop.xlane.xlu1 %1635  ;;  %v1967_v46 = vpack.c.bf16 %v3354_v6, %v3350_v48  ;;  %3058 = vmatprep.subr.bf16.mxu1 %v3271_v12 }
 0x608   : > { %v1813_v53 = vmul.f32 1.442695, %v1705_v26  ;;  %v1815_v63 = vmul.f32 1.442695, %v1706_v2  ;;  %v1707_v25 = vsub.f32 %v4880_v27, %v1636_v61  ;;  %v1708_v29 = vsub.f32 %v4884_v31, %v1636_v61  ;;  %1908 = vadd.xlane.f32.xlu0 %v1907_v50  ;;  %v5223_v2 = vld [vmem:[#allocation23_spill] sm:$0xff]  ;;  %v3272_v61 = vld [vmem:[#allocation8 + $0x28] sm:$0xff]   ;;  %3059 = vmatpush3.bf16.msra.mxu1 %v3271_v12 }
 0x609   : > { %v1968_v59 = vpack.c.bf16 %v3356_v33, %v3352_v14  ;;  %v1910_v62 = vadd.f32 %v3356_v33, %v3354_v6  ;;  %v5222_v6 = vld [vmem:[#allocation22_spill] sm:$0xff]  ;;  %3060 = vmatprep.subr.bf16.mxu1 %v3272_v61 }
 0x60a   : > { %3365 = vpow2.f32 %v1813_v53  ;;  %v1817_v3 = vmul.f32 1.442695, %v1707_v25  ;;  %v1819_v35 = vmul.f32 1.442695, %v1708_v29 }
 0x60b   : > { %3367 = vpow2.f32 %v1815_v63  ;;  %2085 = vmatprep.mubr.bf16.mxu0 %v1968_v59  ;;  %1911 = vadd.xlane.f32.xlu1 %v1910_v62  ;;  %v5224_v59 = vld [vmem:[#allocation24_spill] sm:$0xff] }
 0x60c   : > { %v3358_v30 = vpop.eup %3357  ;;  %3369 = vpow2.f32 %v1817_v3  ;;  %v5225_v3 = vld [vmem:[#allocation25_spill] sm:$0xff]  ;;  %3061 = vmatpush3.bf16.msra.mxu1 %v3272_v61 }
 0x60d   : > { %v3360_v58 = vpop.eup %3359  ;;  %3371 = vpow2.f32 %v1819_v35  ;;  %2086 = vmatmul.mubr.bf16.gmra.mrb[104].mxu0 %v1967_v46  ;;  %v1639_v5 = vpop.xlane.xlu0 %1638 }
 0x60e   : > { %v3362_v40 = vpop.eup %3361  ;;  %v1709_v27 = vsub.f32 %v4888_v45, %v1639_v5  ;;  %v1710_v31 = vsub.f32 %v4890_v36, %v1639_v5  ;;  %v1913_v24 = vadd.f32 %v3360_v58, %v3358_v30 }
 0x60f   : > { %v3364_v52 = vpop.eup %3363  ;;  %v1642_v19 = vpop.xlane.xlu1 %1641  ;;  %v1969_v20 = vpack.c.bf16 %v3362_v40, %v3358_v30 }
 0x610   : > { %v1821_v34 = vmul.f32 1.442695, %v1709_v27  ;;  %v1823_v1 = vmul.f32 1.442695, %v1710_v31  ;;  %v1711_v44 = vsub.f32 %v5216_v7, %v1642_v19  ;;  %v1712_v16 = vsub.f32 %v5217_v15, %v1642_v19  ;;  %1914 = vadd.xlane.f32.xlu0 %v1913_v24  ;;  %v3273_v31 = vld [vmem:[#allocation8 + $0x30] sm:$0xff]  }
 0x611   : > { %v1970_v4 = vpack.c.bf16 %v3364_v52, %v3360_v58  ;;  %v1916_v51 = vadd.f32 %v3364_v52, %v3362_v40  ;;  %3062 = vmatprep.subr.bf16.mxu1 %v3273_v31 }
 0x612   : > { %3373 = vpow2.f32 %v1821_v34  ;;  %v1825_v54 = vmul.f32 1.442695, %v1711_v44  ;;  %v1827_v28 = vmul.f32 1.442695, %v1712_v16  ;;  %3063 = vmatpush3.bf16.msra.mxu1 %v3273_v31 }
 0x613   : > { %3375 = vpow2.f32 %v1823_v1  ;;  %2093 = vmatprep.mubr.bf16.mxu0 %v1970_v4  ;;  %1917 = vadd.xlane.f32.xlu1 %v1916_v51  ;;  %v5227_v1 = vld [vmem:[#allocation27_spill] sm:$0xff] }
 0x614   : > { %v3366_v45 = vpop.eup %3365  ;;  %3377 = vpow2.f32 %v1825_v54 }
 0x615   : > { %v3368_v36 = vpop.eup %3367  ;;  %3379 = vpow2.f32 %v1827_v28  ;;  %2094 = vmatmul.mubr.bf16.gmra.mrb[108].mxu0 %v1969_v20  ;;  %v1645_v37 = vpop.xlane.xlu0 %1644  ;;  %v5226_v20 = vld [vmem:[#allocation26_spill] sm:$0xff]  ;;  %v5228_v28 = vld [vmem:[#allocation28_spill] sm:$0xff] }
 0x616   : > { %v3370_v32 = vpop.eup %3369  ;;  %v1713_v10 = vsub.f32 %v5218_v17, %v1645_v37  ;;  %v1714_v22 = vsub.f32 %v5219_v55, %v1645_v37  ;;  %v1919_v8 = vadd.f32 %v3368_v36, %v3366_v45 }
 0x617   : > { %v3372_v13 = vpop.eup %3371  ;;  %v1648_v9 = vpop.xlane.xlu1 %1647  ;;  %v1971_v41 = vpack.c.bf16 %v3370_v32, %v3366_v45 }
 0x618   : > { %v1829_v23 = vmul.f32 1.442695, %v1713_v10  ;;  %v1831_v21 = vmul.f32 1.442695, %v1714_v22  ;;  %v1715_v60 = vsub.f32 %v5220_v18, %v1648_v9  ;;  %v1716_v0 = vsub.f32 %v5221_v11, %v1648_v9  ;;  %1920 = vadd.xlane.f32.xlu0 %v1919_v8 }
 0x619   : > { %v1972_v43 = vpack.c.bf16 %v3372_v13, %v3368_v36  ;;  %v1922_v49 = vadd.f32 %v3372_v13, %v3370_v32  ;;  %v3274_v36 = vld [vmem:[#allocation8 + $0x38] sm:$0xff]  }
 0x61a   : > { %3381 = vpow2.f32 %v1829_v23  ;;  %v1833_v47 = vmul.f32 1.442695, %v1715_v60  ;;  %v1835_v39 = vmul.f32 1.442695, %v1716_v0  ;;  %3064 = vmatprep.subr.bf16.mxu1 %v3274_v36 }
 0x61b   : > { %3383 = vpow2.f32 %v1831_v21  ;;  %2101 = vmatprep.mubr.bf16.mxu0 %v1972_v43  ;;  %1923 = vadd.xlane.f32.xlu1 %v1922_v49 }
 0x61c   : > { %v3374_v42 = vpop.eup %3373  ;;  %3385 = vpow2.f32 %v1833_v47  ;;  %3065 = vmatpush3.bf16.msra.mxu1 %v3274_v36 }
 0x61d   : > { %v3376_v48 = vpop.eup %3375  ;;  %3387 = vpow2.f32 %v1835_v39  ;;  %2102 = vmatmul.mubr.bf16.gmra.mrb[112].mxu0 %v1971_v41  ;;  %v1651_v14 = vpop.xlane.xlu0 %1650 }
 0x61e   : > { %v3378_v57 = vpop.eup %3377  ;;  %v1717_v26 = vsub.f32 %v5222_v6, %v1651_v14  ;;  %v1718_v50 = vsub.f32 %v5223_v2, %v1651_v14  ;;  %v1925_v33 = vadd.f32 %v3376_v48, %v3374_v42 }
 0x61f   : > { %v3380_v46 = vpop.eup %3379  ;;  %v1654_v53 = vpop.xlane.xlu1 %1653  ;;  %v1973_v63 = vpack.c.bf16 %v3378_v57, %v3374_v42 }
 0x620   : > { %v1837_v25 = vmul.f32 1.442695, %v1717_v26  ;;  %v1839_v29 = vmul.f32 1.442695, %v1718_v50  ;;  %v1719_v62 = vsub.f32 %v5224_v59, %v1654_v53  ;;  %v1720_v35 = vsub.f32 %v5225_v3, %v1654_v53  ;;  %1926 = vadd.xlane.f32.xlu0 %v1925_v33 }
 0x621   : > { %v1974_v30 = vpack.c.bf16 %v3380_v46, %v3376_v48  ;;  %v1928_v58 = vadd.f32 %v3380_v46, %v3378_v57 }
 0x622   : > { %3389 = vpow2.f32 %v1837_v25  ;;  %v1841_v5 = vmul.f32 1.442695, %v1719_v62  ;;  %v1843_v40 = vmul.f32 1.442695, %v1720_v35 }
 0x623   : > { %3391 = vpow2.f32 %v1839_v29  ;;  %2109 = vmatprep.mubr.bf16.mxu0 %v1974_v30  ;;  %1929 = vadd.xlane.f32.xlu1 %v1928_v58 }
 0x624   : > { %v3382_v27 = vpop.eup %3381  ;;  %3393 = vpow2.f32 %v1841_v5 }
 0x625   : > { %v3384_v24 = vpop.eup %3383  ;;  %3395 = vpow2.f32 %v1843_v40  ;;  %2110 = vmatmul.mubr.bf16.gmra.mrb[116].mxu0 %v1973_v63  ;;  %v1657_v52 = vpop.xlane.xlu0 %1656 }
 0x626   : > { %v3386_v19 = vpop.eup %3385  ;;  %v1721_v34 = vsub.f32 %v5226_v20, %v1657_v52  ;;  %v1722_v7 = vsub.f32 %v5227_v1, %v1657_v52  ;;  %v1931_v44 = vadd.f32 %v3384_v24, %v3382_v27 }
 0x627   : > { %v3388_v15 = vpop.eup %3387  ;;  %v1660_v16 = vpop.xlane.xlu1 %1659  ;;  %v1975_v4 = vpack.c.bf16 %v3386_v19, %v3382_v27 }
 0x628   : > { %v1845_v51 = vmul.f32 1.442695, %v1721_v34  ;;  %v1847_v38 = vmul.f32 1.442695, %v1722_v7  ;;  %1932 = vadd.xlane.f32.xlu0 %v1931_v44  ;;  %v1723_v54 = vsub.f32 %v4928_v56, %v1660_v16  ;;  %v1724_v45 = vsub.f32 %v5228_v28, %v1660_v16 }
 0x629   : > { %v1976_v37 = vpack.c.bf16 %v3388_v15, %v3384_v24  ;;  %v1934_v32 = vadd.f32 %v3388_v15, %v3386_v19 }
 0x62a   : > { %3397 = vpow2.f32 %v1845_v51  ;;  %v1849_v17 = vmul.f32 1.442695, %v1723_v54  ;;  %v1851_v10 = vmul.f32 1.442695, %v1724_v45 }
 0x62b   : > { %3399 = vpow2.f32 %v1847_v38  ;;  %2117 = vmatprep.mubr.bf16.mxu0 %v1976_v37  ;;  %1935 = vadd.xlane.f32.xlu1 %v1934_v32 }
 0x62c   : > { %v3390_v55 = vpop.eup %3389  ;;  %3401 = vpow2.f32 %v1849_v17 }
 0x62d   : > { %v3392_v22 = vpop.eup %3391  ;;  %3403 = vpow2.f32 %v1851_v10  ;;  %2118 = vmatmul.mubr.bf16.gmra.mrb[120].mxu0 %v1975_v4 }
 0x62e   : > { %v3394_v56 = vpop.eup %3393  ;;  %v1937_v8 = vadd.f32 %v3392_v22, %v3390_v55 }
 0x62f   : > { %v3396_v13 = vpop.eup %3395  ;;  %v1977_v9 = vpack.c.bf16 %v3394_v56, %v3390_v55 }
 0x630   : > { %1938 = vadd.xlane.f32.xlu0 %v1937_v8  ;;  %v1978_v41 = vpack.c.bf16 %v3396_v13, %v3392_v22  ;;  %v1940_v23 = vadd.f32 %v3396_v13, %v3394_v56 }
 0x632   : > { %2125 = vmatprep.mubr.bf16.mxu0 %v1978_v41  ;;  %1941 = vadd.xlane.f32.xlu1 %v1940_v23 }
 0x634   : > { %v3398_v21 = vpop.eup %3397 }
 0x635   : > { %v3400_v18 = vpop.eup %3399  ;;  %2126 = vmatmul.mubr.bf16.gmra.mrb[124].mxu0 %v1977_v9 }
 0x636   : > { %v3402_v60 = vpop.eup %3401  ;;  %v1943_v11 = vadd.f32 %v3400_v18, %v3398_v21 }
 0x637   : > { %v3404_v0 = vpop.eup %3403  ;;  %v1979_v43 = vpack.c.bf16 %v3402_v60, %v3398_v21 }
 0x638   : > { %1944 = vadd.xlane.f32.xlu0 %v1943_v11  ;;  %v1980_v49 = vpack.c.bf16 %v3404_v0, %v3400_v18  ;;  %v1946_v47 = vadd.f32 %v3404_v0, %v3402_v60 }
 0x63a   : > { %2133 = vmatprep.mubr.bf16.mxu0 %v1980_v49  ;;  %1947 = vadd.xlane.f32.xlu1 %v1946_v47 }
 0x63d   : > { %2134 = vmatmul.mubr.bf16.gmra.mrb[128].mxu0 %v1979_v43 }
 0x64d   : > { %v1855_v39 = vpop.xlane.xlu0 %1854 }
 0x64e   : > { %3405 = vrcp.f32 %v1855_v39 }
 0x652   : > { %v1858_v42 = vpop.xlane.xlu1 %1857 }
 0x653   : > { %3407 = vrcp.f32 %v1858_v42 }
 0x655   : > { %v1861_v12 = vpop.xlane.xlu0 %1860 }
 0x656   : > { %3409 = vrcp.f32 %v1861_v12 }
 0x658   : > { %v3406_v50 = vpop.eup %3405 }
 0x65a   : > { %v1864_v48 = vpop.xlane.xlu1 %1863 }
 0x65b   : > { %3411 = vrcp.f32 %v1864_v48 }
 0x65d   : > { %v3408_v61 = vpop.eup %3407  ;;  %v1867_v63 = vpop.xlane.xlu0 %1866 }
 0x65e   : > { %3413 = vrcp.f32 %v1867_v63 }
 0x660   : > { %v1870_v25 = vpop.xlane.xlu1 %1869  ;;  %v3410_v58 = vpop.eup %3409 }
 0x661   : > { %3415 = vrcp.f32 %v1870_v25 }
 0x665   : > { %v3412_v40 = vpop.eup %3411  ;;  %v1873_v24 = vpop.xlane.xlu0 %1872 }
 0x666   : > { %3417 = vrcp.f32 %v1873_v24 }
 0x668   : > { %v1876_v52 = vpop.xlane.xlu1 %1875  ;;  %v3414_v15 = vpop.eup %3413 }
 0x669   : > { %3419 = vrcp.f32 %v1876_v52 }
 0x66b   : > { %v3416_v4 = vpop.eup %3415 }
 0x66d   : > { %v1879_v54 = vpop.xlane.xlu0 %1878 }
 0x66e   : > { %3421 = vrcp.f32 %v1879_v54 }
 0x670   : > { %v1882_v28 = vpop.xlane.xlu1 %1881  ;;  %v3418_v55 = vpop.eup %3417 }
 0x671   : > { %3423 = vrcp.f32 %v1882_v28 }
 0x673   : > { %v3420_v56 = vpop.eup %3419 }
 0x675   : > { %v1885_v9 = vpop.xlane.xlu0 %1884 }
 0x676   : > { %3425 = vrcp.f32 %v1885_v9 }
 0x678   : > { %v1888_v41 = vpop.xlane.xlu1 %1887  ;;  %v3422_v43 = vpop.eup %3421 }
 0x679   : > { %3427 = vrcp.f32 %v1888_v41 }
 0x67b   : > { %v3424_v47 = vpop.eup %3423 }
 0x67d   : > { %v1891_v12 = vpop.xlane.xlu0 %1890 }
 0x67e   : > { %3429 = vrcp.f32 %v1891_v12 }
 0x680   : > { %v1894_v48 = vpop.xlane.xlu1 %1893 }
 0x681   : > { %3431 = vrcp.f32 %v1894_v48 }
 0x685   : > { %v1897_v25 = vpop.xlane.xlu0 %1896 }
 0x686   : > { %3433 = vrcp.f32 %v1897_v25 }
 0x68d   : > { %v1903_v52 = vpop.xlane.xlu0 %1902 }
 0x695   : > { %v1909_v28 = vpop.xlane.xlu0 %1908 }
 0x698   : > { %v2812_v14 = vpop.f32.mrb[68].mxu0 }
 0x699   : > { %v2813_v57 = vpop.f32.mrb[69].mxu0 }
 0x69a   : > { %v2814_v6 = vadd.f32 %v2813_v57, %v2812_v14  ;;  %v2815_v26 = vpop.f32.mrb[70].mxu0 }
 0x69b   : > { %v2816_v2 = vpop.f32.mrb[71].mxu0 }
 0x69c   : > { %v2817_v33 = vadd.f32 %v2816_v2, %v2815_v26  ;;  %v2174_v46 = vmul.f32 %v3406_v50, %v2814_v6 }
 0x69d   : > { %v1915_v41 = vpop.xlane.xlu0 %1914 }
 0x69e   : > { %v2175_v53 = vmul.f32 %v3408_v61, %v2817_v33  ;;  %v3426_v33 = vpop.eup %3425 }
 0x6a0   : > { %v2818_v29 = vpop.f32.mrb[72].mxu0  ;;  %v2206_v59 = vpack.c.bf16 %v2175_v53, %v2174_v46  ;;  %v3428_v46 = vpop.eup %3427 }
 0x6a1   : > { %v2819_v62 = vpop.f32.mrb[73].mxu0 }
 0x6a2   : > { %v2820_v3 = vadd.f32 %v2819_v62, %v2818_v29  ;;  %v2821_v35 = vpop.f32.mrb[74].mxu0  ;;  %3066 = vmatprep.mubr.bf16.mxu1 %v2206_v59  ;;  %v1900_v29 = vpop.xlane.xlu1 %1899 }
 0x6a3   : > { %v2822_v30 = vpop.f32.mrb[75].mxu0  ;;  %3435 = vrcp.f32 %v1900_v29 }
 0x6a4   : > { %v2823_v5 = vadd.f32 %v2822_v30, %v2821_v35  ;;  %v2176_v27 = vmul.f32 %v3410_v58, %v2820_v3  ;;  %3437 = vrcp.f32 %v1903_v52 }
 0x6a5   : > { %v1921_v48 = vpop.xlane.xlu0 %1920 }
 0x6a6   : > { %v2177_v31 = vmul.f32 %v3412_v40, %v2823_v5  ;;  %v3430_v5 = vpop.eup %3429 }
 0x6a8   : > { %v2207_v19 = vpack.c.bf16 %v2177_v31, %v2176_v27  ;;  %v2824_v20 = vpop.f32.mrb[76].mxu0  ;;  %v3432_v27 = vpop.eup %3431 }
 0x6a9   : > { %v2825_v34 = vpop.f32.mrb[77].mxu0 }
 0x6aa   : > { %v2826_v1 = vadd.f32 %v2825_v34, %v2824_v20  ;;  %v2827_v7 = vpop.f32.mrb[78].mxu0  ;;  %3067 = vmatmul.mubr.bf16.vlgmr.msra.gmra.mrb[100].mxu1 %v2207_v19  ;;  %v1906_v19 = vpop.xlane.xlu1 %1905 }
 0x6ab   : > { %v2828_v44 = vpop.f32.mrb[79].mxu0  ;;  %3439 = vrcp.f32 %v1906_v19 }
 0x6ac   : > { %v2829_v16 = vadd.f32 %v2828_v44, %v2827_v7  ;;  %v2178_v51 = vmul.f32 %v3414_v15, %v2826_v1  ;;  %3441 = vrcp.f32 %v1909_v28 }
 0x6ad   : > { %v1927_v29 = vpop.xlane.xlu0 %1926 }
 0x6ae   : > { %v2179_v38 = vmul.f32 %v3416_v4, %v2829_v16  ;;  %v3434_v16 = vpop.eup %3433 }
 0x6b0   : > { %v2830_v45 = vpop.f32.mrb[80].mxu0  ;;  %v2208_v36 = vpack.c.bf16 %v2179_v38, %v2178_v51  ;;  %v3436_v51 = vpop.eup %3435 }
 0x6b1   : > { %v2831_v37 = vpop.f32.mrb[81].mxu0 }
 0x6b2   : > { %v2832_v32 = vadd.f32 %v2831_v37, %v2830_v45  ;;  %v2833_v17 = vpop.f32.mrb[82].mxu0  ;;  %3070 = vmatprep.mubr.bf16.mxu1 %v2208_v36  ;;  %v1912_v45 = vpop.xlane.xlu1 %1911 }
 0x6b3   : > { %v2834_v10 = vpop.f32.mrb[83].mxu0  ;;  %3443 = vrcp.f32 %v1912_v45 }
 0x6b4   : > { %v2835_v22 = vadd.f32 %v2834_v10, %v2833_v17  ;;  %v2180_v8 = vmul.f32 %v3418_v55, %v2832_v32  ;;  %3445 = vrcp.f32 %v1915_v41 }
 0x6b5   : > { %v1933_v19 = vpop.xlane.xlu0 %1932 }
 0x6b6   : > { %v2181_v13 = vmul.f32 %v3420_v56, %v2835_v22  ;;  %v3438_v22 = vpop.eup %3437 }
 0x6b8   : > { %v2836_v23 = vpop.f32.mrb[84].mxu0  ;;  %v2209_v21 = vpack.c.bf16 %v2181_v13, %v2180_v8  ;;  %v3440_v8 = vpop.eup %3439 }
 0x6b9   : > { %v2837_v18 = vpop.f32.mrb[85].mxu0 }
 0x6ba   : > { %v2838_v60 = vadd.f32 %v2837_v18, %v2836_v23  ;;  %v2839_v11 = vpop.f32.mrb[86].mxu0  ;;  %3071 = vmatmul.mubr.bf16.gmra.mrb[104].mxu1 %v2209_v21  ;;  %v1918_v23 = vpop.xlane.xlu1 %1917 }
 0x6bb   : > { %v2840_v0 = vpop.f32.mrb[87].mxu0  ;;  %3447 = vrcp.f32 %v1918_v23 }
 0x6bc   : > { %v2841_v49 = vadd.f32 %v2840_v0, %v2839_v11  ;;  %v2182_v39 = vmul.f32 %v3422_v43, %v2838_v60  ;;  %3449 = vrcp.f32 %v1921_v48 }
 0x6bd   : > { %v1939_v45 = vpop.xlane.xlu0 %1938 }
 0x6be   : > { %v2183_v42 = vmul.f32 %v3424_v47, %v2841_v49  ;;  %v3442_v49 = vpop.eup %3441 }
 0x6c0   : > { %v2842_v14 = vpop.f32.mrb[88].mxu0  ;;  %v2210_v57 = vpack.c.bf16 %v2183_v42, %v2182_v39  ;;  %v3444_v39 = vpop.eup %3443 }
 0x6c1   : > { %v2843_v6 = vpop.f32.mrb[89].mxu0 }
 0x6c2   : > { %v2844_v26 = vadd.f32 %v2843_v6, %v2842_v14  ;;  %v2845_v2 = vpop.f32.mrb[90].mxu0  ;;  %3074 = vmatprep.mubr.bf16.mxu1 %v2210_v57  ;;  %v1924_v14 = vpop.xlane.xlu1 %1923 }
 0x6c3   : > { %v2846_v50 = vpop.f32.mrb[91].mxu0  ;;  %3451 = vrcp.f32 %v1924_v14 }
 0x6c4   : > { %v2847_v61 = vadd.f32 %v2846_v50, %v2845_v2  ;;  %v2184_v53 = vmul.f32 %v3426_v33, %v2844_v26  ;;  %3453 = vrcp.f32 %v1927_v29  ;;  %v5003_v29 = vld [vmem:[%s5163_s7] ss:$0 sm:$0xff] }
 0x6c5   : > { %v1945_v23 = vpop.xlane.xlu0 %1944 }
 0x6c6   : > { %v2185_v63 = vmul.f32 %v3428_v46, %v2847_v61  ;;  %v3446_v61 = vpop.eup %3445 }
 0x6c8   : > { %v2848_v59 = vpop.f32.mrb[92].mxu0  ;;  %v2211_v62 = vpack.c.bf16 %v2185_v63, %v2184_v53  ;;  %v3448_v53 = vpop.eup %3447 }
 0x6c9   : > { %v2849_v3 = vpop.f32.mrb[93].mxu0 }
 0x6ca   : > { %v2850_v35 = vadd.f32 %v2849_v3, %v2848_v59  ;;  %v2851_v30 = vpop.f32.mrb[94].mxu0  ;;  %3075 = vmatmul.mubr.bf16.gmra.mrb[108].mxu1 %v2211_v62  ;;  %v1930_v59 = vpop.xlane.xlu1 %1929 }
 0x6cb   : > { %v2852_v58 = vpop.f32.mrb[95].mxu0  ;;  %3455 = vrcp.f32 %v1930_v59 }
 0x6cc   : > { %v2853_v40 = vadd.f32 %v2852_v58, %v2851_v30  ;;  %v2186_v31 = vmul.f32 %v3430_v5, %v2850_v35  ;;  %3457 = vrcp.f32 %v1933_v19  ;;  %v3471_v19 = vld [vmem:[%s3955_s3 + $0x18] sm:$0xff] }
 0x6ce   : > { %v2187_v24 = vmul.f32 %v3432_v27, %v2853_v40  ;;  %v3450_v40 = vpop.eup %3449 }
 0x6d0   : > { %v2854_v20 = vpop.f32.mrb[96].mxu0  ;;  %v2212_v34 = vpack.c.bf16 %v2187_v24, %v2186_v31  ;;  %v3452_v31 = vpop.eup %3451 }
 0x6d1   : > { %v2855_v1 = vpop.f32.mrb[97].mxu0 }
 0x6d2   : > { %v2856_v7 = vadd.f32 %v2855_v1, %v2854_v20  ;;  %v2857_v44 = vpop.f32.mrb[98].mxu0  ;;  %3078 = vmatprep.mubr.bf16.mxu1 %v2212_v34  ;;  %v1936_v20 = vpop.xlane.xlu1 %1935 }
 0x6d3   : > { %v2858_v15 = vpop.f32.mrb[99].mxu0  ;;  %3459 = vrcp.f32 %v1936_v20 }
 0x6d4   : > { %v2859_v4 = vadd.f32 %v2858_v15, %v2857_v44  ;;  %v2188_v38 = vmul.f32 %v3434_v16, %v2856_v7  ;;  %3461 = vrcp.f32 %v1939_v45  ;;  %v3474_v45 = vld [vmem:[%s3955_s3 + $0x20] sm:$0xff] }
 0x6d6   : > { %v2189_v54 = vmul.f32 %v3436_v51, %v2859_v4  ;;  %v3454_v4 = vpop.eup %3453 }
 0x6d8   : > { %v2860_v36 = vpop.f32.mrb[100].mxu0  ;;  %v2213_v37 = vpack.c.bf16 %v2189_v54, %v2188_v38  ;;  %v3456_v38 = vpop.eup %3455 }
 0x6d9   : > { %v2861_v32 = vpop.f32.mrb[101].mxu0 }
 0x6da   : > { %v2862_v17 = vadd.f32 %v2861_v32, %v2860_v36  ;;  %v2863_v10 = vpop.f32.mrb[102].mxu0  ;;  %3079 = vmatmul.mubr.bf16.gmra.mrb[112].mxu1 %v2213_v37  ;;  %v1942_v36 = vpop.xlane.xlu1 %1941 }
 0x6db   : > { %v2864_v55 = vpop.f32.mrb[103].mxu0  ;;  %3463 = vrcp.f32 %v1942_v36 }
 0x6dc   : > { %v2865_v56 = vadd.f32 %v2864_v55, %v2863_v10  ;;  %v2190_v13 = vmul.f32 %v3438_v22, %v2862_v17  ;;  %3465 = vrcp.f32 %v1945_v23 }
 0x6de   : > { %v2191_v9 = vmul.f32 %v3440_v8, %v2865_v56  ;;  %v3458_v56 = vpop.eup %3457 }
 0x6e0   : > { %v2866_v21 = vpop.f32.mrb[104].mxu0  ;;  %v2214_v18 = vpack.c.bf16 %v2191_v9, %v2190_v13  ;;  %v3460_v13 = vpop.eup %3459 }
 0x6e1   : > { %v2867_v60 = vpop.f32.mrb[105].mxu0 }
 0x6e2   : > { %v2868_v11 = vadd.f32 %v2867_v60, %v2866_v21  ;;  %v2869_v0 = vpop.f32.mrb[106].mxu0  ;;  %3082 = vmatprep.mubr.bf16.mxu1 %v2214_v18  ;;  %v1948_v21 = vpop.xlane.xlu1 %1947 }
 0x6e3   : > { %v2870_v43 = vpop.f32.mrb[107].mxu0  ;;  %3467 = vrcp.f32 %v1948_v21 }
 0x6e4   : > { %v2871_v47 = vadd.f32 %v2870_v43, %v2869_v0  ;;  %v2192_v42 = vmul.f32 %v3442_v49, %v2868_v11 }
 0x6e6   : > { %v2193_v12 = vmul.f32 %v3444_v39, %v2871_v47  ;;  %v3462_v47 = vpop.eup %3461 }
 0x6e8   : > { %v2872_v57 = vpop.f32.mrb[108].mxu0  ;;  %v2215_v6 = vpack.c.bf16 %v2193_v12, %v2192_v42  ;;  %v3464_v42 = vpop.eup %3463 }
 0x6e9   : > { %v2873_v26 = vpop.f32.mrb[109].mxu0 }
 0x6ea   : > { %v2874_v2 = vadd.f32 %v2873_v26, %v2872_v57  ;;  %v2875_v50 = vpop.f32.mrb[110].mxu0  ;;  %3083 = vmatmul.mubr.bf16.gmra.mrb[116].mxu1 %v2215_v6 }
 0x6eb   : > { %v2876_v33 = vpop.f32.mrb[111].mxu0 }
 0x6ec   : > { %v2877_v46 = vadd.f32 %v2876_v33, %v2875_v50  ;;  %v2194_v63 = vmul.f32 %v3446_v61, %v2874_v2  ;;  %v3466_v33 = vpop.eup %3465 }
 0x6ee   : > { %v2195_v25 = vmul.f32 %v3448_v53, %v2877_v46  ;;  %v3468_v46 = vpop.eup %3467 }
 0x6f0   : > { %v2878_v62 = vpop.f32.mrb[112].mxu0  ;;  %v2216_v3 = vpack.c.bf16 %v2195_v25, %v2194_v63 }
 0x6f1   : > { %v2879_v35 = vpop.f32.mrb[113].mxu0 }
 0x6f2   : > { %v2880_v30 = vadd.f32 %v2879_v35, %v2878_v62  ;;  %v2881_v58 = vpop.f32.mrb[114].mxu0  ;;  %3086 = vmatprep.mubr.bf16.mxu1 %v2216_v3 }
 0x6f3   : > { %v2882_v5 = vpop.f32.mrb[115].mxu0 }
 0x6f4   : > { %v2883_v27 = vadd.f32 %v2882_v5, %v2881_v58  ;;  %v2196_v24 = vmul.f32 %v3450_v40, %v2880_v30  ;;  %v3469_v58 = vld [vmem:[%s3955_s3 + $0x10] sm:$0xff] }
 0x6f6   : > { %v2197_v52 = vmul.f32 %v3452_v31, %v2883_v27  ;;  %v3470_v31 = vld [vmem:[%s3955_s3] sm:$0xff] }
 0x6f8   : > { %v2884_v34 = vpop.f32.mrb[116].mxu0  ;;  %v2217_v1 = vpack.c.bf16 %v2197_v52, %v2196_v24 }
 0x6f9   : > { %v2885_v7 = vpop.f32.mrb[117].mxu0 }
 0x6fa   : > { %v2886_v44 = vadd.f32 %v2885_v7, %v2884_v34  ;;  %v2887_v15 = vpop.f32.mrb[118].mxu0  ;;  %3087 = vmatmul.mubr.bf16.gmra.mrb[120].mxu1 %v2217_v1  ;;  %v3472_v34 = vld [vmem:[%s3955_s3 + $0x8] sm:$0xff] }
 0x6fb   : > { %v2888_v16 = vpop.f32.mrb[119].mxu0 }
 0x6fc   : > { %v2889_v51 = vadd.f32 %v2888_v16, %v2887_v15  ;;  %v2198_v54 = vmul.f32 %v3454_v4, %v2886_v44 }
 0x6fe   : > { %v2199_v28 = vmul.f32 %v3456_v38, %v2889_v51  ;;  %v3473_v51 = vld [vmem:[%s3955_s3 + $0x30] sm:$0xff] }
 0x700   : > { %v2890_v37 = vpop.f32.mrb[120].mxu0  ;;  %v2218_v32 = vpack.c.bf16 %v2199_v28, %v2198_v54 }
 0x701   : > { %v2891_v17 = vpop.f32.mrb[121].mxu0 }
 0x702   : > { %v2892_v10 = vadd.f32 %v2891_v17, %v2890_v37  ;;  %v2893_v55 = vpop.f32.mrb[122].mxu0  ;;  %3090 = vmatprep.mubr.bf16.mxu1 %v2218_v32  ;;  %v3475_v32 = vld [vmem:[%s3955_s3 + $0x38] sm:$0xff] }
 0x703   : > { %v2894_v22 = vpop.f32.mrb[123].mxu0 }
 0x704   : > { %v2895_v8 = vadd.f32 %v2894_v22, %v2893_v55  ;;  %v2200_v9 = vmul.f32 %v3458_v56, %v2892_v10  ;;  %v3476_v10 = vld [vmem:[%s3955_s3 + $0x28] sm:$0xff] }
 0x706   : > { %v2201_v41 = vmul.f32 %v3460_v13, %v2895_v8 }
 0x708   : > { %v2896_v18 = vpop.f32.mrb[124].mxu0  ;;  %v2219_v60 = vpack.c.bf16 %v2201_v41, %v2200_v9  ;;  %v3477_v41 = vld [vmem:[%s3955_s3 + $0x50] sm:$0xff] }
 0x709   : > { %v2897_v11 = vpop.f32.mrb[125].mxu0 }
 0x70a   : > { %v2898_v0 = vadd.f32 %v2897_v11, %v2896_v18  ;;  %v2899_v43 = vpop.f32.mrb[126].mxu0  ;;  %3091 = vmatmul.mubr.bf16.gmra.mrb[124].mxu1 %v2219_v60  ;;  %v3478_v60 = vld [vmem:[%s3955_s3 + $0x40] sm:$0xff] }
 0x70b   : > { %v2900_v49 = vpop.f32.mrb[127].mxu0 }
 0x70c   : > { %v2901_v39 = vadd.f32 %v2900_v49, %v2899_v43  ;;  %v2202_v12 = vmul.f32 %v3462_v47, %v2898_v0  ;;  %v3479_v43 = vld [vmem:[%s3955_s3 + $0x58] sm:$0xff]  ;;  %v3480_v47 = vld [vmem:[%s3955_s3 + $0x48] sm:$0xff] }
 0x70e   : > { %v2203_v48 = vmul.f32 %v3464_v42, %v2901_v39 }
 0x710   : > { %v2902_v14 = vpop.f32.mrb[128].mxu0  ;;  %v2220_v57 = vpack.c.bf16 %v2203_v48, %v2202_v12 }
 0x711   : > { %v2903_v6 = vpop.f32.mrb[129].mxu0 }
 0x712   : > { %v2904_v26 = vadd.f32 %v2903_v6, %v2902_v14  ;;  %v2905_v2 = vpop.f32.mrb[130].mxu0  ;;  %3094 = vmatprep.mubr.bf16.mxu1 %v2220_v57  ;;  %v3481_v6 = vld [vmem:[%s3955_s3 + $0x70] sm:$0xff] }
 0x713   : > { %v2906_v50 = vpop.f32.mrb[131].mxu0 }
 0x714   : > { %v2907_v61 = vadd.f32 %v2906_v50, %v2905_v2  ;;  %v2204_v53 = vmul.f32 %v3466_v33, %v2904_v26  ;;  %v3482_v33 = vld [vmem:[%s3955_s3 + $0x60] sm:$0xff] }
 0x716   : > { %v2205_v63 = vmul.f32 %v3468_v46, %v2907_v61 }
 0x718   : > { %v2221_v25 = vpack.c.bf16 %v2205_v63, %v2204_v53  ;;  %v3483_v53 = vld [vmem:[%s3955_s3 + $0x78] sm:$0xff] }
 0x71a   : > { %3095 = vmatmul.mubr.bf16.gmra.mrb[128].mxu1 %v2221_v25  ;;  %v3484_v25 = vld [vmem:[%s3955_s3 + $0x68] sm:$0xff] }
 0x77d   : > { %v3068_v59 = vpop.f32.mrb[100].mxu1 }
 0x77e   : > { %v2336_v62 = vadd.f32 %v3068_v59, %v5003_v29  ;;  %v2327_v3 = vpop.f32.mrb[101].mxu1 }
 0x77f   : > { %v2328_v35 = vadd.f32 %v5003_v29, %v2327_v3  ;;  %v3069_v30 = vpop.f32.mrb[102].mxu1 }
 0x780   : > { %v2456_v5 = vadd.f32 %v3469_v58, %v2336_v62  ;;  %v2339_v40 = vadd.f32 %v3069_v30, %v5003_v29  ;;  %v2330_v27 = vpop.f32.mrb[103].mxu1 }
 0x781   : > { %v2454_v24 = vadd.f32 %v3470_v31, %v2328_v35  ;;  %v2331_v52 = vadd.f32 %v5003_v29, %v2330_v27 }
 0x782   : > { %2488 = vst [vmem:[%s5013_s12 + $0x10] sm:$0xff] %v2456_v5  ;;  %v2457_v20 = vadd.f32 %v3471_v19, %v2339_v40  ;;  %v3485_v5 = vld [vmem:[%s3955_s3 + $0x90] sm:$0xff] }
 0x783   : > { %2486 = vst [vmem:[%s5013_s12] sm:$0xff] %v2454_v24  ;;  %v2455_v1 = vadd.f32 %v3472_v34, %v2331_v52  ;;  %v3486_v24 = vld [vmem:[%s3955_s3 + $0x80] sm:$0xff] }
 0x784   : > { %2489 = vst [vmem:[%s5013_s12 + $0x18] sm:$0xff] %v2457_v20  ;;  %v3487_v20 = vld [vmem:[%s3955_s3 + $0x98] sm:$0xff] }
 0x785   : > { %2487 = vst [vmem:[%s5013_s12 + $0x8] sm:$0xff] %v2455_v1  ;;  %v3488_v1 = vld [vmem:[%s3955_s3 + $0x88] sm:$0xff] }
 0x78d   : > { %v3072_v7 = vpop.f32.mrb[104].mxu1 }
 0x78e   : > { %v2352_v44 = vadd.f32 %v3072_v7, %v5003_v29  ;;  %v2343_v15 = vpop.f32.mrb[105].mxu1 }
 0x78f   : > { %v2344_v16 = vadd.f32 %v5003_v29, %v2343_v15  ;;  %v3073_v4 = vpop.f32.mrb[106].mxu1 }
 0x790   : > { %v2460_v38 = vadd.f32 %v3473_v51, %v2352_v44  ;;  %v2355_v54 = vadd.f32 %v3073_v4, %v5003_v29  ;;  %v2346_v28 = vpop.f32.mrb[107].mxu1 }
 0x791   : > { %v2458_v36 = vadd.f32 %v3474_v45, %v2344_v16  ;;  %v2347_v37 = vadd.f32 %v5003_v29, %v2346_v28 }
 0x792   : > { %2492 = vst [vmem:[%s5013_s12 + $0x30] sm:$0xff] %v2460_v38  ;;  %v2461_v17 = vadd.f32 %v3475_v32, %v2355_v54  ;;  %v3489_v38 = vld [vmem:[%s3955_s3 + $0xb0] sm:$0xff] }
 0x793   : > { %2490 = vst [vmem:[%s5013_s12 + $0x20] sm:$0xff] %v2458_v36  ;;  %v2459_v55 = vadd.f32 %v3476_v10, %v2347_v37  ;;  %v3490_v36 = vld [vmem:[%s3955_s3 + $0xa0] sm:$0xff] }
 0x794   : > { %2493 = vst [vmem:[%s5013_s12 + $0x38] sm:$0xff] %v2461_v17  ;;  %v3491_v17 = vld [vmem:[%s3955_s3 + $0xb8] sm:$0xff] }
 0x795   : > { %2491 = vst [vmem:[%s5013_s12 + $0x28] sm:$0xff] %v2459_v55  ;;  %v3492_v55 = vld [vmem:[%s3955_s3 + $0xa8] sm:$0xff] }
 0x79d   : > { %v3076_v22 = vpop.f32.mrb[108].mxu1 }
 0x79e   : > { %v2368_v56 = vadd.f32 %v3076_v22, %v5003_v29  ;;  %v2359_v8 = vpop.f32.mrb[109].mxu1 }
 0x79f   : > { %v2360_v13 = vadd.f32 %v5003_v29, %v2359_v8  ;;  %v3077_v9 = vpop.f32.mrb[110].mxu1 }
 0x7a0   : > { %v2464_v23 = vadd.f32 %v3477_v41, %v2368_v56  ;;  %v2371_v21 = vadd.f32 %v3077_v9, %v5003_v29  ;;  %v2362_v18 = vpop.f32.mrb[111].mxu1 }
 0x7a1   : > { %v2462_v11 = vadd.f32 %v3478_v60, %v2360_v13  ;;  %v2363_v0 = vadd.f32 %v5003_v29, %v2362_v18 }
 0x7a2   : > { %2496 = vst [vmem:[%s5013_s12 + $0x50] sm:$0xff] %v2464_v23  ;;  %v2465_v49 = vadd.f32 %v3479_v43, %v2371_v21  ;;  %v3493_v23 = vld [vmem:[%s3955_s3 + $0xd0] sm:$0xff] }
 0x7a3   : > { %2494 = vst [vmem:[%s5013_s12 + $0x40] sm:$0xff] %v2462_v11  ;;  %v2463_v39 = vadd.f32 %v3480_v47, %v2363_v0  ;;  %v3494_v11 = vld [vmem:[%s3955_s3 + $0xc0] sm:$0xff] }
 0x7a4   : > { %2497 = vst [vmem:[%s5013_s12 + $0x58] sm:$0xff] %v2465_v49  ;;  %v3495_v49 = vld [vmem:[%s3955_s3 + $0xd8] sm:$0xff] }
 0x7a5   : > { %2495 = vst [vmem:[%s5013_s12 + $0x48] sm:$0xff] %v2463_v39  ;;  %v3496_v39 = vld [vmem:[%s3955_s3 + $0xc8] sm:$0xff] }
 0x7ad   : > { %v3080_v42 = vpop.f32.mrb[112].mxu1 }
 0x7ae   : > { %v2384_v12 = vadd.f32 %v3080_v42, %v5003_v29  ;;  %v2375_v48 = vpop.f32.mrb[113].mxu1 }
 0x7af   : > { %v2376_v14 = vadd.f32 %v5003_v29, %v2375_v48  ;;  %v3081_v57 = vpop.f32.mrb[114].mxu1 }
 0x7b0   : > { %v2468_v26 = vadd.f32 %v3481_v6, %v2384_v12  ;;  %v2387_v2 = vadd.f32 %v3081_v57, %v5003_v29  ;;  %v2378_v50 = vpop.f32.mrb[115].mxu1 }
 0x7b1   : > { %v2466_v61 = vadd.f32 %v3482_v33, %v2376_v14  ;;  %v2379_v46 = vadd.f32 %v5003_v29, %v2378_v50 }
 0x7b2   : > { %2500 = vst [vmem:[%s5013_s12 + $0x70] sm:$0xff] %v2468_v26  ;;  %v2469_v63 = vadd.f32 %v3483_v53, %v2387_v2  ;;  %v3497_v26 = vld [vmem:[%s3955_s3 + $0xf0] sm:$0xff] }
 0x7b3   : > { %2498 = vst [vmem:[%s5013_s12 + $0x60] sm:$0xff] %v2466_v61  ;;  %v2467_v59 = vadd.f32 %v3484_v25, %v2379_v46  ;;  %v3498_v61 = vld [vmem:[%s3955_s3 + $0xe0] sm:$0xff] }
 0x7b4   : > { %2501 = vst [vmem:[%s5013_s12 + $0x78] sm:$0xff] %v2469_v63  ;;  %v3499_v63 = vld [vmem:[%s3955_s3 + $0xf8] sm:$0xff] }
 0x7b5   : > { %2499 = vst [vmem:[%s5013_s12 + $0x68] sm:$0xff] %v2467_v59  ;;  %v3500_v59 = vld [vmem:[%s3955_s3 + $0xe8] sm:$0xff] }
 0x7bd   : > { %v3084_v62 = vpop.f32.mrb[116].mxu1 }
 0x7be   : > { %v2400_v3 = vadd.f32 %v3084_v62, %v5003_v29  ;;  %v2391_v35 = vpop.f32.mrb[117].mxu1 }
 0x7bf   : > { %v2392_v30 = vadd.f32 %v5003_v29, %v2391_v35  ;;  %v3085_v58 = vpop.f32.mrb[118].mxu1 }
 0x7c0   : > { %v2472_v40 = vadd.f32 %v3485_v5, %v2400_v3  ;;  %v2403_v27 = vadd.f32 %v3085_v58, %v5003_v29  ;;  %v2394_v31 = vpop.f32.mrb[119].mxu1 }
 0x7c1   : > { %v2470_v52 = vadd.f32 %v3486_v24, %v2392_v30  ;;  %v2395_v19 = vadd.f32 %v5003_v29, %v2394_v31 }
 0x7c2   : > { %2504 = vst [vmem:[%s5013_s12 + $0x90] sm:$0xff] %v2472_v40  ;;  %v2473_v34 = vadd.f32 %v3487_v20, %v2403_v27 }
 0x7c3   : > { %2502 = vst [vmem:[%s5013_s12 + $0x80] sm:$0xff] %v2470_v52  ;;  %v2471_v7 = vadd.f32 %v3488_v1, %v2395_v19 }
 0x7c4   : > { %2505 = vst [vmem:[%s5013_s12 + $0x98] sm:$0xff] %v2473_v34 }
 0x7c5   : > { %2503 = vst [vmem:[%s5013_s12 + $0x88] sm:$0xff] %v2471_v7 }
 0x7cd   : > { %v3088_v44 = vpop.f32.mrb[120].mxu1 }
 0x7ce   : > { %v2416_v15 = vadd.f32 %v3088_v44, %v5003_v29  ;;  %v2407_v16 = vpop.f32.mrb[121].mxu1 }
 0x7cf   : > { %v2408_v4 = vadd.f32 %v5003_v29, %v2407_v16  ;;  %v3089_v51 = vpop.f32.mrb[122].mxu1 }
 0x7d0   : > { %v2476_v54 = vadd.f32 %v3489_v38, %v2416_v15  ;;  %v2419_v28 = vadd.f32 %v3089_v51, %v5003_v29  ;;  %v2410_v45 = vpop.f32.mrb[123].mxu1 }
 0x7d1   : > { %v2474_v37 = vadd.f32 %v3490_v36, %v2408_v4  ;;  %v2411_v32 = vadd.f32 %v5003_v29, %v2410_v45 }
 0x7d2   : > { %2508 = vst [vmem:[%s5013_s12 + $0xb0] sm:$0xff] %v2476_v54  ;;  %v2477_v10 = vadd.f32 %v3491_v17, %v2419_v28 }
 0x7d3   : > { %2506 = vst [vmem:[%s5013_s12 + $0xa0] sm:$0xff] %v2474_v37  ;;  %v2475_v22 = vadd.f32 %v3492_v55, %v2411_v32 }
 0x7d4   : > { %2509 = vst [vmem:[%s5013_s12 + $0xb8] sm:$0xff] %v2477_v10 }
 0x7d5   : > { %2507 = vst [vmem:[%s5013_s12 + $0xa8] sm:$0xff] %v2475_v22 }
 0x7dd   : > { %v3092_v56 = vpop.f32.mrb[124].mxu1 }
 0x7de   : > { %v2432_v8 = vadd.f32 %v3092_v56, %v5003_v29  ;;  %v2423_v13 = vpop.f32.mrb[125].mxu1 }
 0x7df   : > { %v2424_v9 = vadd.f32 %v5003_v29, %v2423_v13  ;;  %v3093_v41 = vpop.f32.mrb[126].mxu1 }
 0x7e0   : > { %v2480_v21 = vadd.f32 %v3493_v23, %v2432_v8  ;;  %v2435_v18 = vadd.f32 %v3093_v41, %v5003_v29  ;;  %v2426_v60 = vpop.f32.mrb[127].mxu1 }
 0x7e1   : > { %v2478_v0 = vadd.f32 %v3494_v11, %v2424_v9  ;;  %v2427_v43 = vadd.f32 %v5003_v29, %v2426_v60 }
 0x7e2   : > { %2512 = vst [vmem:[%s5013_s12 + $0xd0] sm:$0xff] %v2480_v21  ;;  %v2481_v47 = vadd.f32 %v3495_v49, %v2435_v18 }
 0x7e3   : > { %2510 = vst [vmem:[%s5013_s12 + $0xc0] sm:$0xff] %v2478_v0  ;;  %v2479_v42 = vadd.f32 %v3496_v39, %v2427_v43 }
 0x7e4   : > { %2513 = vst [vmem:[%s5013_s12 + $0xd8] sm:$0xff] %v2481_v47 }
 0x7e5   : > { %2511 = vst [vmem:[%s5013_s12 + $0xc8] sm:$0xff] %v2479_v42 }
 0x7ed   : > { %v3096_v12 = vpop.f32.mrb[128].mxu1 }
 0x7ee   : > { %v2448_v48 = vadd.f32 %v3096_v12, %v5003_v29  ;;  %v2439_v14 = vpop.f32.mrb[129].mxu1 }
 0x7ef   : > { %v2440_v57 = vadd.f32 %v5003_v29, %v2439_v14  ;;  %v3097_v6 = vpop.f32.mrb[130].mxu1 }
 0x7f0   : > { %v2484_v2 = vadd.f32 %v3497_v26, %v2448_v48  ;;  %v2451_v50 = vadd.f32 %v3097_v6, %v5003_v29  ;;  %v2442_v33 = vpop.f32.mrb[131].mxu1 }
 0x7f1   : > { %v2482_v46 = vadd.f32 %v3498_v61, %v2440_v57  ;;  %v2443_v53 = vadd.f32 %v5003_v29, %v2442_v33 }
 0x7f2   : > { %2516 = vst [vmem:[%s5013_s12 + $0xf0] sm:$0xff] %v2484_v2  ;;  %v2485_v25 = vadd.f32 %v3499_v63, %v2451_v50 }
 0x7f3   : > { %2514 = vst [vmem:[%s5013_s12 + $0xe0] sm:$0xff] %v2482_v46  ;;  %v2483_v62 = vadd.f32 %v3500_v59, %v2443_v53 }
 0x7f4   : > { %2517 = vst [vmem:[%s5013_s12 + $0xf8] sm:$0xff] %v2485_v25 }
 0x7f5   : > { %2515 = vst [vmem:[%s5013_s12 + $0xe8] sm:$0xff] %v2483_v62 }
 0x7f6   : > { %3628 = shalt.err (!%p3625_p4)
}
 0x7f7   : > { %s3629_s3 = scalar_lea.hbm %s5106_s9, 4096  ;;  %s3633_s18 = scalar_lea.hbm %s5164_s8, 8192 }
 0x7f8   : > { %p3630_p9 = scmp.ne.s32.totalorder %s5106_s9, %s3629_s3  ;;  %p3634_p8 = scmp.lt.u32.totalorder %s5106_s9, %s5164_s8 }
 0x7f9   : > { %p3635_p13 = scmp.lt.u32.totalorder %s3633_s18, %s3629_s3  ;;  %p3637_p10 = scmp.lt.u32.totalorder %s3629_s3, %s5106_s9 }
 0x7fa   : > { %p3631_p0 = pnand %p3630_p9, %p3898_p5 }
 0x7fb   : > { %p3636_p6 = por %p3635_p13, %p3634_p8 }
 0x7fc   : > { %p3632_p11 = pneg %p3631_p0 }
 0x7fd   : > { %p3638_p3 = por %p3637_p10, %p3636_p6 }
 0x7ff   : > { %p3639_p7 = pnand %p3638_p3, %p3632_p11 }
 0x801   : > { %3642 = shalt.err (!%p3639_p7)
}
 0x802   : > { %s3706_s23 = smov 128   ;;  %s3707_s26 = smov 8  }
 0x803   : > { %3160 = dma.vmem_to_hbm [thread:$0]  (%p3898_p5), %s5108_s20, 4096, %s5106_s9, %s2519_s11, %s3706_s23, %s3706_s23, %s3707_s26  }
 0x804 PF: > { %s5229_s13 = sld [smem:[#allocation15_spill]]  ;;  %s2547_s15 = sand.u32 1, %s3677_s27  }
 0x805   : > { %p5231_p1 = scmp.ge.s32.totalorder %s3689_s30, 2  ;;  %s2548_s14 = scalar_lea.sflag [#allocation4], %s2547_s15 }
 0x80a   : > { %p5230_p12 = scmp.ne.s32.totalorder %s5229_s13, 0 }
 0x80c   : > { %p3177_p2 = pnand %p5231_p1, %p5230_p12 }
 0x80e   : > { %3672 = dma.done.wait (!%p3177_p2), %s2548_s14, 4096  }
 0x80f   : > { %3674 = vsyncadd (!%p3177_p2), %s2548_s14, 4294963200  ;;  %p23_p4 = scmp.ge.s32.totalorder %s3884_s19, 4   ;;  %s5232_s27 = smov %s3681_s28 }
 0x810   : > { %s5233_s28 = smov %s3685_s29  ;;  %s5234_s29 = smov %s3894_s21 }
 0x811   : > { %s5235_s30 = smov %s3884_s19  ;;  %25 = sbr.rel (!%p23_p4) target bundleno = 9 (0x9), region = 109 }
 0x818   :  { %2553 = vsyncpa [#allocation3], 1 }
 0x819   :  { %2555 = vsyncpa [#allocation3 + $0x1], 1 }
 0x81a   :  { %2556 = vsyncpa [#allocation6], 1 }
 0x81b   :  { %2557 = vsyncpa [#allocation9], 1 }
 0x81c   :  { %2558 = vsyncpa [#allocation4], 1 }
 0x81d   :  { %2560 = vsyncpa [#allocation4 + $0x1], 1 }

</bundles_post_ra>
